<compile_context>
chip_gen: v7x
topology: tpu7x:2x2x1
jax: 0.10.0
libtpu: 0.0.40
codegen_flags: <defaults>
</compile_context>

<pallas_src>
import functools
from typing import NamedTuple

import jax
import jax.numpy as jnp
from jax.experimental import pallas as pl
from jax.experimental.pallas import tpu as pltpu


def _round_up(x: int, m: int) -> int:
    return (x + m - 1) // m * m


def _pad2(a, rows: int, cols: int):
    pr, pc = rows - a.shape[0], cols - a.shape[1]
    if pr or pc:
        a = jnp.pad(a, ((0, pr), (0, pc)))
    return a


def _vmem_capacity_bytes() -> int:
    """Physical VMEM of the current TPU generation (conservative fallback)."""
    try:
        info = pltpu.get_tpu_info()
        cap = getattr(info, "vmem_capacity_bytes", None)
        if cap:
            return int(cap)
    except Exception:
        pass
    return 64 << 20  # v7x-like conservative default


def _select_tiles(tm_pref: int, Dp: int, Hp: int, budget: int, c_sz: int):
    """Pick (tm, th): largest th (multiple of 128) whose double-buffered weight
    tiles fit the VMEM budget alongside the x tile and the f32 output/acc."""
    tm = max(16, _round_up(tm_pref, 16))
    while True:
        # x tile (2 bufs, compute dtype) + output/accumulator (worst case
        # 8 B/elem: either 2x f32 out or 2x bf16 out + f32 scratch) + b2 + slack.
        fixed = 2 * tm * Dp * c_sz + 8 * tm * Dp + 2 * Dp * 4 + (2 << 20)
        per_th = 4 * Dp * c_sz + 8        # W1 col + W2 row (2 bufs each) + b1
        avail = budget - fixed
        if avail >= per_th * 128 or tm <= 16:
            break
        tm = max(16, _round_up(tm // 2, 16))
    th = (avail // per_th) // 128 * 128 if avail >= per_th * 128 else 128
    th = max(128, min(Hp, th))
    return tm, th


class FFNParams(NamedTuple):   # padded / pre-cast weights (pytree of arrays)
    w1: jax.Array
    b1: jax.Array
    w2: jax.Array
    b2: jax.Array


class FFNMeta(NamedTuple):     # static tiling metadata (hashable -> jit static)
    D: int
    H: int
    Dp: int
    Hp: int
    tm: int
    th: int
    vmem_budget: int


def prepare_ffn_params(w1, b1, w2, b2, *, compute_dtype=jnp.bfloat16,
                       tm: int | None = None, th: int | None = None):
    """Pad + cast the weights ONCE (hoisted out of the per-call path) and pick
    generation-aware tile sizes."""
    D, H = w1.shape
    assert w2.shape == (H, D) and b1.shape == (H,) and b2.shape == (D,)

    Dp = _round_up(D, 128)
    Hp = _round_up(H, 128)
    c_sz = jnp.dtype(compute_dtype).itemsize

    cap = _vmem_capacity_bytes()
    budget = int(min(cap * 7 // 8, 104 << 20))       # ~104 MiB v5e/v6e, ~56 MiB v7x
    # Ridge-point driven row-tile preference: ~640 FLOP/B on v6e -> tm>=768;
    # VMEM-limited 512 on v7x (64 MiB).
    tm_pref = tm if tm is not None else (768 if cap >= (96 << 20) else 512)

    if th is None:
        tm_sel, th_sel = _select_tiles(tm_pref, Dp, Hp, budget, c_sz)
    else:
        tm_sel = max(16, _round_up(tm_pref, 16))
        th_sel = max(128, min(Hp, _round_up(th, 128)))
    Hp = _round_up(Hp, th_sel)   # padded H columns contribute exactly zero

    w1_p = _pad2(jnp.asarray(w1), Dp, Hp).astype(compute_dtype)
    w2_p = _pad2(jnp.asarray(w2), Hp, Dp).astype(compute_dtype)
    b1_p = _pad2(jnp.asarray(b1, jnp.float32).reshape(1, H), 1, Hp)
    b2_p = _pad2(jnp.asarray(b2, jnp.float32).reshape(1, D), 1, Dp)

    params = FFNParams(w1_p, b1_p, w2_p, b2_p)
    meta = FFNMeta(D=D, H=H, Dp=Dp, Hp=Hp, tm=tm_sel, th=th_sel,
                   vmem_budget=budget)
    return params, meta


def ffn_kernel_acc_out(x_ref, w1_ref, b1_ref, w2_ref, b2_ref, o_ref):
    """f32 output: accumulate directly into the resident output block."""
    h_idx = pl.program_id(1)

    @pl.when(h_idx == 0)
    def _init():
        o_ref[...] = jnp.broadcast_to(b2_ref[...], o_ref.shape)

    h = jnp.dot(x_ref[...], w1_ref[...], preferred_element_type=jnp.float32)
    h = jnp.maximum(h + b1_ref[...], 0.0)
    o_ref[...] += jnp.dot(h.astype(w2_ref.dtype), w2_ref[...],
                          preferred_element_type=jnp.float32)


def ffn_kernel_scratch(x_ref, w1_ref, b1_ref, w2_ref, b2_ref, o_ref, acc_ref):
    """Non-f32 output: accumulate in an f32 scratch, cast on the last H step."""
    h_idx = pl.program_id(1)

    @pl.when(h_idx == 0)
    def _init():
        acc_ref[...] = jnp.broadcast_to(b2_ref[...], acc_ref.shape)

    h = jnp.dot(x_ref[...], w1_ref[...], preferred_element_type=jnp.float32)
    h = jnp.maximum(h + b1_ref[...], 0.0)
    acc_ref[...] += jnp.dot(h.astype(w2_ref.dtype), w2_ref[...],
                            preferred_element_type=jnp.float32)

    @pl.when(h_idx == pl.num_programs(1) - 1)
    def _finalize():
        o_ref[...] = acc_ref[...].astype(o_ref.dtype)


def feed_forward(x, params: FFNParams, meta: FFNMeta):
    """y = relu(x @ W1 + b1) @ W2 + b2 for x of shape (..., D)."""
    orig_shape = x.shape
    out_dtype = x.dtype
    D, Dp, Hp, th = meta.D, meta.Dp, meta.Hp, meta.th
    assert orig_shape[-1] == D

    c_dtype = params.w1.dtype
    c_sz = jnp.dtype(c_dtype).itemsize

    x2 = x.reshape(-1, D)
    M = x2.shape[0]

    tm = max(16, _round_up(min(meta.tm, _round_up(M, 16)), 16))
    Mp = _round_up(M, tm)
    x_p = _pad2(x2, Mp, Dp).astype(c_dtype)

    num_m = Mp // tm
    num_h = Hp // th
    grid = (num_m, num_h)

    in_specs = [
        pl.BlockSpec((tm, Dp), lambda i, h: (i, 0)),    # x row tile
        pl.BlockSpec((Dp, th), lambda i, h: (0, h)),    # W1 column tile
        pl.BlockSpec((1, th), lambda i, h: (0, h)),     # b1 tile
        pl.BlockSpec((th, Dp), lambda i, h: (h, 0)),    # W2 row tile
        pl.BlockSpec((1, Dp), lambda i, h: (0, 0)),     # b2
    ]
    out_spec = pl.BlockSpec((tm, Dp), lambda i, h: (i, 0))

    acc_in_out = jnp.dtype(out_dtype) == jnp.dtype(jnp.float32)
    o_sz = 4 if acc_in_out else jnp.dtype(out_dtype).itemsize

    vmem_needed = (
        2 * (tm * Dp + Dp * th + th * Dp) * c_sz     # x, W1, W2 tiles (2 bufs)
        + 2 * (th + Dp) * 4                          # biases (f32)
        + 2 * tm * Dp * o_sz                         # output tile (2 bufs)
        + (0 if acc_in_out else tm * Dp * 4)         # f32 scratch accumulator
    )
    vmem_limit = int(min(max(vmem_needed * 5 // 4 + (2 << 20), 16 << 20),
                         meta.vmem_budget))

    # Weights are re-streamed from HBM once per row tile.
    cost = pl.CostEstimate(
        flops=4 * Mp * Dp * Hp,
        transcendentals=0,
        bytes_accessed=(x_p.size * c_sz
                        + num_m * (params.w1.size + params.w2.size) * c_sz
                        + num_m * (params.b1.size + params.b2.size) * 4
                        + Mp * Dp * o_sz),
    )
    cparams = pltpu.CompilerParams(
        dimension_semantics=("parallel", "arbitrary"),
        vmem_limit_bytes=vmem_limit,
    )

    if acc_in_out:
        out = pl.pallas_call(
            ffn_kernel_acc_out,
            out_shape=jax.ShapeDtypeStruct((Mp, Dp), jnp.float32),
            grid_spec=pltpu.PrefetchScalarGridSpec(
                num_scalar_prefetch=0, grid=grid,
                in_specs=in_specs, out_specs=out_spec),
            compiler_params=cparams, cost_estimate=cost,
        )(x_p, params.w1, params.b1, params.w2, params.b2)
    else:
        out = pl.pallas_call(
            ffn_kernel_scratch,
            out_shape=jax.ShapeDtypeStruct((Mp, Dp), out_dtype),
            grid_spec=pltpu.PrefetchScalarGridSpec(
                num_scalar_prefetch=0, grid=grid,
                in_specs=in_specs, out_specs=out_spec,
                scratch_shapes=[pltpu.VMEM((tm, Dp), jnp.float32)]),
            compiler_params=cparams, cost_estimate=cost,
        )(x_p, params.w1, params.b1, params.w2, params.b2)

    return out[:M, :D].astype(out_dtype).reshape(orig_shape)


def feed_forward_from_weights(x, w1, b1, w2, b2, **kwargs):
    """Convenience wrapper (re-pads/casts weights per call; prefer
    prepare_ffn_params + feed_forward in a hot path)."""
    params, meta = prepare_ffn_params(w1, b1, w2, b2, **kwargs)
    return feed_forward(x, params, meta)


if __name__ == "__main__":
    # Small token count, module-default feature dims (input_dim=512, hidden_dim=2048).
    batch, seq, input_dim, hidden_dim = 2, 8, 512, 2048

    key = jax.random.PRNGKey(0)
    kx, kw1, kb1, kw2, kb2 = jax.random.split(key, 5)

    x = jax.random.normal(kx, (batch, seq, input_dim), dtype=jnp.float32)

    # Deterministic parameter init (uniform, roughly matching nn.Linear scale).
    lim1 = 1.0 / (input_dim ** 0.5)
    lim2 = 1.0 / (hidden_dim ** 0.5)
    w1 = jax.random.uniform(kw1, (input_dim, hidden_dim), jnp.float32, -lim1, lim1)
    b1 = jax.random.uniform(kb1, (hidden_dim,), jnp.float32, -lim1, lim1)
    w2 = jax.random.uniform(kw2, (hidden_dim, input_dim), jnp.float32, -lim2, lim2)
    b2 = jax.random.uniform(kb2, (input_dim,), jnp.float32, -lim2, lim2)

    # Hoisted weight prep: pad + bf16-cast once, outside the per-call hot path.
    params, meta = prepare_ffn_params(w1, b1, w2, b2)
    params = jax.block_until_ready(params)

    ffn = jax.jit(feed_forward, static_argnums=(2,))
    out = jax.block_until_ready(ffn(x, params, meta))
    assert out.shape == x.shape and out.dtype == x.dtype

    # Reference 1: same bf16-matmul / f32-accumulate path in plain JAX (tight check).
    x2 = x.reshape(-1, input_dim)
    hb = jnp.maximum(
        jnp.dot(x2.astype(jnp.bfloat16), w1.astype(jnp.bfloat16),
                preferred_element_type=jnp.float32) + b1, 0.0)
    ref_bf16 = (jnp.dot(hb.astype(jnp.bfloat16), w2.astype(jnp.bfloat16),
                        preferred_element_type=jnp.float32) + b2).reshape(x.shape)
    assert jnp.allclose(out, ref_bf16, atol=1e-2, rtol=1e-2)

    # Reference 2: full f32 reference (module semantics, looser tol for bf16 cast).
    ref_f32 = (jnp.maximum(x2 @ w1 + b1, 0.0) @ w2 + b2).reshape(x.shape)
    assert jnp.allclose(out, ref_f32, atol=1e-1, rtol=1e-1)

    print("KERNEL_OK")
</pallas_src>

<mosaic_0001>
module attributes {stable_mosaic.version = 11 : i64} {
  func.func @ffn_kernel_acc_out(%arg0: i32, %arg1: i32, %arg2: memref<16x512xbf16, #tpu.memory_space<vmem>>, %arg3: memref<512x2048xbf16, #tpu.memory_space<vmem>>, %arg4: memref<1x2048xf32, #tpu.memory_space<vmem>>, %arg5: memref<2048x512xbf16, #tpu.memory_space<vmem>>, %arg6: memref<1x512xf32, #tpu.memory_space<vmem>>, %arg7: memref<16x512xf32, #tpu.memory_space<vmem>>) attributes {dimension_semantics = [#tpu.dimension_semantics<parallel>, #tpu.dimension_semantics<arbitrary>], iteration_bounds = array<i64: 1, 1>, scalar_prefetch = 0 : i64, scratch_operands = 0 : i64, tpu.core_type = #tpu.core_type<tc>, window_params = [{transform_indices = @transform_0, window_bounds = array<i64: 16, 512>}, {transform_indices = @transform_1, window_bounds = array<i64: 512, 2048>}, {transform_indices = @transform_2, window_bounds = array<i64: 1, 2048>}, {transform_indices = @transform_3, window_bounds = array<i64: 2048, 512>}, {pipeline_mode = #tpu.pipeline_mode<synchronous>, transform_indices = @transform_4, window_bounds = array<i64: 1, 512>}, {transform_indices = @transform_5, window_bounds = array<i64: 16, 512>}]} {
    %c0_i32 = arith.constant 0 : i32
    %0 = arith.cmpi eq, %arg1, %c0_i32 : i32
    %1 = arith.extui %0 : i1 to i32
    %c0_i32_0 = arith.constant 0 : i32
    %2 = arith.cmpi ne, %1, %c0_i32_0 : i32
    scf.if %2 {
      %c0_14 = arith.constant 0 : index
      %c0_15 = arith.constant 0 : index
      %17 = vector.load %arg6[%c0_14, %c0_15] : memref<1x512xf32, #tpu.memory_space<vmem>>, vector<1x512xf32>
      %18 = vector.shape_cast %17 : vector<1x512xf32> to vector<1x512xf32>
      %19 = vector.broadcast %18 : vector<1x512xf32> to vector<16x512xf32>
      %c0_16 = arith.constant 0 : index
      %c0_17 = arith.constant 0 : index
      %20 = vector.load %arg7[%c0_16, %c0_17] : memref<16x512xf32, #tpu.memory_space<vmem>>, vector<16x512xf32>
      tpu.vector_store %arg7[%c0_16, %c0_17], %19 {strides = array<i32>} : memref<16x512xf32, #tpu.memory_space<vmem>>, vector<16x512xf32>,
    } else {
    }
    %c0 = arith.constant 0 : index
    %c0_1 = arith.constant 0 : index
    %3 = vector.load %arg2[%c0, %c0_1] : memref<16x512xbf16, #tpu.memory_space<vmem>>, vector<16x512xbf16>
    %c0_2 = arith.constant 0 : index
    %c0_3 = arith.constant 0 : index
    %4 = vector.load %arg3[%c0_2, %c0_3] : memref<512x2048xbf16, #tpu.memory_space<vmem>>, vector<512x2048xbf16>
    %cst = arith.constant dense<0.000000e+00> : vector<16x2048xf32>
    %5 = tpu.matmul %3, %4, %cst {dimension_numbers = #tpu.dot_dimension_numbers<[1], [0], [0], [1], [0, 0, 1, 1], [], []>} : vector<16x512xbf16>, vector<512x2048xbf16>, vector<16x2048xf32> -> vector<16x2048xf32>
    %c0_4 = arith.constant 0 : index
    %c0_5 = arith.constant 0 : index
    %6 = vector.load %arg4[%c0_4, %c0_5] : memref<1x2048xf32, #tpu.memory_space<vmem>>, vector<1x2048xf32>
    %7 = vector.broadcast %6 : vector<1x2048xf32> to vector<16x2048xf32>
    %8 = arith.addf %5, %7 : vector<16x2048xf32>
    %cst_6 = arith.constant 0.000000e+00 : f32
    %9 = vector.broadcast %cst_6 : f32 to vector<16x2048xf32>
    %10 = arith.maximumf %8, %9 : vector<16x2048xf32>
    %c0_7 = arith.constant 0 : index
    %c0_8 = arith.constant 0 : index
    %11 = vector.load %arg7[%c0_7, %c0_8] : memref<16x512xf32, #tpu.memory_space<vmem>>, vector<16x512xf32>
    %12 = arith.truncf %10 : vector<16x2048xf32> to vector<16x2048xbf16>
    %c0_9 = arith.constant 0 : index
    %c0_10 = arith.constant 0 : index
    %13 = vector.load %arg5[%c0_9, %c0_10] : memref<2048x512xbf16, #tpu.memory_space<vmem>>, vector<2048x512xbf16>
    %cst_11 = arith.constant dense<0.000000e+00> : vector<16x512xf32>
    %14 = tpu.matmul %12, %13, %cst_11 {dimension_numbers = #tpu.dot_dimension_numbers<[1], [0], [0], [1], [0, 0, 1, 1], [], []>} : vector<16x2048xbf16>, vector<2048x512xbf16>, vector<16x512xf32> -> vector<16x512xf32>
    %15 = arith.addf %11, %14 : vector<16x512xf32>
    %c0_12 = arith.constant 0 : index
    %c0_13 = arith.constant 0 : index
    %16 = vector.load %arg7[%c0_12, %c0_13] : memref<16x512xf32, #tpu.memory_space<vmem>>, vector<16x512xf32>
    tpu.vector_store %arg7[%c0_12, %c0_13], %15 {strides = array<i32>} : memref<16x512xf32, #tpu.memory_space<vmem>>, vector<16x512xf32>,
    return
  }
  func.func @transform_0(%arg0: i32, %arg1: i32) -> (i32, i32) {
    %c0_i32 = arith.constant 0 : i32
    %c0_i32_0 = arith.constant 0 : i32
    return %arg0, %c0_i32 : i32, i32
  }
  func.func @transform_1(%arg0: i32, %arg1: i32) -> (i32, i32) {
    %c0_i32 = arith.constant 0 : i32
    %c0_i32_0 = arith.constant 0 : i32
    return %c0_i32, %arg1 : i32, i32
  }
  func.func @transform_2(%arg0: i32, %arg1: i32) -> (i32, i32) {
    %c0_i32 = arith.constant 0 : i32
    %c0_i32_0 = arith.constant 0 : i32
    return %c0_i32, %arg1 : i32, i32
  }
  func.func @transform_3(%arg0: i32, %arg1: i32) -> (i32, i32) {
    %c0_i32 = arith.constant 0 : i32
    %c0_i32_0 = arith.constant 0 : i32
    return %arg1, %c0_i32 : i32, i32
  }
  func.func @transform_4(%arg0: i32, %arg1: i32) -> (i32, i32) {
    %c0_i32 = arith.constant 0 : i32
    %c0_i32_0 = arith.constant 0 : i32
    %c0_i32_1 = arith.constant 0 : i32
    return %c0_i32, %c0_i32_0 : i32, i32
  }
  func.func @transform_5(%arg0: i32, %arg1: i32) -> (i32, i32) {
    %c0_i32 = arith.constant 0 : i32
    %c0_i32_0 = arith.constant 0 : i32
    return %arg0, %c0_i32 : i32, i32
  }
}

</mosaic_0001>

<bundles_post_ra>
// kernel: feed_forward.1
= control target key start
LH: loop header
LB: loop body
LE: loop exit
PB: predicated region body
PF: predicated region fallthrough
CT: control target
= control target key end

     0   :  { %10 = vsyncpa [#allocation3], 0  ;;  %s10182_s0 = inlined_call_operand.vmem [shape: bf16[16,512], index: 0, kind: input, shape index: {}]   ;;  %s10183_s1 = inlined_call_operand.hbm [shape: bf16[512,2048], index: 1, kind: input, shape index: {}]   ;;  %s10184_s2 = inlined_call_operand.hbm [shape: f32[1,2048], index: 2, kind: input, shape index: {}]   ;;  %s10185_s3 = inlined_call_operand.hbm [shape: bf16[2048,512], index: 3, kind: input, shape index: {}]   ;;  %s10186_s4 = inlined_call_operand.hbm [shape: f32[1,512], index: 4, kind: input, shape index: {}]   ;;  %s10187_s5 = inlined_call_operand.hbm [shape: f32[16,512], index: 5, kind: output, shape index: {}]  }
   0x1   :  { %11 = vsyncpa [#allocation6], 0 }
   0x2   :  { %12 = vsyncpa [#allocation9], 0 }
   0x3   :  { %13 = vsyncpa [#allocation4], 0  ;;  %s9884_s18 = smov [#allocation5]   ;;  %s9885_s20 = smov [#allocation2]  }
   0x4   :  { %s34_s19 = sshll.u32 %s9884_s18, 4  ;;  %s21_s21 = sshll.u32 %s9885_s20, 4  ;;  %s35_s19 = int_to_ptr.vmem [resolvable:$true] %s34_s19  ;;  %s9925_s21 = int_to_ptr.vmem [resolvable:$true] %s21_s21 }
   0x5   :  { %s9766_s24 = scalar_lea.hbm %s10184_s2, 256 }
   0x6   :  { %p9767_p0 = scmp.ne.s32.totalorder %s10184_s2, %s9766_s24  ;;  %p9770_p1 = scmp.lt.u32.totalorder %s9766_s24, %s10184_s2 }
   0x8   :  { %p9772_p2 = pnand %p9770_p1, %p9767_p0 }
   0xa   :  { %9775 = shalt.err (!%p9772_p2)
}
   0xb   :  { %s9776_s29 = scalar_lea.vmem %s35_s19, 256  ;;  %p9781_p4 = scmp.lt.s32.totalorder %s35_s19, %s35_s19 }
   0xc   :  { %p9777_p3 = scmp.ne.s32.totalorder %s35_s19, %s9776_s29  ;;  %p9782_p5 = scmp.lt.s32.totalorder %s9776_s29, %s9776_s29 }
   0xe   :  { %p9783_p6 = por %p9782_p5, %p9781_p4 }
  0x10   :  { %p9784_p7 = pnand %p9783_p6, %p9777_p3 }
  0x12   :  { %9787 = shalt.err (!%p9784_p7)
}
  0x13   :  { %37 = dma.hbm_to_vmem [thread:$0]  %s10184_s2, 256, %s35_s19, [#allocation6]  }
  0x14   :  { %s9788_s9 = scalar_lea.hbm %s10183_s1, 65536 }
  0x15   :  { %p9789_p8 = scmp.ne.s32.totalorder %s10183_s1, %s9788_s9  ;;  %p9792_p9 = scmp.lt.u32.totalorder %s9788_s9, %s10183_s1 }
  0x17   :  { %p9794_p10 = pnand %p9792_p9, %p9789_p8 }
  0x19   :  { %9797 = shalt.err (!%p9794_p10)
}
  0x1a   :  { %s9798_s14 = scalar_lea.vmem %s9925_s21, 65536  ;;  %p9803_p12 = scmp.lt.s32.totalorder %s9925_s21, %s9925_s21 }
  0x1b   :  { %p9799_p11 = scmp.ne.s32.totalorder %s9925_s21, %s9798_s14  ;;  %p9804_p13 = scmp.lt.s32.totalorder %s9798_s14, %s9798_s14 }
  0x1d   :  { %p9805_p0 = por %p9804_p13, %p9803_p12 }
  0x1f   :  { %p9806_p1 = pnand %p9805_p0, %p9799_p11 }
  0x21   :  { %9809 = shalt.err (!%p9806_p1)
}
  0x22   :  { %s9886_s2 = smov 1024   ;;  %s9887_s15 = smov 64  }
  0x23   :  { %27 = dma.hbm_to_vmem [thread:$0]  %s10183_s1, 65536, %s9925_s21, [#allocation3], %s9886_s2, %s9886_s2, %s9887_s15  }
  0x24   :  { %s9888_s18 = smov [#allocation7]   ;;  %s9810_s23 = scalar_lea.hbm %s10185_s3, 65536 }
  0x25   :  { %s43_s19 = sshll.u32 %s9888_s18, 4  ;;  %p9811_p2 = scmp.ne.s32.totalorder %s10185_s3, %s9810_s23  ;;  %s44_s19 = int_to_ptr.vmem [resolvable:$true] %s43_s19 }
  0x26   :  { %p9814_p3 = scmp.lt.u32.totalorder %s9810_s23, %s10185_s3 }
  0x28   :  { %p9816_p4 = pnand %p9814_p3, %p9811_p2 }
  0x2a   :  { %9819 = shalt.err (!%p9816_p4)
}
  0x2b   :  { %s9820_s28 = scalar_lea.vmem %s44_s19, 65536  ;;  %p9825_p6 = scmp.lt.s32.totalorder %s44_s19, %s44_s19 }
  0x2c   :  { %p9821_p5 = scmp.ne.s32.totalorder %s44_s19, %s9820_s28  ;;  %p9826_p7 = scmp.lt.s32.totalorder %s9820_s28, %s9820_s28 }
  0x2e   :  { %p9827_p8 = por %p9826_p7, %p9825_p6 }
  0x30   :  { %p9828_p9 = pnand %p9827_p8, %p9821_p5 }
  0x32   :  { %9831 = shalt.err (!%p9828_p9)
}
  0x33   :  { %s9889_s1 = smov 256   ;;  %s9890_s21 = smov 16  }
  0x34   :  { %49 = dma.hbm_to_vmem [thread:$0]  %s10185_s3, 65536, %s44_s19, [#allocation6], %s9889_s1, %s9889_s1, %s9890_s21  }
  0x35   :  { %s9891_s6 = smov [#allocation8]   ;;  %s9832_s10 = scalar_lea.hbm %s10186_s4, 64 }
  0x36   :  { %s56_s7 = sshll.u32 %s9891_s6, 4  ;;  %p9833_p10 = scmp.ne.s32.totalorder %s10186_s4, %s9832_s10  ;;  %s57_s7 = int_to_ptr.vmem [resolvable:$true] %s56_s7 }
  0x37   :  { %p9836_p11 = scmp.lt.u32.totalorder %s9832_s10, %s10186_s4 }
  0x39   :  { %p9838_p12 = pnand %p9836_p11, %p9833_p10 }
  0x3b   :  { %9841 = shalt.err (!%p9838_p12)
}
  0x3c   :  { %s9842_s2 = scalar_lea.vmem %s57_s7, 64  ;;  %p9847_p0 = scmp.lt.s32.totalorder %s57_s7, %s57_s7 }
  0x3d   :  { %p9843_p13 = scmp.ne.s32.totalorder %s57_s7, %s9842_s2  ;;  %p9848_p1 = scmp.lt.s32.totalorder %s9842_s2, %s9842_s2 }
  0x3f   :  { %p9849_p2 = por %p9848_p1, %p9847_p0 }
  0x41   :  { %p9850_p3 = pnand %p9849_p2, %p9843_p13 }
  0x43   :  { %9853 = shalt.err (!%p9850_p3)
}
  0x44   :  { %59 = dma.hbm_to_vmem [thread:$0]  %s10186_s4, 64, %s57_s7, [#allocation9]  }
  0x45   :  { %9876 = dma.done.wait [#allocation3], 65536  }
  0x46   :  { %9877 = vsyncadd [#allocation3], 4294901760 }
  0x47   :  { %9878 = dma.done.wait [#allocation6], 65792  }
  0x48   :  { %9879 = vsyncadd [#allocation6], 4294901504 }
  0x49   :  { %9880 = dma.done.wait [#allocation9], 64  }
  0x4a   :  { %9881 = vsyncadd [#allocation9], 4294967232  ;;  %v110_v0 = vld [vmem:[#allocation2] sm:$0xff]  ;;  %v111_v2 = vld [vmem:[#allocation2 + $0x8] sm:$0xff] }
  0x4b   :  { %v118_v1 = vld [vmem:[#allocation2 + $0x40] sm:$0xff]  ;;  %v119_v4 = vld [vmem:[#allocation2 + $0x48] sm:$0xff] }
  0x4c   :  { %v7830_v3 = vcombine.high %v110_v0, %v118_v1  ;;  %v7829_v5 = vcombine.low %v110_v0, %v118_v1  ;;  %v126_v6 = vld [vmem:[#allocation2 + $0x80] sm:$0xff]  ;;  %v7832_v8 = vcombine.high %v111_v2, %v119_v4  ;;  %v7831_v9 = vcombine.low %v111_v2, %v119_v4  ;;  %v127_v11 = vld [vmem:[#allocation2 + $0x88] sm:$0xff] }
  0x4d   :  { %v134_v7 = vld [vmem:[#allocation2 + $0xc0] sm:$0xff]  ;;  %v135_v12 = vld [vmem:[#allocation2 + $0xc8] sm:$0xff] }
  0x4e   :  { %v7846_v10 = vcombine.high %v126_v6, %v134_v7  ;;  %v142_v13 = vld [vmem:[#allocation2 + $0x100] sm:$0xff]  ;;  %3286 = vmatprep.subr.bf16.mxu0 %v7830_v3  ;;  %v7848_v14 = vcombine.high %v127_v11, %v135_v12  ;;  %v143_v16 = vld [vmem:[#allocation2 + $0x108] sm:$0xff]  ;;  %3372 = vmatprep.subr.bf16.mxu1 %v7832_v8  ;;  %v7845_v18 = vcombine.low %v126_v6, %v134_v7 }
  0x4f   :  { %v150_v15 = vld [vmem:[#allocation2 + $0x140] sm:$0xff]  ;;  %v151_v17 = vld [vmem:[#allocation2 + $0x148] sm:$0xff]  ;;  %3287 = vmatpush1.bf16.msra.mxu0 %v7829_v5  ;;  %3373 = vmatpush1.bf16.msra.mxu1 %v7831_v9  ;;  %v7847_v19 = vcombine.low %v127_v11, %v135_v12 }
  0x50   :  { %3288 = vmatprep.subr.bf16.mxu0 %v7846_v10  ;;  %v7862_v20 = vcombine.high %v142_v13, %v150_v15  ;;  %3374 = vmatprep.subr.bf16.mxu1 %v7848_v14  ;;  %v7864_v21 = vcombine.high %v143_v16, %v151_v17  ;;  %v158_v22 = vld [vmem:[#allocation2 + $0x180] sm:$0xff]  ;;  %v159_v24 = vld [vmem:[#allocation2 + $0x188] sm:$0xff]  ;;  %v7861_v26 = vcombine.low %v142_v13, %v150_v15 }
  0x51   :  { %v166_v23 = vld [vmem:[#allocation2 + $0x1c0] sm:$0xff]  ;;  %v167_v25 = vld [vmem:[#allocation2 + $0x1c8] sm:$0xff]  ;;  %v7863_v27 = vcombine.low %v143_v16, %v151_v17 }
  0x52   :  { %v7878_v28 = vcombine.high %v158_v22, %v166_v23  ;;  %v7880_v29 = vcombine.high %v159_v24, %v167_v25  ;;  %v174_v30 = vld [vmem:[#allocation2 + $0x200] sm:$0xff]  ;;  %v175_v32 = vld [vmem:[#allocation2 + $0x208] sm:$0xff]  ;;  %v7877_v34 = vcombine.low %v158_v22, %v166_v23  ;;  %v7879_v35 = vcombine.low %v159_v24, %v167_v25 }
  0x53   :  { %3289 = vmatpush1.bf16.msra.mxu0 %v7845_v18  ;;  %3375 = vmatpush1.bf16.msra.mxu1 %v7847_v19  ;;  %v182_v31 = vld [vmem:[#allocation2 + $0x240] sm:$0xff]  ;;  %v183_v33 = vld [vmem:[#allocation2 + $0x248] sm:$0xff] }
  0x54   :  { %3290 = vmatprep.subr.bf16.mxu0 %v7862_v20  ;;  %3376 = vmatprep.subr.bf16.mxu1 %v7864_v21  ;;  %v7894_v36 = vcombine.high %v174_v30, %v182_v31  ;;  %v7896_v37 = vcombine.high %v175_v32, %v183_v33  ;;  %v190_v38 = vld [vmem:[#allocation2 + $0x280] sm:$0xff]  ;;  %v191_v40 = vld [vmem:[#allocation2 + $0x288] sm:$0xff]  ;;  %v7893_v42 = vcombine.low %v174_v30, %v182_v31 }
  0x55   :  { %v198_v39 = vld [vmem:[#allocation2 + $0x2c0] sm:$0xff]  ;;  %v199_v41 = vld [vmem:[#allocation2 + $0x2c8] sm:$0xff]  ;;  %v7895_v43 = vcombine.low %v175_v32, %v183_v33 }
  0x56   :  { %v7910_v44 = vcombine.high %v190_v38, %v198_v39  ;;  %v7912_v45 = vcombine.high %v191_v40, %v199_v41  ;;  %v206_v46 = vld [vmem:[#allocation2 + $0x300] sm:$0xff]  ;;  %v207_v48 = vld [vmem:[#allocation2 + $0x308] sm:$0xff]  ;;  %v7909_v50 = vcombine.low %v190_v38, %v198_v39  ;;  %v7911_v51 = vcombine.low %v191_v40, %v199_v41 }
  0x57   :  { %3291 = vmatpush1.bf16.msra.mxu0 %v7861_v26  ;;  %3377 = vmatpush1.bf16.msra.mxu1 %v7863_v27  ;;  %v214_v47 = vld [vmem:[#allocation2 + $0x340] sm:$0xff]  ;;  %v215_v49 = vld [vmem:[#allocation2 + $0x348] sm:$0xff] }
  0x58   :  { %3292 = vmatprep.subr.bf16.mxu0 %v7878_v28  ;;  %3378 = vmatprep.subr.bf16.mxu1 %v7880_v29  ;;  %v7926_v52 = vcombine.high %v206_v46, %v214_v47  ;;  %v7928_v53 = vcombine.high %v207_v48, %v215_v49  ;;  %v222_v54 = vld [vmem:[#allocation2 + $0x380] sm:$0xff]  ;;  %v223_v57 = vld [vmem:[#allocation2 + $0x388] sm:$0xff]  ;;  %v7925_v59 = vcombine.low %v206_v46, %v214_v47 }
  0x59   :  { %v230_v55 = vld [vmem:[#allocation2 + $0x3c0] sm:$0xff]  ;;  %v231_v58 = vld [vmem:[#allocation2 + $0x3c8] sm:$0xff]  ;;  %v7927_v60 = vcombine.low %v207_v48, %v215_v49 }
  0x5a   :  { %v9983_v56 = vld [vmem:[%s10182_s0 + $0x4] ss:$16 sps:$4 sm:$0xff]   ;;  %v7942_v61 = vcombine.high %v222_v54, %v230_v55  ;;  %v7944_v62 = vcombine.high %v223_v57, %v231_v58  ;;  %v239_v1 = vld [vmem:[#allocation2 + $0x408] sm:$0xff]  ;;  %v7941_v3 = vcombine.low %v222_v54, %v230_v55  ;;  %v7943_v4 = vcombine.low %v223_v57, %v231_v58 }
  0x5b   :  { %3293 = vmatpush1.bf16.msra.mxu0 %v7877_v34  ;;  %3379 = vmatpush1.bf16.msra.mxu1 %v7879_v35  ;;  %v238_v63 = vld [vmem:[#allocation2 + $0x400] sm:$0xff]  ;;  %v247_v2 = vld [vmem:[#allocation2 + $0x448] sm:$0xff] }
  0x5c   :  { %3294 = vmatprep.subr.bf16.mxu0 %v7894_v36  ;;  %3380 = vmatprep.subr.bf16.mxu1 %v7896_v37  ;;  %v246_v0 = vld [vmem:[#allocation2 + $0x440] sm:$0xff]  ;;  %v7960_v6 = vcombine.high %v239_v1, %v247_v2  ;;  %v255_v9 = vld [vmem:[#allocation2 + $0x488] sm:$0xff]  ;;  %v7959_v12 = vcombine.low %v239_v1, %v247_v2 }
  0x5d   :  { %3318 = vmatprep.mubr.bf16.mxu0 %v9983_v56  ;;  %3404 = vmatprep.mubr.bf16.mxu1 %v9983_v56  ;;  %v7958_v5 = vcombine.high %v238_v63, %v246_v0  ;;  %v254_v7 = vld [vmem:[#allocation2 + $0x480] sm:$0xff]  ;;  %v263_v10 = vld [vmem:[#allocation2 + $0x4c8] sm:$0xff]  ;;  %v7957_v11 = vcombine.low %v238_v63, %v246_v0 }
  0x5e   :  { %v262_v8 = vld [vmem:[#allocation2 + $0x4c0] sm:$0xff]  ;;  %v7976_v14 = vcombine.high %v255_v9, %v263_v10  ;;  %v271_v17 = vld [vmem:[#allocation2 + $0x508] sm:$0xff]  ;;  %v7975_v20 = vcombine.low %v255_v9, %v263_v10 }
  0x5f   :  { %3295 = vmatpush1.bf16.msra.mxu0 %v7893_v42  ;;  %3381 = vmatpush1.bf16.msra.mxu1 %v7895_v43  ;;  %v7974_v13 = vcombine.high %v254_v7, %v262_v8  ;;  %v270_v15 = vld [vmem:[#allocation2 + $0x500] sm:$0xff]  ;;  %v279_v18 = vld [vmem:[#allocation2 + $0x548] sm:$0xff]  ;;  %v7973_v19 = vcombine.low %v254_v7, %v262_v8 }
  0x60   :  { %3296 = vmatprep.subr.bf16.mxu0 %v7910_v44  ;;  %3382 = vmatprep.subr.bf16.mxu1 %v7912_v45  ;;  %v278_v16 = vld [vmem:[#allocation2 + $0x540] sm:$0xff]  ;;  %v7992_v22 = vcombine.high %v271_v17, %v279_v18  ;;  %v287_v25 = vld [vmem:[#allocation2 + $0x588] sm:$0xff]  ;;  %v7991_v28 = vcombine.low %v271_v17, %v279_v18 }
  0x61   :  { %v7990_v21 = vcombine.high %v270_v15, %v278_v16  ;;  %v286_v23 = vld [vmem:[#allocation2 + $0x580] sm:$0xff]  ;;  %v295_v26 = vld [vmem:[#allocation2 + $0x5c8] sm:$0xff]  ;;  %v7989_v27 = vcombine.low %v270_v15, %v278_v16 }
  0x62   :  { %v294_v24 = vld [vmem:[#allocation2 + $0x5c0] sm:$0xff]  ;;  %v8008_v30 = vcombine.high %v287_v25, %v295_v26  ;;  %v303_v33 = vld [vmem:[#allocation2 + $0x608] sm:$0xff]  ;;  %v8007_v36 = vcombine.low %v287_v25, %v295_v26 }
  0x63   :  { %3297 = vmatpush1.bf16.msra.mxu0 %v7909_v50  ;;  %3383 = vmatpush1.bf16.msra.mxu1 %v7911_v51  ;;  %v8006_v29 = vcombine.high %v286_v23, %v294_v24  ;;  %v302_v31 = vld [vmem:[#allocation2 + $0x600] sm:$0xff]  ;;  %v311_v34 = vld [vmem:[#allocation2 + $0x648] sm:$0xff]  ;;  %v8005_v35 = vcombine.low %v286_v23, %v294_v24 }
  0x64   :  { %3298 = vmatprep.subr.bf16.mxu0 %v7926_v52  ;;  %3384 = vmatprep.subr.bf16.mxu1 %v7928_v53  ;;  %v310_v32 = vld [vmem:[#allocation2 + $0x640] sm:$0xff]  ;;  %v8024_v38 = vcombine.high %v303_v33, %v311_v34  ;;  %v319_v41 = vld [vmem:[#allocation2 + $0x688] sm:$0xff]  ;;  %v8023_v44 = vcombine.low %v303_v33, %v311_v34 }
  0x65   :  { %v8022_v37 = vcombine.high %v302_v31, %v310_v32  ;;  %v318_v39 = vld [vmem:[#allocation2 + $0x680] sm:$0xff]  ;;  %v327_v42 = vld [vmem:[#allocation2 + $0x6c8] sm:$0xff]  ;;  %v8021_v43 = vcombine.low %v302_v31, %v310_v32 }
  0x66   :  { %v326_v40 = vld [vmem:[#allocation2 + $0x6c0] sm:$0xff]  ;;  %v8040_v46 = vcombine.high %v319_v41, %v327_v42  ;;  %v335_v49 = vld [vmem:[#allocation2 + $0x708] sm:$0xff]  ;;  %v8039_v52 = vcombine.low %v319_v41, %v327_v42 }
  0x67   :  { %3299 = vmatpush1.bf16.msra.mxu0 %v7925_v59  ;;  %3385 = vmatpush1.bf16.msra.mxu1 %v7927_v60  ;;  %v8038_v45 = vcombine.high %v318_v39, %v326_v40  ;;  %v334_v47 = vld [vmem:[#allocation2 + $0x700] sm:$0xff]  ;;  %v343_v50 = vld [vmem:[#allocation2 + $0x748] sm:$0xff]  ;;  %v8037_v51 = vcombine.low %v318_v39, %v326_v40 }
  0x68   :  { %3300 = vmatprep.subr.bf16.mxu0 %v7942_v61  ;;  %3386 = vmatprep.subr.bf16.mxu1 %v7944_v62  ;;  %v342_v48 = vld [vmem:[#allocation2 + $0x740] sm:$0xff]  ;;  %v8056_v54 = vcombine.high %v335_v49, %v343_v50  ;;  %v351_v58 = vld [vmem:[#allocation2 + $0x788] sm:$0xff]  ;;  %v8055_v61 = vcombine.low %v335_v49, %v343_v50 }
  0x69   :  { %v8054_v53 = vcombine.high %v334_v47, %v342_v48  ;;  %v350_v55 = vld [vmem:[#allocation2 + $0x780] sm:$0xff]  ;;  %v359_v59 = vld [vmem:[#allocation2 + $0x7c8] sm:$0xff]  ;;  %v8053_v60 = vcombine.low %v334_v47, %v342_v48 }
  0x6a   :  { %v358_v57 = vld [vmem:[#allocation2 + $0x7c0] sm:$0xff]  ;;  %v8072_v63 = vcombine.high %v351_v58, %v359_v59  ;;  %v367_v2 = vld [vmem:[#allocation2 + $0x808] sm:$0xff] }
  0x6b   :  { %3301 = vmatpush1.bf16.msra.mxu0 %v7941_v3  ;;  %3387 = vmatpush1.bf16.msra.mxu1 %v7943_v4  ;;  %v8070_v62 = vcombine.high %v350_v55, %v358_v57  ;;  %v366_v0 = vld [vmem:[#allocation2 + $0x800] sm:$0xff]  ;;  %v375_v3 = vld [vmem:[#allocation2 + $0x848] sm:$0xff]  ;;  %v8069_v4 = vcombine.low %v350_v55, %v358_v57 }
  0x6c   :  { %3302 = vmatprep.subr.bf16.mxu0 %v7958_v5  ;;  %3388 = vmatprep.subr.bf16.mxu1 %v7960_v6  ;;  %v374_v1 = vld [vmem:[#allocation2 + $0x840] sm:$0xff]  ;;  %v8071_v5 = vcombine.low %v351_v58, %v359_v59  ;;  %v8088_v7 = vcombine.high %v367_v2, %v375_v3 }
  0x6d   :  { %v8086_v6 = vcombine.high %v366_v0, %v374_v1  ;;  %v382_v8 = vld [vmem:[#allocation2 + $0x880] sm:$0xff] }
  0x6e   :  { %v390_v9 = vld [vmem:[#allocation2 + $0x8c0] sm:$0xff] }
  0x6f   :  { %3303 = vmatpush1.bf16.msra.mxu0 %v7957_v11  ;;  %3389 = vmatpush1.bf16.msra.mxu1 %v7959_v12  ;;  %v8986_v10 = vld [vmem:[%s10182_s0] ss:$16 sps:$4 sm:$0xff]   ;;  %v383_v11 = vld [vmem:[#allocation2 + $0x888] sm:$0xff]  ;;  %v8102_v15 = vcombine.high %v382_v8, %v390_v9 }
  0x70   :  { %3304 = vmatprep.subr.bf16.mxu0 %v7974_v13  ;;  %3390 = vmatprep.subr.bf16.mxu1 %v7976_v14  ;;  %v391_v12 = vld [vmem:[#allocation2 + $0x8c8] sm:$0xff]  ;;  %v8085_v13 = vcombine.low %v366_v0, %v374_v1  ;;  %v8087_v14 = vcombine.low %v367_v2, %v375_v3  ;;  %v398_v17 = vld [vmem:[#allocation2 + $0x900] sm:$0xff] }
  0x71   :  { %v8104_v16 = vcombine.high %v383_v11, %v391_v12  ;;  %v406_v18 = vld [vmem:[#allocation2 + $0x940] sm:$0xff]  ;;  %v8103_v23 = vcombine.low %v383_v11, %v391_v12  ;;  %v511_v12 = vld [vmem:[#allocation2 + $0xc88] sm:$0xff] }
  0x72   :  { %v8118_v24 = vcombine.high %v398_v17, %v406_v18  ;;  %v414_v25 = vld [vmem:[#allocation2 + $0x980] sm:$0xff] }
  0x73   :  { %3305 = vmatpush1.bf16.msra.mxu0 %v7973_v19  ;;  %3391 = vmatpush1.bf16.msra.mxu1 %v7975_v20  ;;  %v8987_v19 = vld [vmem:[%s10182_s0 + $0xc] ss:$16 sps:$4 sm:$0xff]   ;;  %v422_v26 = vld [vmem:[#allocation2 + $0x9c0] sm:$0xff] }
  0x74   :  { %3306 = vmatprep.subr.bf16.mxu0 %v7990_v21  ;;  %3392 = vmatprep.subr.bf16.mxu1 %v7992_v22  ;;  %v399_v20 = vld [vmem:[#allocation2 + $0x908] sm:$0xff]  ;;  %v8101_v22 = vcombine.low %v382_v8, %v390_v9  ;;  %v8134_v32 = vcombine.high %v414_v25, %v422_v26  ;;  %v430_v33 = vld [vmem:[#allocation2 + $0xa00] sm:$0xff] }
  0x75   :  { %v407_v21 = vld [vmem:[#allocation2 + $0x948] sm:$0xff]  ;;  %v438_v34 = vld [vmem:[#allocation2 + $0xa40] sm:$0xff] }
  0x76   :  { %v8119_v31 = vcombine.low %v399_v20, %v407_v21  ;;  %v8150_v40 = vcombine.high %v430_v33, %v438_v34  ;;  %v446_v41 = vld [vmem:[#allocation2 + $0xa80] sm:$0xff] }
  0x77   :  { %3307 = vmatpush1.bf16.msra.mxu0 %v7989_v27  ;;  %3393 = vmatpush1.bf16.msra.mxu1 %v7991_v28  ;;  %v415_v27 = vld [vmem:[#allocation2 + $0x988] sm:$0xff]  ;;  %v8120_v28 = vcombine.high %v399_v20, %v407_v21  ;;  %v454_v42 = vld [vmem:[#allocation2 + $0xac0] sm:$0xff] }
  0x78   :  { %3308 = vmatprep.subr.bf16.mxu0 %v8006_v29  ;;  %3394 = vmatprep.subr.bf16.mxu1 %v8008_v30  ;;  %v423_v29 = vld [vmem:[#allocation2 + $0x9c8] sm:$0xff]  ;;  %v8117_v30 = vcombine.low %v398_v17, %v406_v18  ;;  %v8166_v48 = vcombine.high %v446_v41, %v454_v42  ;;  %v462_v49 = vld [vmem:[#allocation2 + $0xb00] sm:$0xff] }
  0x79   :  { %v8135_v39 = vcombine.low %v415_v27, %v423_v29  ;;  %v470_v50 = vld [vmem:[#allocation2 + $0xb40] sm:$0xff]  ;;  %v527_v20 = vld [vmem:[#allocation2 + $0xd08] sm:$0xff] }
  0x7a   :  { %v8182_v57 = vcombine.high %v462_v49, %v470_v50  ;;  %v478_v58 = vld [vmem:[#allocation2 + $0xb80] sm:$0xff] }
  0x7b   :  { %3309 = vmatpush1.bf16.msra.mxu0 %v8005_v35  ;;  %3395 = vmatpush1.bf16.msra.mxu1 %v8007_v36  ;;  %v431_v35 = vld [vmem:[#allocation2 + $0xa08] sm:$0xff]  ;;  %v8136_v36 = vcombine.high %v415_v27, %v423_v29  ;;  %v486_v59 = vld [vmem:[#allocation2 + $0xbc0] sm:$0xff] }
  0x7c   :  { %3310 = vmatprep.subr.bf16.mxu0 %v8022_v37  ;;  %3396 = vmatprep.subr.bf16.mxu1 %v8024_v38  ;;  %v439_v37 = vld [vmem:[#allocation2 + $0xa48] sm:$0xff]  ;;  %v8133_v38 = vcombine.low %v414_v25, %v422_v26  ;;  %v8198_v1 = vcombine.high %v478_v58, %v486_v59  ;;  %v494_v2 = vld [vmem:[#allocation2 + $0xc00] sm:$0xff] }
  0x7d   :  { %v8151_v47 = vcombine.low %v431_v35, %v439_v37  ;;  %v502_v3 = vld [vmem:[#allocation2 + $0xc40] sm:$0xff] }
  0x7e   :  { %v8214_v9 = vcombine.high %v494_v2, %v502_v3  ;;  %v518_v11 = vld [vmem:[#allocation2 + $0xcc0] sm:$0xff] }
  0x7f   :  { %3311 = vmatpush1.bf16.msra.mxu0 %v8021_v43  ;;  %3397 = vmatpush1.bf16.msra.mxu1 %v8023_v44  ;;  %v447_v43 = vld [vmem:[#allocation2 + $0xa88] sm:$0xff]  ;;  %v8152_v44 = vcombine.high %v431_v35, %v439_v37  ;;  %v526_v18 = vld [vmem:[#allocation2 + $0xd00] sm:$0xff] }
  0x80   :  { %3312 = vmatprep.subr.bf16.mxu0 %v8038_v45  ;;  %3398 = vmatprep.subr.bf16.mxu1 %v8040_v46  ;;  %v455_v45 = vld [vmem:[#allocation2 + $0xac8] sm:$0xff]  ;;  %v8149_v46 = vcombine.low %v430_v33, %v438_v34  ;;  %v542_v26 = vld [vmem:[#allocation2 + $0xd80] sm:$0xff] }
  0x81   :  { %v8167_v55 = vcombine.low %v447_v43, %v455_v45  ;;  %v550_v27 = vld [vmem:[#allocation2 + $0xdc0] sm:$0xff] }
  0x82   :  { %v8262_v33 = vcombine.high %v542_v26, %v550_v27  ;;  %v558_v34 = vld [vmem:[#allocation2 + $0xe00] sm:$0xff] }
  0x83   :  { %3313 = vmatpush1.bf16.msra.mxu0 %v8037_v51  ;;  %3399 = vmatpush1.bf16.msra.mxu1 %v8039_v52  ;;  %v463_v51 = vld [vmem:[#allocation2 + $0xb08] sm:$0xff]  ;;  %v8168_v52 = vcombine.high %v447_v43, %v455_v45  ;;  %v566_v35 = vld [vmem:[#allocation2 + $0xe40] sm:$0xff] }
  0x84   :  { %3314 = vmatprep.subr.bf16.mxu0 %v8054_v53  ;;  %3400 = vmatprep.subr.bf16.mxu1 %v8056_v54  ;;  %v471_v53 = vld [vmem:[#allocation2 + $0xb48] sm:$0xff]  ;;  %v8165_v54 = vcombine.low %v446_v41, %v454_v42  ;;  %v8278_v41 = vcombine.high %v558_v34, %v566_v35  ;;  %v574_v42 = vld [vmem:[#allocation2 + $0xe80] sm:$0xff] }
  0x85   :  { %v8183_v0 = vcombine.low %v463_v51, %v471_v53  ;;  %v582_v43 = vld [vmem:[#allocation2 + $0xec0] sm:$0xff] }
  0x87   :  { %3315 = vmatpush1.bf16.msra.mxu0 %v8053_v60  ;;  %3401 = vmatpush1.bf16.msra.mxu1 %v8055_v61  ;;  %v479_v60 = vld [vmem:[#allocation2 + $0xb88] sm:$0xff]  ;;  %v8184_v61 = vcombine.high %v463_v51, %v471_v53  ;;  %v598_v51 = vld [vmem:[#allocation2 + $0xf40] sm:$0xff] }
  0x88   :  { %3316 = vmatprep.subr.bf16.mxu0 %v8070_v62  ;;  %3402 = vmatprep.subr.bf16.mxu1 %v8072_v63  ;;  %v487_v62 = vld [vmem:[#allocation2 + $0xbc8] sm:$0xff]  ;;  %v8181_v63 = vcombine.low %v462_v49, %v470_v50  ;;  %v8294_v49 = vcombine.high %v574_v42, %v582_v43  ;;  %v590_v50 = vld [vmem:[#allocation2 + $0xf00] sm:$0xff] }
  0x89   :  { %v8199_v8 = vcombine.low %v479_v60, %v487_v62 }
  0x8b   :  { %3317 = vmatpush1.bf16.msra.mxu0 %v8069_v4  ;;  %3403 = vmatpush1.bf16.msra.mxu1 %v8071_v5  ;;  %v495_v4 = vld [vmem:[#allocation2 + $0xc08] sm:$0xff]  ;;  %v8200_v5 = vcombine.high %v479_v60, %v487_v62  ;;  %v614_v60 = vld [vmem:[#allocation2 + $0xfc0] sm:$0xff] }
  0x8c   :  { %3329 = vmatprep.subr.bf16.mxu0 %v8086_v6  ;;  %3415 = vmatprep.subr.bf16.mxu1 %v8088_v7  ;;  %v503_v6 = vld [vmem:[#allocation2 + $0xc48] sm:$0xff]  ;;  %v8197_v7 = vcombine.low %v478_v58, %v486_v59  ;;  %v8310_v58 = vcombine.high %v590_v50, %v598_v51  ;;  %v606_v59 = vld [vmem:[#allocation2 + $0xf80] sm:$0xff] }
  0x8e   :  { %3319 = vmatmul.mubr.bf16.vlgmr.msra.gmra.mrb[0].mxu0 %v8986_v10  ;;  %3405 = vmatmul.mubr.bf16.vlgmr.msra.gmra.mrb[0].mxu1 %v8986_v10  ;;  %v510_v10 = vld [vmem:[#allocation2 + $0xc80] sm:$0xff] }
  0x8f   :  { %3330 = vmatpush1.bf16.msra.mxu0 %v8085_v13  ;;  %3416 = vmatpush1.bf16.msra.mxu1 %v8087_v14  ;;  %v8216_v13 = vcombine.high %v495_v4, %v503_v6  ;;  %v519_v14 = vld [vmem:[#allocation2 + $0xcc8] sm:$0xff]  ;;  %v8230_v17 = vcombine.high %v510_v10, %v518_v11 }
  0x90   :  { %3331 = vmatprep.subr.bf16.mxu0 %v8102_v15  ;;  %3417 = vmatprep.subr.bf16.mxu1 %v8104_v16  ;;  %v8213_v15 = vcombine.low %v494_v2, %v502_v3  ;;  %v8215_v16 = vcombine.low %v495_v4, %v503_v6  ;;  %v8232_v21 = vcombine.high %v511_v12, %v519_v14  ;;  %v112_v3 = vld [vmem:[#allocation2 + $0x10] sm:$0xff] }
  0x91   :  { %3361 = vmatprep.mubr.bf16.mxu0 %v8987_v19  ;;  %3447 = vmatprep.mubr.bf16.mxu1 %v8987_v19  ;;  %v534_v19 = vld [vmem:[#allocation2 + $0xd40] sm:$0xff]  ;;  %v8326_v2 = vcombine.high %v606_v59, %v614_v60  ;;  %v120_v4 = vld [vmem:[#allocation2 + $0x50] sm:$0xff] }
  0x92   :  { %v8246_v25 = vcombine.high %v526_v18, %v534_v19 }
  0x93   :  { %3332 = vmatpush1.bf16.msra.mxu0 %v8101_v22  ;;  %3418 = vmatpush1.bf16.msra.mxu1 %v8103_v23  ;;  %v535_v22 = vld [vmem:[#allocation2 + $0xd48] sm:$0xff]  ;;  %v8229_v23 = vcombine.low %v510_v10, %v518_v11  ;;  %v7834_v11 = vcombine.high %v112_v3, %v120_v4 }
  0x94   :  { %3333 = vmatprep.subr.bf16.mxu0 %v8118_v24  ;;  %3419 = vmatprep.subr.bf16.mxu1 %v8120_v28  ;;  %v8231_v24 = vcombine.low %v511_v12, %v519_v14  ;;  %v543_v28 = vld [vmem:[#allocation2 + $0xd88] sm:$0xff]  ;;  %v8248_v29 = vcombine.high %v527_v20, %v535_v22  ;;  %v128_v12 = vld [vmem:[#allocation2 + $0x90] sm:$0xff]  ;;  %v129_v14 = vld [vmem:[#allocation2 + $0x98] sm:$0xff] }
  0x95   :  { %v8989_v10 = vld [vmem:[%s10182_s0 + $0x8] ss:$16 sps:$4 sm:$0xff]  }
  0x97   :  { %3334 = vmatpush1.bf16.msra.mxu0 %v8117_v30  ;;  %3420 = vmatpush1.bf16.msra.mxu1 %v8119_v31  ;;  %v551_v30 = vld [vmem:[#allocation2 + $0xdc8] sm:$0xff]  ;;  %v8245_v31 = vcombine.low %v526_v18, %v534_v19 }
  0x98   :  { %3335 = vmatprep.subr.bf16.mxu0 %v8134_v32  ;;  %3421 = vmatprep.subr.bf16.mxu1 %v8136_v36  ;;  %v8247_v32 = vcombine.low %v527_v20, %v535_v22  ;;  %v559_v36 = vld [vmem:[#allocation2 + $0xe08] sm:$0xff]  ;;  %v8264_v37 = vcombine.high %v543_v28, %v551_v30  ;;  %v144_v20 = vld [vmem:[#allocation2 + $0x110] sm:$0xff]  ;;  %v145_v22 = vld [vmem:[#allocation2 + $0x118] sm:$0xff] }
  0x9b   :  { %3336 = vmatpush1.bf16.msra.mxu0 %v8133_v38  ;;  %3422 = vmatpush1.bf16.msra.mxu1 %v8135_v39  ;;  %v567_v38 = vld [vmem:[#allocation2 + $0xe48] sm:$0xff]  ;;  %v8261_v39 = vcombine.low %v542_v26, %v550_v27 }
  0x9c   :  { %3337 = vmatprep.subr.bf16.mxu0 %v8150_v40  ;;  %3423 = vmatprep.subr.bf16.mxu1 %v8152_v44  ;;  %v8263_v40 = vcombine.low %v543_v28, %v551_v30  ;;  %v575_v44 = vld [vmem:[#allocation2 + $0xe88] sm:$0xff]  ;;  %v8280_v45 = vcombine.high %v559_v36, %v567_v38  ;;  %v160_v28 = vld [vmem:[#allocation2 + $0x190] sm:$0xff]  ;;  %v161_v30 = vld [vmem:[#allocation2 + $0x198] sm:$0xff] }
  0x9f   :  { %3338 = vmatpush1.bf16.msra.mxu0 %v8149_v46  ;;  %3424 = vmatpush1.bf16.msra.mxu1 %v8151_v47  ;;  %v583_v46 = vld [vmem:[#allocation2 + $0xec8] sm:$0xff]  ;;  %v8277_v47 = vcombine.low %v558_v34, %v566_v35 }
  0xa0   :  { %3339 = vmatprep.subr.bf16.mxu0 %v8166_v48  ;;  %3425 = vmatprep.subr.bf16.mxu1 %v8168_v52  ;;  %v8279_v48 = vcombine.low %v559_v36, %v567_v38  ;;  %v591_v52 = vld [vmem:[#allocation2 + $0xf08] sm:$0xff]  ;;  %v8296_v53 = vcombine.high %v575_v44, %v583_v46  ;;  %v176_v36 = vld [vmem:[#allocation2 + $0x210] sm:$0xff]  ;;  %v177_v38 = vld [vmem:[#allocation2 + $0x218] sm:$0xff] }
  0xa3   :  { %3340 = vmatpush1.bf16.msra.mxu0 %v8165_v54  ;;  %3426 = vmatpush1.bf16.msra.mxu1 %v8167_v55  ;;  %v599_v54 = vld [vmem:[#allocation2 + $0xf48] sm:$0xff]  ;;  %v8293_v55 = vcombine.low %v574_v42, %v582_v43 }
  0xa4   :  { %3341 = vmatprep.subr.bf16.mxu0 %v8182_v57  ;;  %3427 = vmatprep.subr.bf16.mxu1 %v8184_v61  ;;  %v8295_v57 = vcombine.low %v575_v44, %v583_v46  ;;  %v607_v61 = vld [vmem:[#allocation2 + $0xf88] sm:$0xff]  ;;  %v8312_v62 = vcombine.high %v591_v52, %v599_v54  ;;  %v192_v44 = vld [vmem:[#allocation2 + $0x290] sm:$0xff] }
  0xa7   :  { %3342 = vmatpush1.bf16.msra.mxu0 %v8181_v63  ;;  %3428 = vmatpush1.bf16.msra.mxu1 %v8183_v0  ;;  %v615_v63 = vld [vmem:[#allocation2 + $0xfc8] sm:$0xff]  ;;  %v8309_v0 = vcombine.low %v590_v50, %v598_v51  ;;  %v208_v51 = vld [vmem:[#allocation2 + $0x310] sm:$0xff] }
  0xa8   :  { %3343 = vmatprep.subr.bf16.mxu0 %v8198_v1  ;;  %3429 = vmatprep.subr.bf16.mxu1 %v8200_v5  ;;  %v8311_v1 = vcombine.low %v591_v52, %v599_v54  ;;  %v113_v5 = vld [vmem:[#allocation2 + $0x18] sm:$0xff]  ;;  %v8328_v6 = vcombine.high %v607_v61, %v615_v63  ;;  %v216_v52 = vld [vmem:[#allocation2 + $0x350] sm:$0xff] }
  0xab   :  { %3344 = vmatpush1.bf16.msra.mxu0 %v8197_v7  ;;  %3430 = vmatpush1.bf16.msra.mxu1 %v8199_v8  ;;  %v121_v7 = vld [vmem:[#allocation2 + $0x58] sm:$0xff]  ;;  %v8325_v8 = vcombine.low %v606_v59, %v614_v60  ;;  %v7930_v59 = vcombine.high %v208_v51, %v216_v52  ;;  %v224_v60 = vld [vmem:[#allocation2 + $0x390] sm:$0xff] }
  0xac   :  { %3345 = vmatprep.subr.bf16.mxu0 %v8214_v9  ;;  %3431 = vmatprep.subr.bf16.mxu1 %v8216_v13  ;;  %v8327_v9 = vcombine.low %v607_v61, %v615_v63  ;;  %v136_v13 = vld [vmem:[#allocation2 + $0xd0] sm:$0xff]  ;;  %v7835_v18 = vcombine.low %v113_v5, %v121_v7 }
  0xad   :  { %v7850_v19 = vcombine.high %v128_v12, %v136_v13  ;;  %v232_v61 = vld [vmem:[#allocation2 + $0x3d0] sm:$0xff] }
  0xaf   :  { %3346 = vmatpush1.bf16.msra.mxu0 %v8213_v15  ;;  %3432 = vmatpush1.bf16.msra.mxu1 %v8215_v16  ;;  %v7836_v15 = vcombine.high %v113_v5, %v121_v7  ;;  %v137_v16 = vld [vmem:[#allocation2 + $0xd8] sm:$0xff]  ;;  %v248_v5 = vld [vmem:[#allocation2 + $0x450] sm:$0xff] }
  0xb0   :  { %3347 = vmatprep.subr.bf16.mxu0 %v8230_v17  ;;  %3433 = vmatprep.subr.bf16.mxu1 %v8232_v21  ;;  %v7833_v17 = vcombine.low %v112_v3, %v120_v4  ;;  %v152_v21 = vld [vmem:[#allocation2 + $0x150] sm:$0xff]  ;;  %v7851_v26 = vcombine.low %v129_v14, %v137_v16  ;;  %v7946_v3 = vcombine.high %v224_v60, %v232_v61 }
  0xb1   :  { %v7866_v27 = vcombine.high %v144_v20, %v152_v21  ;;  %v240_v4 = vld [vmem:[#allocation2 + $0x410] sm:$0xff] }
  0xb3   :  { %3348 = vmatpush1.bf16.msra.mxu0 %v8229_v23  ;;  %3434 = vmatpush1.bf16.msra.mxu1 %v8231_v24  ;;  %v7852_v23 = vcombine.high %v129_v14, %v137_v16  ;;  %v153_v24 = vld [vmem:[#allocation2 + $0x158] sm:$0xff] }
  0xb4   :  { %3349 = vmatprep.subr.bf16.mxu0 %v8246_v25  ;;  %3435 = vmatprep.subr.bf16.mxu1 %v8248_v29  ;;  %v7849_v25 = vcombine.low %v128_v12, %v136_v13  ;;  %v168_v29 = vld [vmem:[#allocation2 + $0x1d0] sm:$0xff]  ;;  %v7867_v34 = vcombine.low %v145_v22, %v153_v24  ;;  %v257_v14 = vld [vmem:[#allocation2 + $0x498] sm:$0xff] }
  0xb5   :  { %v7882_v35 = vcombine.high %v160_v28, %v168_v29  ;;  %v256_v12 = vld [vmem:[#allocation2 + $0x490] sm:$0xff]  ;;  %v265_v16 = vld [vmem:[#allocation2 + $0x4d8] sm:$0xff] }
  0xb6   :  { %v264_v13 = vld [vmem:[#allocation2 + $0x4d0] sm:$0xff] }
  0xb7   :  { %3350 = vmatpush1.bf16.msra.mxu0 %v8245_v31  ;;  %3436 = vmatpush1.bf16.msra.mxu1 %v8247_v32  ;;  %v7868_v31 = vcombine.high %v145_v22, %v153_v24  ;;  %v169_v32 = vld [vmem:[#allocation2 + $0x1d8] sm:$0xff] }
  0xb8   :  { %3351 = vmatprep.subr.bf16.mxu0 %v8262_v33  ;;  %3437 = vmatprep.subr.bf16.mxu1 %v8264_v37  ;;  %v7865_v33 = vcombine.low %v144_v20, %v152_v21  ;;  %v184_v37 = vld [vmem:[#allocation2 + $0x250] sm:$0xff]  ;;  %v7883_v42 = vcombine.low %v161_v30, %v169_v32  ;;  %v273_v22 = vld [vmem:[#allocation2 + $0x518] sm:$0xff] }
  0xb9   :  { %v7898_v43 = vcombine.high %v176_v36, %v184_v37  ;;  %v272_v20 = vld [vmem:[#allocation2 + $0x510] sm:$0xff]  ;;  %v281_v24 = vld [vmem:[#allocation2 + $0x558] sm:$0xff] }
  0xba   :  { %v280_v21 = vld [vmem:[#allocation2 + $0x550] sm:$0xff] }
  0xbb   :  { %3352 = vmatpush1.bf16.msra.mxu0 %v8261_v39  ;;  %3438 = vmatpush1.bf16.msra.mxu1 %v8263_v40  ;;  %v7884_v39 = vcombine.high %v161_v30, %v169_v32  ;;  %v185_v40 = vld [vmem:[#allocation2 + $0x258] sm:$0xff] }
  0xbc   :  { %3353 = vmatprep.subr.bf16.mxu0 %v8278_v41  ;;  %3439 = vmatprep.subr.bf16.mxu1 %v8280_v45  ;;  %v7881_v41 = vcombine.low %v160_v28, %v168_v29  ;;  %v193_v45 = vld [vmem:[#allocation2 + $0x298] sm:$0xff]  ;;  %v7900_v46 = vcombine.high %v177_v38, %v185_v40  ;;  %v288_v28 = vld [vmem:[#allocation2 + $0x590] sm:$0xff] }
  0xbd   :  { %v296_v29 = vld [vmem:[#allocation2 + $0x5d0] sm:$0xff]  ;;  %v289_v30 = vld [vmem:[#allocation2 + $0x598] sm:$0xff] }
  0xbe   :  { %v297_v32 = vld [vmem:[#allocation2 + $0x5d8] sm:$0xff] }
  0xbf   :  { %3354 = vmatpush1.bf16.msra.mxu0 %v8277_v47  ;;  %3440 = vmatpush1.bf16.msra.mxu1 %v8279_v48  ;;  %v201_v47 = vld [vmem:[#allocation2 + $0x2d8] sm:$0xff]  ;;  %v7897_v48 = vcombine.low %v176_v36, %v184_v37  ;;  %v304_v36 = vld [vmem:[#allocation2 + $0x610] sm:$0xff] }
  0xc0   :  { %3355 = vmatprep.subr.bf16.mxu0 %v8294_v49  ;;  %3441 = vmatprep.subr.bf16.mxu1 %v8296_v53  ;;  %v7899_v49 = vcombine.low %v177_v38, %v185_v40  ;;  %v209_v53 = vld [vmem:[#allocation2 + $0x318] sm:$0xff]  ;;  %v7916_v54 = vcombine.high %v193_v45, %v201_v47  ;;  %v312_v37 = vld [vmem:[#allocation2 + $0x650] sm:$0xff] }
  0xc1   :  { %v305_v38 = vld [vmem:[#allocation2 + $0x618] sm:$0xff] }
  0xc2   :  { %v313_v40 = vld [vmem:[#allocation2 + $0x658] sm:$0xff] }
  0xc3   :  { %3356 = vmatpush1.bf16.msra.mxu0 %v8293_v55  ;;  %3442 = vmatpush1.bf16.msra.mxu1 %v8295_v57  ;;  %v217_v55 = vld [vmem:[#allocation2 + $0x358] sm:$0xff] }
  0xc4   :  { %3357 = vmatprep.subr.bf16.mxu0 %v8310_v58  ;;  %3443 = vmatprep.subr.bf16.mxu1 %v8312_v62  ;;  %v7915_v58 = vcombine.low %v193_v45, %v201_v47  ;;  %v225_v62 = vld [vmem:[#allocation2 + $0x398] sm:$0xff]  ;;  %v7932_v63 = vcombine.high %v209_v53, %v217_v55 }
  0xc5   :  { %v321_v45 = vld [vmem:[#allocation2 + $0x698] sm:$0xff] }
  0xc6   :  { %v329_v47 = vld [vmem:[#allocation2 + $0x6d8] sm:$0xff] }
  0xc7   :  { %3358 = vmatpush1.bf16.msra.mxu0 %v8309_v0  ;;  %3444 = vmatpush1.bf16.msra.mxu1 %v8311_v1  ;;  %v233_v0 = vld [vmem:[#allocation2 + $0x3d8] sm:$0xff]  ;;  %v7929_v1 = vcombine.low %v208_v51, %v216_v52  ;;  %v336_v51 = vld [vmem:[#allocation2 + $0x710] sm:$0xff] }
  0xc8   :  { %3359 = vmatprep.subr.bf16.mxu0 %v8326_v2  ;;  %3445 = vmatprep.subr.bf16.mxu1 %v8328_v6  ;;  %v7931_v2 = vcombine.low %v209_v53, %v217_v55  ;;  %v241_v6 = vld [vmem:[#allocation2 + $0x418] sm:$0xff]  ;;  %v7948_v7 = vcombine.high %v225_v62, %v233_v0  ;;  %v344_v52 = vld [vmem:[#allocation2 + $0x750] sm:$0xff] }
  0xc9   :  { %v337_v53 = vld [vmem:[#allocation2 + $0x718] sm:$0xff] }
  0xca   :  { %v345_v55 = vld [vmem:[#allocation2 + $0x758] sm:$0xff] }
  0xcb   :  { %3360 = vmatpush1.bf16.msra.mxu0 %v8325_v8  ;;  %3446 = vmatpush1.bf16.msra.mxu1 %v8327_v9  ;;  %v249_v8 = vld [vmem:[#allocation2 + $0x458] sm:$0xff]  ;;  %v7945_v9 = vcombine.low %v224_v60, %v232_v61  ;;  %v352_v60 = vld [vmem:[#allocation2 + $0x790] sm:$0xff] }
  0xcc   :  { %3458 = vmatprep.subr.bf16.mxu0 %v7834_v11  ;;  %3544 = vmatprep.subr.bf16.mxu1 %v7836_v15  ;;  %v7962_v11 = vcombine.high %v240_v4, %v248_v5  ;;  %v7964_v15 = vcombine.high %v241_v6, %v249_v8  ;;  %v360_v61 = vld [vmem:[#allocation2 + $0x7d0] sm:$0xff] }
  0xce   :  { %3362 = vmatmul.mubr.bf16.vlgmr.msra.gmra.mrb[0].mxu0 %v8989_v10  ;;  %3448 = vmatmul.mubr.bf16.vlgmr.msra.gmra.mrb[0].mxu1 %v8989_v10  ;;  %v7947_v10 = vcombine.low %v225_v62, %v233_v0  ;;  %v353_v62 = vld [vmem:[#allocation2 + $0x798] sm:$0xff] }
  0xcf   :  { %3459 = vmatpush1.bf16.msra.mxu0 %v7833_v17  ;;  %3545 = vmatpush1.bf16.msra.mxu1 %v7835_v18  ;;  %v7961_v17 = vcombine.low %v240_v4, %v248_v5  ;;  %v7963_v18 = vcombine.low %v241_v6, %v249_v8  ;;  %v361_v0 = vld [vmem:[#allocation2 + $0x7d8] sm:$0xff]  ;;  %v368_v4 = vld [vmem:[#allocation2 + $0x810] sm:$0xff] }
  0xd0   :  { %3460 = vmatprep.subr.bf16.mxu0 %v7850_v19  ;;  %3546 = vmatprep.subr.bf16.mxu1 %v7852_v23  ;;  %v7978_v19 = vcombine.high %v256_v12, %v264_v13  ;;  %v7980_v23 = vcombine.high %v257_v14, %v265_v16  ;;  %v376_v5 = vld [vmem:[#allocation2 + $0x850] sm:$0xff]  ;;  %v369_v6 = vld [vmem:[#allocation2 + $0x818] sm:$0xff] }
  0xd1   :  { %3490 = vmatprep.mubr.bf16.mxu0 %v9983_v56  ;;  %3576 = vmatprep.mubr.bf16.mxu1 %v9983_v56  ;;  %v200_v56 = vld [vmem:[#allocation2 + $0x2d0] sm:$0xff]  ;;  %v377_v8 = vld [vmem:[#allocation2 + $0x858] sm:$0xff] }
  0xd2   :  { %v7914_v50 = vcombine.high %v192_v44, %v200_v56  ;;  %v7913_v57 = vcombine.low %v192_v44, %v200_v56  ;;  %v320_v44 = vld [vmem:[#allocation2 + $0x690] sm:$0xff] }
  0xd3   :  { %3461 = vmatpush1.bf16.msra.mxu0 %v7849_v25  ;;  %3547 = vmatpush1.bf16.msra.mxu1 %v7851_v26  ;;  %v7977_v25 = vcombine.low %v256_v12, %v264_v13  ;;  %v7979_v26 = vcombine.low %v257_v14, %v265_v16  ;;  %v328_v56 = vld [vmem:[#allocation2 + $0x6d0] sm:$0xff]  ;;  %v385_v14 = vld [vmem:[#allocation2 + $0x898] sm:$0xff] }
  0xd4   :  { %3462 = vmatprep.subr.bf16.mxu0 %v7866_v27  ;;  %3548 = vmatprep.subr.bf16.mxu1 %v7868_v31  ;;  %v7994_v27 = vcombine.high %v272_v20, %v280_v21  ;;  %v7996_v31 = vcombine.high %v273_v22, %v281_v24  ;;  %v384_v12 = vld [vmem:[#allocation2 + $0x890] sm:$0xff]  ;;  %v393_v16 = vld [vmem:[#allocation2 + $0x8d8] sm:$0xff] }
  0xd5   :  { %v392_v13 = vld [vmem:[#allocation2 + $0x8d0] sm:$0xff] }
  0xd7   :  { %3463 = vmatpush1.bf16.msra.mxu0 %v7865_v33  ;;  %3549 = vmatpush1.bf16.msra.mxu1 %v7867_v34  ;;  %v7993_v33 = vcombine.low %v272_v20, %v280_v21  ;;  %v7995_v34 = vcombine.low %v273_v22, %v281_v24  ;;  %v400_v20 = vld [vmem:[#allocation2 + $0x910] sm:$0xff]  ;;  %v401_v22 = vld [vmem:[#allocation2 + $0x918] sm:$0xff] }
  0xd8   :  { %3464 = vmatprep.subr.bf16.mxu0 %v7882_v35  ;;  %3550 = vmatprep.subr.bf16.mxu1 %v7884_v39  ;;  %v8010_v35 = vcombine.high %v288_v28, %v296_v29  ;;  %v8012_v39 = vcombine.high %v289_v30, %v297_v32  ;;  %v408_v21 = vld [vmem:[#allocation2 + $0x950] sm:$0xff]  ;;  %v409_v24 = vld [vmem:[#allocation2 + $0x958] sm:$0xff] }
  0xdb   :  { %3465 = vmatpush1.bf16.msra.mxu0 %v7881_v41  ;;  %3551 = vmatpush1.bf16.msra.mxu1 %v7883_v42  ;;  %v8009_v41 = vcombine.low %v288_v28, %v296_v29  ;;  %v8011_v42 = vcombine.low %v289_v30, %v297_v32  ;;  %v8122_v28 = vcombine.high %v400_v20, %v408_v21  ;;  %v416_v29 = vld [vmem:[#allocation2 + $0x990] sm:$0xff] }
  0xdc   :  { %3466 = vmatprep.subr.bf16.mxu0 %v7898_v43  ;;  %3552 = vmatprep.subr.bf16.mxu1 %v7900_v46  ;;  %v8026_v43 = vcombine.high %v304_v36, %v312_v37  ;;  %v8028_v46 = vcombine.high %v305_v38, %v313_v40  ;;  %v424_v30 = vld [vmem:[#allocation2 + $0x9d0] sm:$0xff]  ;;  %v8124_v32 = vcombine.high %v401_v22, %v409_v24 }
  0xdf   :  { %3467 = vmatpush1.bf16.msra.mxu0 %v7897_v48  ;;  %3553 = vmatpush1.bf16.msra.mxu1 %v7899_v49  ;;  %v8025_v48 = vcombine.low %v304_v36, %v312_v37  ;;  %v8027_v49 = vcombine.low %v305_v38, %v313_v40  ;;  %v8123_v36 = vcombine.low %v401_v22, %v409_v24  ;;  %v432_v38 = vld [vmem:[#allocation2 + $0xa10] sm:$0xff]  ;;  %v433_v40 = vld [vmem:[#allocation2 + $0xa18] sm:$0xff] }
  0xe0   :  { %3468 = vmatprep.subr.bf16.mxu0 %v7914_v50  ;;  %3554 = vmatprep.subr.bf16.mxu1 %v7916_v54  ;;  %v8042_v50 = vcombine.high %v320_v44, %v328_v56  ;;  %v8044_v54 = vcombine.high %v321_v45, %v329_v47  ;;  %v8138_v37 = vcombine.high %v416_v29, %v424_v30  ;;  %v528_v22 = vld [vmem:[#allocation2 + $0xd10] sm:$0xff]  ;;  %v529_v24 = vld [vmem:[#allocation2 + $0xd18] sm:$0xff] }
  0xe3   :  { %3469 = vmatpush1.bf16.msra.mxu0 %v7913_v57  ;;  %3555 = vmatpush1.bf16.msra.mxu1 %v7915_v58  ;;  %v8041_v57 = vcombine.low %v320_v44, %v328_v56  ;;  %v8043_v58 = vcombine.low %v321_v45, %v329_v47  ;;  %v448_v45 = vld [vmem:[#allocation2 + $0xa90] sm:$0xff]  ;;  %v449_v47 = vld [vmem:[#allocation2 + $0xa98] sm:$0xff] }
  0xe4   :  { %3470 = vmatprep.subr.bf16.mxu0 %v7930_v59  ;;  %3556 = vmatprep.subr.bf16.mxu1 %v7932_v63  ;;  %v8058_v59 = vcombine.high %v336_v51, %v344_v52  ;;  %v8060_v63 = vcombine.high %v337_v53, %v345_v55 }
  0xe7   :  { %3471 = vmatpush1.bf16.msra.mxu0 %v7929_v1  ;;  %3557 = vmatpush1.bf16.msra.mxu1 %v7931_v2  ;;  %v8057_v1 = vcombine.low %v336_v51, %v344_v52  ;;  %v8059_v2 = vcombine.low %v337_v53, %v345_v55  ;;  %v464_v53 = vld [vmem:[#allocation2 + $0xb10] sm:$0xff]  ;;  %v465_v55 = vld [vmem:[#allocation2 + $0xb18] sm:$0xff] }
  0xe8   :  { %3472 = vmatprep.subr.bf16.mxu0 %v7946_v3  ;;  %3558 = vmatprep.subr.bf16.mxu1 %v7948_v7  ;;  %v8074_v3 = vcombine.high %v352_v60, %v360_v61  ;;  %v8076_v7 = vcombine.high %v353_v62, %v361_v0 }
  0xeb   :  { %3473 = vmatpush1.bf16.msra.mxu0 %v7945_v9  ;;  %3559 = vmatpush1.bf16.msra.mxu1 %v7947_v10  ;;  %v8073_v9 = vcombine.low %v352_v60, %v360_v61  ;;  %v8075_v10 = vcombine.low %v353_v62, %v361_v0  ;;  %v480_v62 = vld [vmem:[#allocation2 + $0xb90] sm:$0xff] }
  0xec   :  { %3474 = vmatprep.subr.bf16.mxu0 %v7962_v11  ;;  %3560 = vmatprep.subr.bf16.mxu1 %v7964_v15  ;;  %v8090_v11 = vcombine.high %v368_v4, %v376_v5  ;;  %v8092_v15 = vcombine.high %v369_v6, %v377_v8 }
  0xef   :  { %3475 = vmatpush1.bf16.msra.mxu0 %v7961_v17  ;;  %3561 = vmatpush1.bf16.msra.mxu1 %v7963_v18  ;;  %v8089_v17 = vcombine.low %v368_v4, %v376_v5  ;;  %v8091_v18 = vcombine.low %v369_v6, %v377_v8  ;;  %v496_v6 = vld [vmem:[#allocation2 + $0xc10] sm:$0xff]  ;;  %v497_v8 = vld [vmem:[#allocation2 + $0xc18] sm:$0xff] }
  0xf0   :  { %3476 = vmatprep.subr.bf16.mxu0 %v7978_v19  ;;  %3562 = vmatprep.subr.bf16.mxu1 %v7980_v23  ;;  %v8106_v19 = vcombine.high %v384_v12, %v392_v13  ;;  %v8108_v23 = vcombine.high %v385_v14, %v393_v16 }
  0xf3   :  { %3477 = vmatpush1.bf16.msra.mxu0 %v7977_v25  ;;  %3563 = vmatpush1.bf16.msra.mxu1 %v7979_v26  ;;  %v9758_v25 = vld [vmem:[%s10182_s0] ss:$16 sps:$4 sm:$0xff]   ;;  %v8105_v26 = vcombine.low %v384_v12, %v392_v13 }
  0xf4   :  { %3478 = vmatprep.subr.bf16.mxu0 %v7994_v27  ;;  %3564 = vmatprep.subr.bf16.mxu1 %v7996_v31  ;;  %v8107_v27 = vcombine.low %v385_v14, %v393_v16  ;;  %v417_v31 = vld [vmem:[#allocation2 + $0x998] sm:$0xff]  ;;  %v512_v14 = vld [vmem:[#allocation2 + $0xc90] sm:$0xff] }
  0xf5   :  { %v513_v16 = vld [vmem:[#allocation2 + $0xc98] sm:$0xff] }
  0xf7   :  { %3479 = vmatpush1.bf16.msra.mxu0 %v7993_v33  ;;  %3565 = vmatpush1.bf16.msra.mxu1 %v7995_v34  ;;  %v425_v33 = vld [vmem:[#allocation2 + $0x9d8] sm:$0xff] }
  0xf8   :  { %3480 = vmatprep.subr.bf16.mxu0 %v8010_v35  ;;  %3566 = vmatprep.subr.bf16.mxu1 %v8012_v39  ;;  %v9759_v34 = vld [vmem:[%s10182_s0 + $0xc] ss:$16 sps:$4 sm:$0xff]   ;;  %v8121_v35 = vcombine.low %v400_v20, %v408_v21  ;;  %v440_v39 = vld [vmem:[#allocation2 + $0xa50] sm:$0xff]  ;;  %v8139_v44 = vcombine.low %v417_v31, %v425_v33 }
  0xf9   :  { %v8154_v56 = vcombine.high %v432_v38, %v440_v39 }
  0xfb   :  { %3481 = vmatpush1.bf16.msra.mxu0 %v8009_v41  ;;  %3567 = vmatpush1.bf16.msra.mxu1 %v8011_v42  ;;  %v8140_v41 = vcombine.high %v417_v31, %v425_v33  ;;  %v441_v42 = vld [vmem:[#allocation2 + $0xa58] sm:$0xff]  ;;  %v552_v31 = vld [vmem:[#allocation2 + $0xdd0] sm:$0xff] }
  0xfc   :  { %3482 = vmatprep.subr.bf16.mxu0 %v8026_v43  ;;  %3568 = vmatprep.subr.bf16.mxu1 %v8028_v46  ;;  %v8137_v43 = vcombine.low %v416_v29, %v424_v30  ;;  %v456_v46 = vld [vmem:[#allocation2 + $0xad0] sm:$0xff]  ;;  %v8155_v51 = vcombine.low %v433_v40, %v441_v42 }
  0xfd   :  { %v8170_v52 = vcombine.high %v448_v45, %v456_v46  ;;  %v544_v30 = vld [vmem:[#allocation2 + $0xd90] sm:$0xff] }
  0xff   :  { %3483 = vmatpush1.bf16.msra.mxu0 %v8025_v48  ;;  %3569 = vmatpush1.bf16.msra.mxu1 %v8027_v49  ;;  %v8156_v48 = vcombine.high %v433_v40, %v441_v42  ;;  %v457_v49 = vld [vmem:[#allocation2 + $0xad8] sm:$0xff] }
 0x100   :  { %3484 = vmatprep.subr.bf16.mxu0 %v8042_v50  ;;  %3570 = vmatprep.subr.bf16.mxu1 %v8044_v54  ;;  %v8153_v50 = vcombine.low %v432_v38, %v440_v39  ;;  %v472_v54 = vld [vmem:[#allocation2 + $0xb50] sm:$0xff]  ;;  %v8171_v60 = vcombine.low %v449_v47, %v457_v49  ;;  %v561_v40 = vld [vmem:[#allocation2 + $0xe18] sm:$0xff] }
 0x101   :  { %v8186_v61 = vcombine.high %v464_v53, %v472_v54  ;;  %v560_v38 = vld [vmem:[#allocation2 + $0xe10] sm:$0xff]  ;;  %v569_v42 = vld [vmem:[#allocation2 + $0xe58] sm:$0xff] }
 0x102   :  { %v568_v39 = vld [vmem:[#allocation2 + $0xe50] sm:$0xff] }
 0x103   :  { %3485 = vmatpush1.bf16.msra.mxu0 %v8041_v57  ;;  %3571 = vmatpush1.bf16.msra.mxu1 %v8043_v58  ;;  %v8172_v57 = vcombine.high %v449_v47, %v457_v49  ;;  %v473_v58 = vld [vmem:[#allocation2 + $0xb58] sm:$0xff] }
 0x104   :  { %3486 = vmatprep.subr.bf16.mxu0 %v8058_v59  ;;  %3572 = vmatprep.subr.bf16.mxu1 %v8060_v63  ;;  %v8169_v59 = vcombine.low %v448_v45, %v456_v46  ;;  %v488_v63 = vld [vmem:[#allocation2 + $0xbd0] sm:$0xff]  ;;  %v8188_v0 = vcombine.high %v465_v55, %v473_v58  ;;  %v8187_v4 = vcombine.low %v465_v55, %v473_v58  ;;  %v577_v47 = vld [vmem:[#allocation2 + $0xe98] sm:$0xff] }
 0x105   :  { %v8202_v5 = vcombine.high %v480_v62, %v488_v63  ;;  %v576_v45 = vld [vmem:[#allocation2 + $0xe90] sm:$0xff]  ;;  %v585_v49 = vld [vmem:[#allocation2 + $0xed8] sm:$0xff] }
 0x106   :  { %v584_v46 = vld [vmem:[#allocation2 + $0xed0] sm:$0xff]  ;;  %v593_v55 = vld [vmem:[#allocation2 + $0xf18] sm:$0xff] }
 0x107   :  { %3487 = vmatpush1.bf16.msra.mxu0 %v8057_v1  ;;  %3573 = vmatpush1.bf16.msra.mxu1 %v8059_v2  ;;  %v481_v1 = vld [vmem:[#allocation2 + $0xb98] sm:$0xff] }
 0x108   :  { %3488 = vmatprep.subr.bf16.mxu0 %v8074_v3  ;;  %3574 = vmatprep.subr.bf16.mxu1 %v8076_v7  ;;  %v489_v2 = vld [vmem:[#allocation2 + $0xbd8] sm:$0xff]  ;;  %v8185_v3 = vcombine.low %v464_v53, %v472_v54  ;;  %v504_v7 = vld [vmem:[#allocation2 + $0xc50] sm:$0xff] }
 0x109   :  { %v8203_v12 = vcombine.low %v481_v1, %v489_v2  ;;  %v8218_v13 = vcombine.high %v496_v6, %v504_v7  ;;  %v592_v53 = vld [vmem:[#allocation2 + $0xf10] sm:$0xff]  ;;  %v601_v58 = vld [vmem:[#allocation2 + $0xf58] sm:$0xff] }
 0x10a   :  { %v600_v54 = vld [vmem:[#allocation2 + $0xf50] sm:$0xff] }
 0x10b   :  { %3489 = vmatpush1.bf16.msra.mxu0 %v8073_v9  ;;  %3575 = vmatpush1.bf16.msra.mxu1 %v8075_v10  ;;  %v8204_v9 = vcombine.high %v481_v1, %v489_v2  ;;  %v505_v10 = vld [vmem:[#allocation2 + $0xc58] sm:$0xff]  ;;  %v8316_v1 = vcombine.high %v593_v55, %v601_v58 }
 0x10c   :  { %3501 = vmatprep.subr.bf16.mxu0 %v8090_v11  ;;  %3587 = vmatprep.subr.bf16.mxu1 %v8092_v15  ;;  %v8201_v11 = vcombine.low %v480_v62, %v488_v63  ;;  %v520_v15 = vld [vmem:[#allocation2 + $0xcd0] sm:$0xff]  ;;  %v8219_v20 = vcombine.low %v497_v8, %v505_v10  ;;  %v617_v2 = vld [vmem:[#allocation2 + $0xfd8] sm:$0xff] }
 0x10d   :  { %v8234_v21 = vcombine.high %v512_v14, %v520_v15  ;;  %v608_v62 = vld [vmem:[#allocation2 + $0xf90] sm:$0xff] }
 0x10e   :  { %3491 = vmatmul.mubr.bf16.vlgmr.msra.gmra.mrb[4].mxu0 %v9758_v25  ;;  %3577 = vmatmul.mubr.bf16.vlgmr.msra.gmra.mrb[4].mxu1 %v9758_v25  ;;  %v616_v63 = vld [vmem:[#allocation2 + $0xfd0] sm:$0xff] }
 0x10f   :  { %3502 = vmatpush1.bf16.msra.mxu0 %v8089_v17  ;;  %3588 = vmatpush1.bf16.msra.mxu1 %v8091_v18  ;;  %v8220_v17 = vcombine.high %v497_v8, %v505_v10  ;;  %v521_v18 = vld [vmem:[#allocation2 + $0xcd8] sm:$0xff]  ;;  %v115_v8 = vld [vmem:[#allocation2 + $0x28] sm:$0xff] }
 0x110   :  { %3503 = vmatprep.subr.bf16.mxu0 %v8106_v19  ;;  %3589 = vmatprep.subr.bf16.mxu1 %v8108_v23  ;;  %v8217_v19 = vcombine.low %v496_v6, %v504_v7  ;;  %v536_v23 = vld [vmem:[#allocation2 + $0xd50] sm:$0xff]  ;;  %v8236_v25 = vcombine.high %v513_v16, %v521_v18  ;;  %v114_v6 = vld [vmem:[#allocation2 + $0x20] sm:$0xff]  ;;  %v123_v10 = vld [vmem:[#allocation2 + $0x68] sm:$0xff] }
 0x111   :  { %3533 = vmatprep.mubr.bf16.mxu0 %v9759_v34  ;;  %3619 = vmatprep.mubr.bf16.mxu1 %v9759_v34  ;;  %v8250_v29 = vcombine.high %v528_v22, %v536_v23  ;;  %v553_v34 = vld [vmem:[#allocation2 + $0xdd8] sm:$0xff]  ;;  %v122_v7 = vld [vmem:[#allocation2 + $0x60] sm:$0xff] }
 0x113   :  { %3504 = vmatpush1.bf16.msra.mxu0 %v8105_v26  ;;  %3590 = vmatpush1.bf16.msra.mxu1 %v8107_v27  ;;  %v537_v26 = vld [vmem:[#allocation2 + $0xd58] sm:$0xff]  ;;  %v8233_v27 = vcombine.low %v512_v14, %v520_v15  ;;  %v130_v14 = vld [vmem:[#allocation2 + $0xa0] sm:$0xff] }
 0x114   :  { %3505 = vmatprep.subr.bf16.mxu0 %v8122_v28  ;;  %3591 = vmatprep.subr.bf16.mxu1 %v8124_v32  ;;  %v8235_v28 = vcombine.low %v513_v16, %v521_v18  ;;  %v545_v32 = vld [vmem:[#allocation2 + $0xd98] sm:$0xff]  ;;  %v8252_v33 = vcombine.high %v529_v24, %v537_v26  ;;  %v138_v15 = vld [vmem:[#allocation2 + $0xe0] sm:$0xff]  ;;  %v131_v16 = vld [vmem:[#allocation2 + $0xa8] sm:$0xff] }
 0x115   :  { %v139_v18 = vld [vmem:[#allocation2 + $0xe8] sm:$0xff] }
 0x117   :  { %3506 = vmatpush1.bf16.msra.mxu0 %v8121_v35  ;;  %3592 = vmatpush1.bf16.msra.mxu1 %v8123_v36  ;;  %v8249_v35 = vcombine.low %v528_v22, %v536_v23  ;;  %v8251_v36 = vcombine.low %v529_v24, %v537_v26  ;;  %v146_v22 = vld [vmem:[#allocation2 + $0x120] sm:$0xff]  ;;  %v147_v24 = vld [vmem:[#allocation2 + $0x128] sm:$0xff] }
 0x118   :  { %3507 = vmatprep.subr.bf16.mxu0 %v8138_v37  ;;  %3593 = vmatprep.subr.bf16.mxu1 %v8140_v41  ;;  %v8266_v37 = vcombine.high %v544_v30, %v552_v31  ;;  %v8268_v41 = vcombine.high %v545_v32, %v553_v34  ;;  %v154_v23 = vld [vmem:[#allocation2 + $0x160] sm:$0xff]  ;;  %v155_v26 = vld [vmem:[#allocation2 + $0x168] sm:$0xff] }
 0x11b   :  { %3508 = vmatpush1.bf16.msra.mxu0 %v8137_v43  ;;  %3594 = vmatpush1.bf16.msra.mxu1 %v8139_v44  ;;  %v8265_v43 = vcombine.low %v544_v30, %v552_v31  ;;  %v8267_v44 = vcombine.low %v545_v32, %v553_v34  ;;  %v7870_v30 = vcombine.high %v146_v22, %v154_v23  ;;  %v162_v31 = vld [vmem:[#allocation2 + $0x1a0] sm:$0xff] }
 0x11c   :  { %3509 = vmatprep.subr.bf16.mxu0 %v8154_v56  ;;  %3595 = vmatprep.subr.bf16.mxu1 %v8156_v48  ;;  %v8282_v56 = vcombine.high %v560_v38, %v568_v39  ;;  %v8284_v48 = vcombine.high %v561_v40, %v569_v42  ;;  %v170_v32 = vld [vmem:[#allocation2 + $0x1e0] sm:$0xff]  ;;  %v7872_v34 = vcombine.high %v147_v24, %v155_v26 }
 0x11f   :  { %3510 = vmatpush1.bf16.msra.mxu0 %v8153_v50  ;;  %3596 = vmatpush1.bf16.msra.mxu1 %v8155_v51  ;;  %v8281_v50 = vcombine.low %v560_v38, %v568_v39  ;;  %v8283_v51 = vcombine.low %v561_v40, %v569_v42  ;;  %v7871_v38 = vcombine.low %v147_v24, %v155_v26  ;;  %v178_v40 = vld [vmem:[#allocation2 + $0x220] sm:$0xff]  ;;  %v179_v42 = vld [vmem:[#allocation2 + $0x228] sm:$0xff] }
 0x120   :  { %3511 = vmatprep.subr.bf16.mxu0 %v8170_v52  ;;  %3597 = vmatprep.subr.bf16.mxu1 %v8172_v57  ;;  %v8298_v52 = vcombine.high %v576_v45, %v584_v46  ;;  %v8300_v57 = vcombine.high %v577_v47, %v585_v49  ;;  %v7886_v39 = vcombine.high %v162_v31, %v170_v32  ;;  %v274_v24 = vld [vmem:[#allocation2 + $0x520] sm:$0xff]  ;;  %v275_v26 = vld [vmem:[#allocation2 + $0x528] sm:$0xff] }
 0x123   :  { %3512 = vmatpush1.bf16.msra.mxu0 %v8169_v59  ;;  %3598 = vmatpush1.bf16.msra.mxu1 %v8171_v60  ;;  %v8297_v59 = vcombine.low %v576_v45, %v584_v46  ;;  %v8299_v60 = vcombine.low %v577_v47, %v585_v49  ;;  %v194_v47 = vld [vmem:[#allocation2 + $0x2a0] sm:$0xff]  ;;  %v195_v49 = vld [vmem:[#allocation2 + $0x2a8] sm:$0xff] }
 0x124   :  { %3513 = vmatprep.subr.bf16.mxu0 %v8186_v61  ;;  %3599 = vmatprep.subr.bf16.mxu1 %v8188_v0  ;;  %v8314_v61 = vcombine.high %v592_v53, %v600_v54  ;;  %v609_v0 = vld [vmem:[#allocation2 + $0xf98] sm:$0xff] }
 0x127   :  { %3514 = vmatpush1.bf16.msra.mxu0 %v8185_v3  ;;  %3600 = vmatpush1.bf16.msra.mxu1 %v8187_v4  ;;  %v8313_v3 = vcombine.low %v592_v53, %v600_v54  ;;  %v8315_v4 = vcombine.low %v593_v55, %v601_v58  ;;  %v210_v55 = vld [vmem:[#allocation2 + $0x320] sm:$0xff]  ;;  %v211_v58 = vld [vmem:[#allocation2 + $0x328] sm:$0xff] }
 0x128   :  { %3515 = vmatprep.subr.bf16.mxu0 %v8202_v5  ;;  %3601 = vmatprep.subr.bf16.mxu1 %v8204_v9  ;;  %v8330_v5 = vcombine.high %v608_v62, %v616_v63  ;;  %v8332_v9 = vcombine.high %v609_v0, %v617_v2 }
 0x12b   :  { %3516 = vmatpush1.bf16.msra.mxu0 %v8201_v11  ;;  %3602 = vmatpush1.bf16.msra.mxu1 %v8203_v12  ;;  %v8329_v11 = vcombine.low %v608_v62, %v616_v63  ;;  %v8331_v12 = vcombine.low %v609_v0, %v617_v2  ;;  %v226_v0 = vld [vmem:[#allocation2 + $0x3a0] sm:$0xff]  ;;  %v227_v2 = vld [vmem:[#allocation2 + $0x3a8] sm:$0xff] }
 0x12c   :  { %3517 = vmatprep.subr.bf16.mxu0 %v8218_v13  ;;  %3603 = vmatprep.subr.bf16.mxu1 %v8220_v17  ;;  %v7838_v13 = vcombine.high %v114_v6, %v122_v7  ;;  %v7840_v17 = vcombine.high %v115_v8, %v123_v10 }
 0x12f   :  { %3518 = vmatpush1.bf16.msra.mxu0 %v8217_v19  ;;  %3604 = vmatpush1.bf16.msra.mxu1 %v8219_v20  ;;  %v7837_v19 = vcombine.low %v114_v6, %v122_v7  ;;  %v7839_v20 = vcombine.low %v115_v8, %v123_v10  ;;  %v242_v8 = vld [vmem:[#allocation2 + $0x420] sm:$0xff]  ;;  %v243_v10 = vld [vmem:[#allocation2 + $0x428] sm:$0xff] }
 0x130   :  { %3519 = vmatprep.subr.bf16.mxu0 %v8234_v21  ;;  %3605 = vmatprep.subr.bf16.mxu1 %v8236_v25  ;;  %v7854_v21 = vcombine.high %v130_v14, %v138_v15  ;;  %v7856_v25 = vcombine.high %v131_v16, %v139_v18 }
 0x133   :  { %3520 = vmatpush1.bf16.msra.mxu0 %v8233_v27  ;;  %3606 = vmatpush1.bf16.msra.mxu1 %v8235_v28  ;;  %v9760_v27 = vld [vmem:[%s10182_s0 + $0x8] ss:$16 sps:$4 sm:$0xff]   ;;  %v7853_v28 = vcombine.low %v130_v14, %v138_v15 }
 0x134   :  { %3521 = vmatprep.subr.bf16.mxu0 %v8250_v29  ;;  %3607 = vmatprep.subr.bf16.mxu1 %v8252_v33  ;;  %v7855_v29 = vcombine.low %v131_v16, %v139_v18  ;;  %v163_v33 = vld [vmem:[#allocation2 + $0x1a8] sm:$0xff]  ;;  %v258_v16 = vld [vmem:[#allocation2 + $0x4a0] sm:$0xff] }
 0x135   :  { %v259_v18 = vld [vmem:[#allocation2 + $0x4a8] sm:$0xff] }
 0x137   :  { %3522 = vmatpush1.bf16.msra.mxu0 %v8249_v35  ;;  %3608 = vmatpush1.bf16.msra.mxu1 %v8251_v36  ;;  %v171_v35 = vld [vmem:[#allocation2 + $0x1e8] sm:$0xff]  ;;  %v9761_v36 = vld [vmem:[%s10182_s0 + $0x4] ss:$16 sps:$4 sm:$0xff]  }
 0x138   :  { %3523 = vmatprep.subr.bf16.mxu0 %v8266_v37  ;;  %3609 = vmatprep.subr.bf16.mxu1 %v8268_v41  ;;  %v7869_v37 = vcombine.low %v146_v22, %v154_v23  ;;  %v186_v41 = vld [vmem:[#allocation2 + $0x260] sm:$0xff]  ;;  %v7887_v45 = vcombine.low %v163_v33, %v171_v35 }
 0x139   :  { %v7902_v46 = vcombine.high %v178_v40, %v186_v41 }
 0x13b   :  { %3524 = vmatpush1.bf16.msra.mxu0 %v8265_v43  ;;  %3610 = vmatpush1.bf16.msra.mxu1 %v8267_v44  ;;  %v7888_v43 = vcombine.high %v163_v33, %v171_v35  ;;  %v187_v44 = vld [vmem:[#allocation2 + $0x268] sm:$0xff]  ;;  %v298_v33 = vld [vmem:[#allocation2 + $0x5e0] sm:$0xff] }
 0x13c   :  { %3525 = vmatprep.subr.bf16.mxu0 %v8282_v56  ;;  %3611 = vmatprep.subr.bf16.mxu1 %v8284_v48  ;;  %v7885_v56 = vcombine.low %v162_v31, %v170_v32  ;;  %v202_v48 = vld [vmem:[#allocation2 + $0x2e0] sm:$0xff]  ;;  %v7903_v53 = vcombine.low %v179_v42, %v187_v44 }
 0x13d   :  { %v7918_v54 = vcombine.high %v194_v47, %v202_v48  ;;  %v290_v32 = vld [vmem:[#allocation2 + $0x5a0] sm:$0xff] }
 0x13f   :  { %3526 = vmatpush1.bf16.msra.mxu0 %v8281_v50  ;;  %3612 = vmatpush1.bf16.msra.mxu1 %v8283_v51  ;;  %v7904_v50 = vcombine.high %v179_v42, %v187_v44  ;;  %v203_v51 = vld [vmem:[#allocation2 + $0x2e8] sm:$0xff] }
 0x140   :  { %3527 = vmatprep.subr.bf16.mxu0 %v8298_v52  ;;  %3613 = vmatprep.subr.bf16.mxu1 %v8300_v57  ;;  %v7901_v52 = vcombine.low %v178_v40, %v186_v41  ;;  %v218_v57 = vld [vmem:[#allocation2 + $0x360] sm:$0xff]  ;;  %v7919_v62 = vcombine.low %v195_v49, %v203_v51  ;;  %v307_v42 = vld [vmem:[#allocation2 + $0x628] sm:$0xff] }
 0x141   :  { %v7934_v63 = vcombine.high %v210_v55, %v218_v57  ;;  %v306_v40 = vld [vmem:[#allocation2 + $0x620] sm:$0xff]  ;;  %v315_v44 = vld [vmem:[#allocation2 + $0x668] sm:$0xff] }
 0x142   :  { %v314_v41 = vld [vmem:[#allocation2 + $0x660] sm:$0xff] }
 0x143   :  { %3528 = vmatpush1.bf16.msra.mxu0 %v8297_v59  ;;  %3614 = vmatpush1.bf16.msra.mxu1 %v8299_v60  ;;  %v7920_v59 = vcombine.high %v195_v49, %v203_v51  ;;  %v219_v60 = vld [vmem:[#allocation2 + $0x368] sm:$0xff] }
 0x144   :  { %3529 = vmatprep.subr.bf16.mxu0 %v8314_v61  ;;  %3615 = vmatprep.subr.bf16.mxu1 %v8316_v1  ;;  %v7917_v61 = vcombine.low %v194_v47, %v202_v48  ;;  %v234_v1 = vld [vmem:[#allocation2 + $0x3e0] sm:$0xff]  ;;  %v7935_v6 = vcombine.low %v211_v58, %v219_v60  ;;  %v323_v49 = vld [vmem:[#allocation2 + $0x6a8] sm:$0xff] }
 0x145   :  { %v7950_v7 = vcombine.high %v226_v0, %v234_v1  ;;  %v322_v47 = vld [vmem:[#allocation2 + $0x6a0] sm:$0xff]  ;;  %v331_v51 = vld [vmem:[#allocation2 + $0x6e8] sm:$0xff] }
 0x146   :  { %v330_v48 = vld [vmem:[#allocation2 + $0x6e0] sm:$0xff] }
 0x147   :  { %3530 = vmatpush1.bf16.msra.mxu0 %v8313_v3  ;;  %3616 = vmatpush1.bf16.msra.mxu1 %v8315_v4  ;;  %v7936_v3 = vcombine.high %v211_v58, %v219_v60  ;;  %v235_v4 = vld [vmem:[#allocation2 + $0x3e8] sm:$0xff] }
 0x148   :  { %3531 = vmatprep.subr.bf16.mxu0 %v8330_v5  ;;  %3617 = vmatprep.subr.bf16.mxu1 %v8332_v9  ;;  %v7933_v5 = vcombine.low %v210_v55, %v218_v57  ;;  %v250_v9 = vld [vmem:[#allocation2 + $0x460] sm:$0xff]  ;;  %v7951_v14 = vcombine.low %v227_v2, %v235_v4  ;;  %v339_v58 = vld [vmem:[#allocation2 + $0x728] sm:$0xff] }
 0x149   :  { %v7966_v15 = vcombine.high %v242_v8, %v250_v9  ;;  %v338_v55 = vld [vmem:[#allocation2 + $0x720] sm:$0xff]  ;;  %v347_v60 = vld [vmem:[#allocation2 + $0x768] sm:$0xff] }
 0x14a   :  { %v346_v57 = vld [vmem:[#allocation2 + $0x760] sm:$0xff] }
 0x14b   :  { %3532 = vmatpush1.bf16.msra.mxu0 %v8329_v11  ;;  %3618 = vmatpush1.bf16.msra.mxu1 %v8331_v12  ;;  %v7952_v11 = vcombine.high %v227_v2, %v235_v4  ;;  %v251_v12 = vld [vmem:[#allocation2 + $0x468] sm:$0xff] }
 0x14c   :  { %3630 = vmatprep.subr.bf16.mxu0 %v7838_v13  ;;  %3716 = vmatprep.subr.bf16.mxu1 %v7840_v17  ;;  %v7949_v13 = vcombine.low %v226_v0, %v234_v1  ;;  %v266_v17 = vld [vmem:[#allocation2 + $0x4e0] sm:$0xff]  ;;  %v7967_v22 = vcombine.low %v243_v10, %v251_v12  ;;  %v355_v2 = vld [vmem:[#allocation2 + $0x7a8] sm:$0xff] }
 0x14d   :  { %v7982_v23 = vcombine.high %v258_v16, %v266_v17  ;;  %v354_v0 = vld [vmem:[#allocation2 + $0x7a0] sm:$0xff]  ;;  %v363_v4 = vld [vmem:[#allocation2 + $0x7e8] sm:$0xff] }
 0x14e   :  { %3534 = vmatmul.mubr.bf16.vlgmr.msra.gmra.mrb[4].mxu0 %v9760_v27  ;;  %3620 = vmatmul.mubr.bf16.vlgmr.msra.gmra.mrb[4].mxu1 %v9760_v27  ;;  %v362_v1 = vld [vmem:[#allocation2 + $0x7e0] sm:$0xff] }
 0x14f   :  { %3631 = vmatpush1.bf16.msra.mxu0 %v7837_v19  ;;  %3717 = vmatpush1.bf16.msra.mxu1 %v7839_v20  ;;  %v7968_v19 = vcombine.high %v243_v10, %v251_v12  ;;  %v267_v20 = vld [vmem:[#allocation2 + $0x4e8] sm:$0xff] }
 0x150   :  { %3632 = vmatprep.subr.bf16.mxu0 %v7854_v21  ;;  %3718 = vmatprep.subr.bf16.mxu1 %v7856_v25  ;;  %v7965_v21 = vcombine.low %v242_v8, %v250_v9  ;;  %v282_v25 = vld [vmem:[#allocation2 + $0x560] sm:$0xff]  ;;  %v7984_v27 = vcombine.high %v259_v18, %v267_v20  ;;  %v371_v10 = vld [vmem:[#allocation2 + $0x828] sm:$0xff] }
 0x151   :  { %3662 = vmatprep.mubr.bf16.mxu0 %v9761_v36  ;;  %3748 = vmatprep.mubr.bf16.mxu1 %v9761_v36  ;;  %v7998_v31 = vcombine.high %v274_v24, %v282_v25  ;;  %v299_v36 = vld [vmem:[#allocation2 + $0x5e8] sm:$0xff]  ;;  %v370_v8 = vld [vmem:[#allocation2 + $0x820] sm:$0xff] }
 0x152   :  { %v378_v9 = vld [vmem:[#allocation2 + $0x860] sm:$0xff]  ;;  %v379_v12 = vld [vmem:[#allocation2 + $0x868] sm:$0xff] }
 0x153   :  { %3633 = vmatpush1.bf16.msra.mxu0 %v7853_v28  ;;  %3719 = vmatpush1.bf16.msra.mxu1 %v7855_v29  ;;  %v283_v28 = vld [vmem:[#allocation2 + $0x568] sm:$0xff]  ;;  %v7981_v29 = vcombine.low %v258_v16, %v266_v17  ;;  %v386_v16 = vld [vmem:[#allocation2 + $0x8a0] sm:$0xff] }
 0x154   :  { %3634 = vmatprep.subr.bf16.mxu0 %v7870_v30  ;;  %3720 = vmatprep.subr.bf16.mxu1 %v7872_v34  ;;  %v7983_v30 = vcombine.low %v259_v18, %v267_v20  ;;  %v291_v34 = vld [vmem:[#allocation2 + $0x5a8] sm:$0xff]  ;;  %v8000_v35 = vcombine.high %v275_v26, %v283_v28  ;;  %v394_v17 = vld [vmem:[#allocation2 + $0x8e0] sm:$0xff] }
 0x155   :  { %v387_v18 = vld [vmem:[#allocation2 + $0x8a8] sm:$0xff] }
 0x156   :  { %v395_v20 = vld [vmem:[#allocation2 + $0x8e8] sm:$0xff] }
 0x157   :  { %3635 = vmatpush1.bf16.msra.mxu0 %v7869_v37  ;;  %3721 = vmatpush1.bf16.msra.mxu1 %v7871_v38  ;;  %v7997_v37 = vcombine.low %v274_v24, %v282_v25  ;;  %v7999_v38 = vcombine.low %v275_v26, %v283_v28  ;;  %v402_v24 = vld [vmem:[#allocation2 + $0x920] sm:$0xff]  ;;  %v403_v26 = vld [vmem:[#allocation2 + $0x928] sm:$0xff] }
 0x158   :  { %3636 = vmatprep.subr.bf16.mxu0 %v7886_v39  ;;  %3722 = vmatprep.subr.bf16.mxu1 %v7888_v43  ;;  %v8014_v39 = vcombine.high %v290_v32, %v298_v33  ;;  %v8016_v43 = vcombine.high %v291_v34, %v299_v36  ;;  %v410_v25 = vld [vmem:[#allocation2 + $0x960] sm:$0xff]  ;;  %v411_v28 = vld [vmem:[#allocation2 + $0x968] sm:$0xff] }
 0x15b   :  { %3637 = vmatpush1.bf16.msra.mxu0 %v7885_v56  ;;  %3723 = vmatpush1.bf16.msra.mxu1 %v7887_v45  ;;  %v8013_v56 = vcombine.low %v290_v32, %v298_v33  ;;  %v8015_v45 = vcombine.low %v291_v34, %v299_v36  ;;  %v8126_v32 = vcombine.high %v402_v24, %v410_v25  ;;  %v418_v34 = vld [vmem:[#allocation2 + $0x9a0] sm:$0xff]  ;;  %v10020_v36 = vld [vmem:[%s10182_s0 + $0xc] ss:$16 sps:$4 sm:$0xff]  }
 0x15c   :  { %3638 = vmatprep.subr.bf16.mxu0 %v7902_v46  ;;  %3724 = vmatprep.subr.bf16.mxu1 %v7904_v50  ;;  %v8030_v46 = vcombine.high %v306_v40, %v314_v41  ;;  %v8032_v50 = vcombine.high %v307_v42, %v315_v44  ;;  %v8128_v33 = vcombine.high %v403_v26, %v411_v28 }
 0x15f   :  { %3639 = vmatpush1.bf16.msra.mxu0 %v7901_v52  ;;  %3725 = vmatpush1.bf16.msra.mxu1 %v7903_v53  ;;  %v8029_v52 = vcombine.low %v306_v40, %v314_v41  ;;  %v8031_v53 = vcombine.low %v307_v42, %v315_v44  ;;  %v8125_v40 = vcombine.low %v402_v24, %v410_v25  ;;  %v434_v44 = vld [vmem:[#allocation2 + $0xa20] sm:$0xff] }
 0x160   :  { %3640 = vmatprep.subr.bf16.mxu0 %v7918_v54  ;;  %3726 = vmatprep.subr.bf16.mxu1 %v7920_v59  ;;  %v8046_v54 = vcombine.high %v322_v47, %v330_v48  ;;  %v8048_v59 = vcombine.high %v323_v49, %v331_v51  ;;  %v8127_v41 = vcombine.low %v403_v26, %v411_v28 }
 0x163   :  { %3641 = vmatpush1.bf16.msra.mxu0 %v7917_v61  ;;  %3727 = vmatpush1.bf16.msra.mxu1 %v7919_v62  ;;  %v8045_v61 = vcombine.low %v322_v47, %v330_v48  ;;  %v8047_v62 = vcombine.low %v323_v49, %v331_v51 }
 0x164   :  { %3642 = vmatprep.subr.bf16.mxu0 %v7934_v63  ;;  %3728 = vmatprep.subr.bf16.mxu1 %v7936_v3  ;;  %v8062_v63 = vcombine.high %v338_v55, %v346_v57  ;;  %v8064_v3 = vcombine.high %v339_v58, %v347_v60 }
 0x167   :  { %3643 = vmatpush1.bf16.msra.mxu0 %v7933_v5  ;;  %3729 = vmatpush1.bf16.msra.mxu1 %v7935_v6  ;;  %v8061_v5 = vcombine.low %v338_v55, %v346_v57  ;;  %v8063_v6 = vcombine.low %v339_v58, %v347_v60  ;;  %v451_v55 = vld [vmem:[#allocation2 + $0xaa8] sm:$0xff] }
 0x168   :  { %3644 = vmatprep.subr.bf16.mxu0 %v7950_v7  ;;  %3730 = vmatprep.subr.bf16.mxu1 %v7952_v11  ;;  %v8078_v7 = vcombine.high %v354_v0, %v362_v1  ;;  %v8080_v11 = vcombine.high %v355_v2, %v363_v4  ;;  %v459_v57 = vld [vmem:[#allocation2 + $0xae8] sm:$0xff] }
 0x16b   :  { %3645 = vmatpush1.bf16.msra.mxu0 %v7949_v13  ;;  %3731 = vmatpush1.bf16.msra.mxu1 %v7951_v14  ;;  %v8077_v13 = vcombine.low %v354_v0, %v362_v1  ;;  %v8079_v14 = vcombine.low %v355_v2, %v363_v4  ;;  %v8176_v1 = vcombine.high %v451_v55, %v459_v57  ;;  %v466_v2 = vld [vmem:[#allocation2 + $0xb20] sm:$0xff] }
 0x16c   :  { %3646 = vmatprep.subr.bf16.mxu0 %v7966_v15  ;;  %3732 = vmatprep.subr.bf16.mxu1 %v7968_v19  ;;  %v8094_v15 = vcombine.high %v370_v8, %v378_v9  ;;  %v8096_v19 = vcombine.high %v371_v10, %v379_v12 }
 0x16f   :  { %3647 = vmatpush1.bf16.msra.mxu0 %v7965_v21  ;;  %3733 = vmatpush1.bf16.msra.mxu1 %v7967_v22  ;;  %v8093_v21 = vcombine.low %v370_v8, %v378_v9  ;;  %v8095_v22 = vcombine.low %v371_v10, %v379_v12 }
 0x170   :  { %3648 = vmatprep.subr.bf16.mxu0 %v7982_v23  ;;  %3734 = vmatprep.subr.bf16.mxu1 %v7984_v27  ;;  %v8110_v23 = vcombine.high %v386_v16, %v394_v17  ;;  %v8112_v27 = vcombine.high %v387_v18, %v395_v20 }
 0x173   :  { %3649 = vmatpush1.bf16.msra.mxu0 %v7981_v29  ;;  %3735 = vmatpush1.bf16.msra.mxu1 %v7983_v30  ;;  %v10013_v29 = vld [vmem:[%s10182_s0] ss:$16 sps:$4 sm:$0xff]   ;;  %v8109_v30 = vcombine.low %v386_v16, %v394_v17 }
 0x174   :  { %3650 = vmatprep.subr.bf16.mxu0 %v7998_v31  ;;  %3736 = vmatprep.subr.bf16.mxu1 %v8000_v35  ;;  %v8111_v31 = vcombine.low %v387_v18, %v395_v20  ;;  %v426_v35 = vld [vmem:[#allocation2 + $0x9e0] sm:$0xff]  ;;  %v483_v20 = vld [vmem:[#allocation2 + $0xba8] sm:$0xff] }
 0x175   :  { %v8142_v42 = vcombine.high %v418_v34, %v426_v35  ;;  %v8141_v48 = vcombine.low %v418_v34, %v426_v35  ;;  %v490_v16 = vld [vmem:[#allocation2 + $0xbe0] sm:$0xff] }
 0x177   :  { %3651 = vmatpush1.bf16.msra.mxu0 %v7997_v37  ;;  %3737 = vmatpush1.bf16.msra.mxu1 %v7999_v38  ;;  %v419_v37 = vld [vmem:[#allocation2 + $0x9a8] sm:$0xff] }
 0x178   :  { %3652 = vmatprep.subr.bf16.mxu0 %v8014_v39  ;;  %3738 = vmatprep.subr.bf16.mxu1 %v8016_v43  ;;  %v427_v38 = vld [vmem:[#allocation2 + $0x9e8] sm:$0xff]  ;;  %v78_v39 = vlaneseq }
 0x179   :  { %v8144_v43 = vcombine.high %v419_v37, %v427_v38  ;;  %v8143_v49 = vcombine.low %v419_v37, %v427_v38 }
 0x17a   :  { %v10024_v47 = vshrl.u32 %v78_v39, 7 }
 0x17b   :  { %3653 = vmatpush1.bf16.msra.mxu0 %v8013_v56  ;;  %3739 = vmatpush1.bf16.msra.mxu1 %v8015_v45  ;;  %v442_v56 = vld [vmem:[#allocation2 + $0xa60] sm:$0xff]  ;;  %v435_v45 = vld [vmem:[#allocation2 + $0xa28] sm:$0xff] }
 0x17c   :  { %3654 = vmatprep.subr.bf16.mxu0 %v8030_v46  ;;  %3740 = vmatprep.subr.bf16.mxu1 %v8032_v50  ;;  %v443_v46 = vld [vmem:[#allocation2 + $0xa68] sm:$0xff]  ;;  %v8158_v50 = vcombine.high %v434_v44, %v442_v56  ;;  %v8157_v58 = vcombine.low %v434_v44, %v442_v56  ;;  %v10032_v60 = vsub.s32 2, %v10024_v47 }
 0x17d   :  { %v8160_v51 = vcombine.high %v435_v45, %v443_v46 }
 0x17f   :  { %3655 = vmatpush1.bf16.msra.mxu0 %v8029_v52  ;;  %3741 = vmatpush1.bf16.msra.mxu1 %v8031_v53  ;;  %v450_v52 = vld [vmem:[#allocation2 + $0xaa0] sm:$0xff] }
 0x180   :  { %3656 = vmatprep.subr.bf16.mxu0 %v8046_v54  ;;  %3742 = vmatprep.subr.bf16.mxu1 %v8048_v59  ;;  %v458_v53 = vld [vmem:[#allocation2 + $0xae0] sm:$0xff]  ;;  %v10027_v54 = vsub.s32 0, %v10024_v47 }
 0x181   :  { %v10029_v59 = vld [vmem:[#allocation5] sm:$0xff]  ;;  %v8174_v0 = vcombine.high %v450_v52, %v458_v53  ;;  %v8173_v9 = vcombine.low %v450_v52, %v458_v53 }
 0x182   :  { %v629_v4 = vrot.slane %v10029_v59, %v10027_v54 }
 0x183   :  { %3657 = vmatpush1.bf16.msra.mxu0 %v8045_v61  ;;  %3743 = vmatpush1.bf16.msra.mxu1 %v8047_v62  ;;  %v10035_v61 = vsub.s32 1, %v10024_v47  ;;  %v8159_v62 = vcombine.low %v435_v45, %v443_v46  ;;  %v499_v45 = vld [vmem:[#allocation2 + $0xc28] sm:$0xff] }
 0x184   :  { %3658 = vmatprep.subr.bf16.mxu0 %v8062_v63  ;;  %3744 = vmatprep.subr.bf16.mxu1 %v8064_v3  ;;  %v10038_v63 = vsub.s32 3, %v10024_v47  ;;  %v474_v3 = vld [vmem:[#allocation2 + $0xb60] sm:$0xff]  ;;  %v507_v46 = vld [vmem:[#allocation2 + $0xc68] sm:$0xff] }
 0x185   :  { %v633_v8 = vrot.slane %v10029_v59, %v10035_v61  ;;  %v8190_v12 = vcombine.high %v466_v2, %v474_v3  ;;  %v8189_v26 = vcombine.low %v466_v2, %v474_v3  ;;  %v522_v2 = vld [vmem:[#allocation2 + $0xce0] sm:$0xff] }
 0x186   :  { %v641_v10 = vrot.slane %v10029_v59, %v10038_v63 }
 0x187   :  { %3659 = vmatpush1.bf16.msra.mxu0 %v8061_v5  ;;  %3745 = vmatpush1.bf16.msra.mxu1 %v8063_v6  ;;  %v467_v5 = vld [vmem:[#allocation2 + $0xb28] sm:$0xff] }
 0x188   :  { %3660 = vmatprep.subr.bf16.mxu0 %v8078_v7  ;;  %3746 = vmatprep.subr.bf16.mxu1 %v8080_v11  ;;  %v475_v6 = vld [vmem:[#allocation2 + $0xb68] sm:$0xff]  ;;  %v637_v7 = vrot.slane %v10029_v59, %v10032_v60  ;;  %v8175_v11 = vcombine.low %v451_v55, %v459_v57 }
 0x18b   :  { %3661 = vmatpush1.bf16.msra.mxu0 %v8077_v13  ;;  %3747 = vmatpush1.bf16.msra.mxu1 %v8079_v14  ;;  %v8192_v14 = vcombine.high %v467_v5, %v475_v6 }
 0x18c   :  { %3673 = vmatprep.subr.bf16.mxu0 %v8094_v15  ;;  %3759 = vmatprep.subr.bf16.mxu1 %v8096_v19  ;;  %v482_v15 = vld [vmem:[#allocation2 + $0xba0] sm:$0xff] }
 0x18d   :  { %v8205_v38 = vcombine.low %v482_v15, %v490_v16 }
 0x18e   :  { %3663 = vmatmul.mubr.bf16.vlgmr.msra.gmra.mrb[8].mxu0 %v10013_v29  ;;  %3749 = vmatmul.mubr.bf16.vlgmr.msra.gmra.mrb[8].mxu1 %v10013_v29 }
 0x18f   :  { %3674 = vmatpush1.bf16.msra.mxu0 %v8093_v21  ;;  %3760 = vmatpush1.bf16.msra.mxu1 %v8095_v22  ;;  %v491_v21 = vld [vmem:[#allocation2 + $0xbe8] sm:$0xff] }
 0x190   :  { %3675 = vmatprep.subr.bf16.mxu0 %v8110_v23  ;;  %3761 = vmatprep.subr.bf16.mxu1 %v8112_v27  ;;  %v8191_v27 = vcombine.low %v467_v5, %v475_v6  ;;  %v8208_v39 = vcombine.high %v483_v20, %v491_v21  ;;  %v8207_v56 = vcombine.low %v483_v20, %v491_v21  ;;  %v523_v5 = vld [vmem:[#allocation2 + $0xce8] sm:$0xff] }
 0x191   :  { %3705 = vmatprep.mubr.bf16.mxu0 %v10020_v36  ;;  %3791 = vmatprep.mubr.bf16.mxu1 %v10020_v36  ;;  %v547_v20 = vld [vmem:[#allocation2 + $0xda8] sm:$0xff] }
 0x192   :  { %v555_v21 = vld [vmem:[#allocation2 + $0xde8] sm:$0xff] }
 0x193   :  { %3676 = vmatpush1.bf16.msra.mxu0 %v8109_v30  ;;  %3762 = vmatpush1.bf16.msra.mxu1 %v8111_v31 }
 0x194   :  { %3677 = vmatprep.subr.bf16.mxu0 %v8126_v32  ;;  %3763 = vmatprep.subr.bf16.mxu1 %v8128_v33  ;;  %v8206_v33 = vcombine.high %v482_v15, %v490_v16 }
 0x197   :  { %3678 = vmatpush1.bf16.msra.mxu0 %v8125_v40  ;;  %3764 = vmatpush1.bf16.msra.mxu1 %v8127_v41  ;;  %v498_v40 = vld [vmem:[#allocation2 + $0xc20] sm:$0xff] }
 0x198   :  { %3679 = vmatprep.subr.bf16.mxu0 %v8142_v42  ;;  %3765 = vmatprep.subr.bf16.mxu1 %v8144_v43  ;;  %v506_v41 = vld [vmem:[#allocation2 + $0xc60] sm:$0xff] }
 0x199   :  { %v8222_v57 = vcombine.high %v498_v40, %v506_v41  ;;  %v8221_v6 = vcombine.low %v498_v40, %v506_v41 }
 0x19b   :  { %3680 = vmatpush1.bf16.msra.mxu0 %v8141_v48  ;;  %3766 = vmatpush1.bf16.msra.mxu1 %v8143_v49 }
 0x19c   :  { %3681 = vmatprep.subr.bf16.mxu0 %v8158_v50  ;;  %3767 = vmatprep.subr.bf16.mxu1 %v8160_v51 }
 0x19f   :  { %3682 = vmatpush1.bf16.msra.mxu0 %v8157_v58  ;;  %3768 = vmatpush1.bf16.msra.mxu1 %v8159_v62 }
 0x1a0   :  { %3683 = vmatprep.subr.bf16.mxu0 %v8174_v0  ;;  %3769 = vmatprep.subr.bf16.mxu1 %v8176_v1  ;;  %v8224_v0 = vcombine.high %v499_v45, %v507_v46  ;;  %v514_v1 = vld [vmem:[#allocation2 + $0xca0] sm:$0xff] }
 0x1a1   :  { %v3363_v13 = vpop.f32.mrb[0].mxu0  ;;  %v3449_v18 = vpop.f32.mrb[0].mxu1 }
 0x1a2   :  { %v8853_v17 = vadd.f32 %v3363_v13, %v629_v4  ;;  %v3365_v19 = vpop.f32.mrb[1].mxu0  ;;  %v8857_v22 = vadd.f32 %v3449_v18, %v637_v7  ;;  %v3451_v24 = vpop.f32.mrb[1].mxu1  ;;  %v539_v13 = vld [vmem:[#allocation2 + $0xd68] sm:$0xff]  ;;  %v546_v18 = vld [vmem:[#allocation2 + $0xda0] sm:$0xff] }
 0x1a3   :  { %v8854_v23 = vadd.f32 %v3365_v19, %v633_v8  ;;  %v3367_v25 = vpop.f32.mrb[2].mxu0  ;;  %3684 = vmatpush1.bf16.msra.mxu0 %v8173_v9  ;;  %v8858_v28 = vadd.f32 %v3451_v24, %v641_v10  ;;  %v3453_v31 = vpop.f32.mrb[2].mxu1  ;;  %3770 = vmatpush1.bf16.msra.mxu1 %v8175_v11  ;;  %v538_v11 = vld [vmem:[#allocation2 + $0xd60] sm:$0xff] }
 0x1a4   :  { %v8855_v30 = vadd.f32 %v3367_v25, %v629_v4  ;;  %v3369_v32 = vpop.f32.mrb[3].mxu0  ;;  %3685 = vmatprep.subr.bf16.mxu0 %v8190_v12  ;;  %v8859_v34 = vadd.f32 %v3453_v31, %v637_v7  ;;  %v3455_v37 = vpop.f32.mrb[3].mxu1  ;;  %3771 = vmatprep.subr.bf16.mxu1 %v8192_v14  ;;  %v3974_v42 = vmax.f32 %v8853_v17, 0.0  ;;  %v3976_v48 = vmax.f32 %v8857_v22, 0.0  ;;  %v515_v4 = vld [vmem:[#allocation2 + $0xca8] sm:$0xff]  ;;  %v554_v19 = vld [vmem:[#allocation2 + $0xde0] sm:$0xff] }
 0x1a5   :  { %v8856_v35 = vadd.f32 %v3369_v32, %v633_v8  ;;  %v8860_v44 = vadd.f32 %v3455_v37, %v641_v10  ;;  %v3975_v49 = vmax.f32 %v8854_v23, 0.0  ;;  %v3977_v52 = vmax.f32 %v8858_v28, 0.0  ;;  %v530_v10 = vld [vmem:[#allocation2 + $0xd20] sm:$0xff]  ;;  %v531_v12 = vld [vmem:[#allocation2 + $0xd28] sm:$0xff] }
 0x1a6   :  { %v3990_v43 = vmax.f32 %v8855_v30, 0.0  ;;  %v3992_v50 = vmax.f32 %v8859_v34, 0.0  ;;  %v8223_v7 = vcombine.low %v499_v45, %v507_v46  ;;  %v8238_v8 = vcombine.high %v514_v1, %v522_v2  ;;  %v563_v28 = vld [vmem:[#allocation2 + $0xe28] sm:$0xff]  ;;  %v586_v37 = vld [vmem:[#allocation2 + $0xee0] sm:$0xff] }
 0x1a7   :  { %v3991_v51 = vmax.f32 %v8856_v35, 0.0  ;;  %3686 = vmatpush1.bf16.msra.mxu0 %v8189_v26  ;;  %v3993_v55 = vmax.f32 %v8860_v44, 0.0  ;;  %3772 = vmatpush1.bf16.msra.mxu1 %v8191_v27  ;;  %v8240_v9 = vcombine.high %v515_v4, %v523_v5  ;;  %v8237_v14 = vcombine.low %v514_v1, %v522_v2  ;;  %v562_v26 = vld [vmem:[#allocation2 + $0xe20] sm:$0xff]  ;;  %v571_v30 = vld [vmem:[#allocation2 + $0xe68] sm:$0xff] }
 0x1a8   :  { %v10048_v53 = vpack.c.bf16 %v3990_v43, %v3974_v42  ;;  %3687 = vmatprep.subr.bf16.mxu0 %v8206_v33  ;;  %v10050_v58 = vpack.c.bf16 %v3992_v50, %v3976_v48  ;;  %3773 = vmatprep.subr.bf16.mxu1 %v8208_v39  ;;  %v8239_v15 = vcombine.low %v515_v4, %v523_v5  ;;  %v570_v27 = vld [vmem:[#allocation2 + $0xe60] sm:$0xff]  ;;  %v587_v39 = vld [vmem:[#allocation2 + $0xee8] sm:$0xff] }
 0x1a9   :  { %v10052_v62 = vpack.c.bf16 %v3991_v51, %v3975_v49  ;;  %v10054_v3 = vpack.c.bf16 %v3993_v55, %v3977_v52  ;;  %v8254_v16 = vcombine.high %v530_v10, %v538_v11  ;;  %v8256_v17 = vcombine.high %v531_v12, %v539_v13  ;;  %v578_v35 = vld [vmem:[#allocation2 + $0xea0] sm:$0xff]  ;;  %v595_v45 = vld [vmem:[#allocation2 + $0xf28] sm:$0xff] }
 0x1aa   :  { %v8253_v22 = vcombine.low %v530_v10, %v538_v11  ;;  %v8255_v23 = vcombine.low %v531_v12, %v539_v13  ;;  %v8270_v24 = vcombine.high %v546_v18, %v554_v19  ;;  %v8272_v25 = vcombine.high %v547_v20, %v555_v21  ;;  %v594_v44 = vld [vmem:[#allocation2 + $0xf20] sm:$0xff]  ;;  %v603_v46 = vld [vmem:[#allocation2 + $0xf68] sm:$0xff] }
 0x1ab   :  { %3688 = vmatpush1.bf16.msra.mxu0 %v8205_v38  ;;  %3774 = vmatpush1.bf16.msra.mxu1 %v8207_v56  ;;  %v8269_v31 = vcombine.low %v546_v18, %v554_v19  ;;  %v8271_v32 = vcombine.low %v547_v20, %v555_v21  ;;  %v8286_v33 = vcombine.high %v562_v26, %v570_v27  ;;  %v579_v38 = vld [vmem:[#allocation2 + $0xea8] sm:$0xff]  ;;  %v602_v56 = vld [vmem:[#allocation2 + $0xf60] sm:$0xff] }
 0x1ac   :  { %3689 = vmatprep.subr.bf16.mxu0 %v8222_v57  ;;  %3775 = vmatprep.subr.bf16.mxu1 %v8224_v0  ;;  %v8288_v34 = vcombine.high %v563_v28, %v571_v30  ;;  %v8285_v40 = vcombine.low %v562_v26, %v570_v27  ;;  %v8287_v41 = vcombine.low %v563_v28, %v571_v30  ;;  %v610_v52 = vld [vmem:[#allocation2 + $0xfa0] sm:$0xff]  ;;  %v611_v57 = vld [vmem:[#allocation2 + $0xfa8] sm:$0xff]  ;;  %v157_v26 = vld [vmem:[#allocation2 + $0x178] sm:$0xff] }
 0x1ad   :  { %v8302_v42 = vcombine.high %v578_v35, %v586_v37  ;;  %v8304_v43 = vcombine.high %v579_v38, %v587_v39  ;;  %v8301_v48 = vcombine.low %v578_v35, %v586_v37  ;;  %v8303_v49 = vcombine.low %v579_v38, %v587_v39  ;;  %v618_v55 = vld [vmem:[#allocation2 + $0xfe0] sm:$0xff]  ;;  %v619_v0 = vld [vmem:[#allocation2 + $0xfe8] sm:$0xff]  ;;  %v165_v35 = vld [vmem:[#allocation2 + $0x1b8] sm:$0xff] }
 0x1ae   :  { %v8318_v50 = vcombine.high %v594_v44, %v602_v56  ;;  %v8320_v51 = vcombine.high %v595_v45, %v603_v46  ;;  %v8317_v1 = vcombine.low %v594_v44, %v602_v56  ;;  %v8319_v2 = vcombine.low %v595_v45, %v603_v46  ;;  %v173_v37 = vld [vmem:[#allocation2 + $0x1f8] sm:$0xff] }
 0x1af   :  { %3690 = vmatpush1.bf16.msra.mxu0 %v8221_v6  ;;  %3776 = vmatpush1.bf16.msra.mxu1 %v8223_v7  ;;  %v8334_v4 = vcombine.high %v610_v52, %v618_v55  ;;  %v8336_v5 = vcombine.high %v611_v57, %v619_v0  ;;  %v116_v6 = vld [vmem:[#allocation2 + $0x30] sm:$0xff]  ;;  %v8333_v10 = vcombine.low %v610_v52, %v618_v55  ;;  %v181_v44 = vld [vmem:[#allocation2 + $0x238] sm:$0xff] }
 0x1b0   :  { %3691 = vmatprep.subr.bf16.mxu0 %v8238_v8  ;;  %3777 = vmatprep.subr.bf16.mxu1 %v8240_v9  ;;  %v124_v7 = vld [vmem:[#allocation2 + $0x70] sm:$0xff]  ;;  %v117_v8 = vld [vmem:[#allocation2 + $0x38] sm:$0xff]  ;;  %v8335_v11 = vcombine.low %v611_v57, %v619_v0  ;;  %v7891_v46 = vcombine.low %v165_v35, %v173_v37 }
 0x1b1   :  { %v125_v9 = vld [vmem:[#allocation2 + $0x78] sm:$0xff]  ;;  %v7842_v12 = vcombine.high %v116_v6, %v124_v7  ;;  %v7841_v18 = vcombine.low %v116_v6, %v124_v7 }
 0x1b2   :  { %v7844_v13 = vcombine.high %v117_v8, %v125_v9  ;;  %v7843_v19 = vcombine.low %v117_v8, %v125_v9  ;;  %v189_v56 = vld [vmem:[#allocation2 + $0x278] sm:$0xff] }
 0x1b3   :  { %3692 = vmatpush1.bf16.msra.mxu0 %v8237_v14  ;;  %3778 = vmatpush1.bf16.msra.mxu1 %v8239_v15  ;;  %v132_v14 = vld [vmem:[#allocation2 + $0xb0] sm:$0xff]  ;;  %v197_v52 = vld [vmem:[#allocation2 + $0x2b8] sm:$0xff]  ;;  %v7907_v0 = vcombine.low %v181_v44, %v189_v56 }
 0x1b4   :  { %3693 = vmatprep.subr.bf16.mxu0 %v8254_v16  ;;  %3779 = vmatprep.subr.bf16.mxu1 %v8256_v17  ;;  %v140_v15 = vld [vmem:[#allocation2 + $0xf0] sm:$0xff]  ;;  %v133_v16 = vld [vmem:[#allocation2 + $0xb8] sm:$0xff] }
 0x1b5   :  { %v141_v17 = vld [vmem:[#allocation2 + $0xf8] sm:$0xff]  ;;  %v7858_v20 = vcombine.high %v132_v14, %v140_v15  ;;  %v7857_v27 = vcombine.low %v132_v14, %v140_v15 }
 0x1b6   :  { %v7860_v21 = vcombine.high %v133_v16, %v141_v17  ;;  %v7859_v28 = vcombine.low %v133_v16, %v141_v17  ;;  %v205_v55 = vld [vmem:[#allocation2 + $0x2f8] sm:$0xff] }
 0x1b7   :  { %3694 = vmatpush1.bf16.msra.mxu0 %v8253_v22  ;;  %3780 = vmatpush1.bf16.msra.mxu1 %v8255_v23  ;;  %v148_v22 = vld [vmem:[#allocation2 + $0x130] sm:$0xff]  ;;  %v213_v6 = vld [vmem:[#allocation2 + $0x338] sm:$0xff]  ;;  %v7923_v9 = vcombine.low %v197_v52, %v205_v55 }
 0x1b8   :  { %3695 = vmatprep.subr.bf16.mxu0 %v8270_v24  ;;  %3781 = vmatprep.subr.bf16.mxu1 %v8272_v25  ;;  %v156_v23 = vld [vmem:[#allocation2 + $0x170] sm:$0xff]  ;;  %v10059_v24 = vld [vmem:[%s10182_s0 + $0x8] ss:$16 sps:$4 sm:$0xff]  }
 0x1b9   :  { %v149_v25 = vld [vmem:[#allocation2 + $0x138] sm:$0xff]  ;;  %v7874_v30 = vcombine.high %v148_v22, %v156_v23  ;;  %v7873_v38 = vcombine.low %v148_v22, %v156_v23 }
 0x1ba   :  { %v7875_v39 = vcombine.low %v149_v25, %v157_v26  ;;  %v221_v7 = vld [vmem:[#allocation2 + $0x378] sm:$0xff] }
 0x1bb   :  { %3696 = vmatpush1.bf16.msra.mxu0 %v8269_v31  ;;  %3782 = vmatpush1.bf16.msra.mxu1 %v8271_v32  ;;  %v7876_v31 = vcombine.high %v149_v25, %v157_v26  ;;  %v164_v32 = vld [vmem:[#allocation2 + $0x1b0] sm:$0xff]  ;;  %v229_v14 = vld [vmem:[#allocation2 + $0x3b8] sm:$0xff]  ;;  %v7939_v17 = vcombine.low %v213_v6, %v221_v7 }
 0x1bc   :  { %3697 = vmatprep.subr.bf16.mxu0 %v8286_v33  ;;  %3783 = vmatprep.subr.bf16.mxu1 %v8288_v34  ;;  %v172_v33 = vld [vmem:[#allocation2 + $0x1f0] sm:$0xff]  ;;  %v237_v15 = vld [vmem:[#allocation2 + $0x3f8] sm:$0xff] }
 0x1bd   :  { %v9765_v34 = vld [vmem:[%s10182_s0 + $0x4] ss:$16 sps:$4 sm:$0xff]   ;;  %v7889_v45 = vcombine.low %v164_v32, %v172_v33  ;;  %v245_v22 = vld [vmem:[#allocation2 + $0x438] sm:$0xff]  ;;  %v7955_v26 = vcombine.low %v229_v14, %v237_v15  ;;  %s9892_s0 = smov [#allocation10]  }
 0x1be   :  { %v253_v23 = vld [vmem:[#allocation2 + $0x478] sm:$0xff]  ;;  %s7811_s13 = sshll.u32 %s9892_s0, 4  ;;  %s7812_s13 = int_to_ptr.vmem [resolvable:$true] %s7811_s13 }
 0x1bf   :  { %3698 = vmatpush1.bf16.msra.mxu0 %v8285_v40  ;;  %3784 = vmatpush1.bf16.msra.mxu1 %v8287_v41  ;;  %v7890_v40 = vcombine.high %v164_v32, %v172_v33  ;;  %v7892_v41 = vcombine.high %v165_v35, %v173_v37  ;;  %v261_v32 = vld [vmem:[#allocation2 + $0x4b8] sm:$0xff]  ;;  %v7971_v35 = vcombine.low %v245_v22, %v253_v23  ;;  %s9854_s14 = scalar_lea.vmem %s7812_s13, 1024  ;;  %p9859_p5 = scmp.lt.s32.totalorder %s7812_s13, %s7812_s13 }
 0x1c0   :  { %3699 = vmatprep.subr.bf16.mxu0 %v8302_v42  ;;  %3785 = vmatprep.subr.bf16.mxu1 %v8304_v43  ;;  %v180_v42 = vld [vmem:[#allocation2 + $0x230] sm:$0xff]  ;;  %v269_v33 = vld [vmem:[#allocation2 + $0x4f8] sm:$0xff]  ;;  %p9855_p4 = scmp.ne.s32.totalorder %s7812_s13, %s9854_s14  ;;  %p9860_p6 = scmp.lt.s32.totalorder %s9854_s14, %s9854_s14 }
 0x1c1   :  { %v188_v43 = vld [vmem:[#allocation2 + $0x270] sm:$0xff] }
 0x1c2   :  { %v7905_v57 = vcombine.low %v180_v42, %v188_v43  ;;  %p9861_p7 = por %p9860_p6, %p9859_p5 }
 0x1c3   :  { %3700 = vmatpush1.bf16.msra.mxu0 %v8301_v48  ;;  %3786 = vmatpush1.bf16.msra.mxu1 %v8303_v49  ;;  %v7906_v48 = vcombine.high %v180_v42, %v188_v43  ;;  %v7908_v49 = vcombine.high %v181_v44, %v189_v56  ;;  %v285_v42 = vld [vmem:[#allocation2 + $0x578] sm:$0xff]  ;;  %v7987_v44 = vcombine.low %v261_v32, %v269_v33 }
 0x1c4   :  { %3701 = vmatprep.subr.bf16.mxu0 %v8318_v50  ;;  %3787 = vmatprep.subr.bf16.mxu1 %v8320_v51  ;;  %v196_v50 = vld [vmem:[#allocation2 + $0x2b0] sm:$0xff]  ;;  %p9862_p8 = pnand %p9861_p7, %p9855_p4 }
 0x1c5   :  { %v204_v51 = vld [vmem:[#allocation2 + $0x2f0] sm:$0xff] }
 0x1c6   :  { %v7921_v8 = vcombine.low %v196_v50, %v204_v51 }
 0x1c7   :  { %3702 = vmatpush1.bf16.msra.mxu0 %v8317_v1  ;;  %3788 = vmatpush1.bf16.msra.mxu1 %v8319_v2  ;;  %v7922_v1 = vcombine.high %v196_v50, %v204_v51  ;;  %v7924_v2 = vcombine.high %v197_v52, %v205_v55  ;;  %v301_v50 = vld [vmem:[#allocation2 + $0x5f8] sm:$0xff] }
 0x1c8   :  { %3703 = vmatprep.subr.bf16.mxu0 %v8334_v4  ;;  %3789 = vmatprep.subr.bf16.mxu1 %v8336_v5  ;;  %v212_v4 = vld [vmem:[#allocation2 + $0x330] sm:$0xff] }
 0x1c9   :  { %v220_v5 = vld [vmem:[#allocation2 + $0x370] sm:$0xff] }
 0x1ca   :  { %v7937_v16 = vcombine.low %v212_v4, %v220_v5 }
 0x1cb   :  { %3704 = vmatpush1.bf16.msra.mxu0 %v8333_v10  ;;  %3790 = vmatpush1.bf16.msra.mxu1 %v8335_v11  ;;  %v7938_v10 = vcombine.high %v212_v4, %v220_v5  ;;  %v7940_v11 = vcombine.high %v213_v6, %v221_v7  ;;  %v317_v4 = vld [vmem:[#allocation2 + $0x678] sm:$0xff] }
 0x1cc   :  { %3802 = vmatprep.subr.bf16.mxu0 %v7842_v12  ;;  %3888 = vmatprep.subr.bf16.mxu1 %v7844_v13  ;;  %v228_v12 = vld [vmem:[#allocation2 + $0x3b0] sm:$0xff] }
 0x1cd   :  { %v236_v13 = vld [vmem:[#allocation2 + $0x3f0] sm:$0xff] }
 0x1ce   :  { %3706 = vmatmul.mubr.bf16.vlgmr.msra.gmra.mrb[8].mxu0 %v10059_v24  ;;  %3792 = vmatmul.mubr.bf16.vlgmr.msra.gmra.mrb[8].mxu1 %v10059_v24  ;;  %v7953_v25 = vcombine.low %v228_v12, %v236_v13 }
 0x1cf   :  { %3803 = vmatpush1.bf16.msra.mxu0 %v7841_v18  ;;  %3889 = vmatpush1.bf16.msra.mxu1 %v7843_v19  ;;  %v7954_v18 = vcombine.high %v228_v12, %v236_v13  ;;  %v7956_v19 = vcombine.high %v229_v14, %v237_v15  ;;  %v333_v12 = vld [vmem:[#allocation2 + $0x6f8] sm:$0xff] }
 0x1d0   :  { %3804 = vmatprep.subr.bf16.mxu0 %v7858_v20  ;;  %3890 = vmatprep.subr.bf16.mxu1 %v7860_v21  ;;  %v244_v20 = vld [vmem:[#allocation2 + $0x430] sm:$0xff] }
 0x1d1   :  { %3834 = vmatprep.mubr.bf16.mxu0 %v9765_v34  ;;  %3920 = vmatprep.mubr.bf16.mxu1 %v9765_v34  ;;  %v252_v21 = vld [vmem:[#allocation2 + $0x470] sm:$0xff] }
 0x1d2   :  { %v7969_v34 = vcombine.low %v244_v20, %v252_v21 }
 0x1d3   :  { %3805 = vmatpush1.bf16.msra.mxu0 %v7857_v27  ;;  %3891 = vmatpush1.bf16.msra.mxu1 %v7859_v28  ;;  %v7970_v27 = vcombine.high %v244_v20, %v252_v21  ;;  %v7972_v28 = vcombine.high %v245_v22, %v253_v23  ;;  %v349_v20 = vld [vmem:[#allocation2 + $0x778] sm:$0xff] }
 0x1d4   :  { %3806 = vmatprep.subr.bf16.mxu0 %v7874_v30  ;;  %3892 = vmatprep.subr.bf16.mxu1 %v7876_v31  ;;  %v260_v30 = vld [vmem:[#allocation2 + $0x4b0] sm:$0xff] }
 0x1d5   :  { %v268_v31 = vld [vmem:[#allocation2 + $0x4f0] sm:$0xff] }
 0x1d6   :  { %v7986_v37 = vcombine.high %v260_v30, %v268_v31  ;;  %v7985_v43 = vcombine.low %v260_v30, %v268_v31  ;;  %v365_v30 = vld [vmem:[#allocation2 + $0x7f8] sm:$0xff] }
 0x1d7   :  { %3807 = vmatpush1.bf16.msra.mxu0 %v7873_v38  ;;  %3893 = vmatpush1.bf16.msra.mxu1 %v7875_v39  ;;  %v7988_v38 = vcombine.high %v261_v32, %v269_v33  ;;  %v276_v39 = vld [vmem:[#allocation2 + $0x530] sm:$0xff] }
 0x1d8   :  { %3808 = vmatprep.subr.bf16.mxu0 %v7890_v40  ;;  %3894 = vmatprep.subr.bf16.mxu1 %v7892_v41  ;;  %v284_v40 = vld [vmem:[#allocation2 + $0x570] sm:$0xff]  ;;  %v277_v41 = vld [vmem:[#allocation2 + $0x538] sm:$0xff] }
 0x1d9   :  { %v8002_v56 = vcombine.high %v276_v39, %v284_v40  ;;  %v8001_v51 = vcombine.low %v276_v39, %v284_v40  ;;  %v8003_v52 = vcombine.low %v277_v41, %v285_v42  ;;  %v381_v39 = vld [vmem:[#allocation2 + $0x878] sm:$0xff] }
 0x1db   :  { %3809 = vmatpush1.bf16.msra.mxu0 %v7889_v45  ;;  %3895 = vmatpush1.bf16.msra.mxu1 %v7891_v46  ;;  %v8004_v45 = vcombine.high %v277_v41, %v285_v42  ;;  %v292_v46 = vld [vmem:[#allocation2 + $0x5b0] sm:$0xff] }
 0x1dc   :  { %3810 = vmatprep.subr.bf16.mxu0 %v7906_v48  ;;  %3896 = vmatprep.subr.bf16.mxu1 %v7908_v49  ;;  %v300_v48 = vld [vmem:[#allocation2 + $0x5f0] sm:$0xff]  ;;  %v293_v49 = vld [vmem:[#allocation2 + $0x5b8] sm:$0xff] }
 0x1dd   :  { %v8018_v55 = vcombine.high %v292_v46, %v300_v48  ;;  %v8017_v5 = vcombine.low %v292_v46, %v300_v48  ;;  %v8019_v6 = vcombine.low %v293_v49, %v301_v50  ;;  %v397_v46 = vld [vmem:[#allocation2 + $0x8f8] sm:$0xff] }
 0x1df   :  { %3811 = vmatpush1.bf16.msra.mxu0 %v7905_v57  ;;  %3897 = vmatpush1.bf16.msra.mxu1 %v7907_v0  ;;  %v8020_v57 = vcombine.high %v293_v49, %v301_v50  ;;  %v308_v0 = vld [vmem:[#allocation2 + $0x630] sm:$0xff] }
 0x1e0   :  { %3812 = vmatprep.subr.bf16.mxu0 %v7922_v1  ;;  %3898 = vmatprep.subr.bf16.mxu1 %v7924_v2  ;;  %v316_v1 = vld [vmem:[#allocation2 + $0x670] sm:$0xff]  ;;  %v309_v2 = vld [vmem:[#allocation2 + $0x638] sm:$0xff] }
 0x1e1   :  { %v8034_v7 = vcombine.high %v308_v0, %v316_v1  ;;  %v8033_v13 = vcombine.low %v308_v0, %v316_v1  ;;  %v8035_v14 = vcombine.low %v309_v2, %v317_v4  ;;  %v413_v0 = vld [vmem:[#allocation2 + $0x978] sm:$0xff] }
 0x1e3   :  { %3813 = vmatpush1.bf16.msra.mxu0 %v7921_v8  ;;  %3899 = vmatpush1.bf16.msra.mxu1 %v7923_v9  ;;  %v8036_v8 = vcombine.high %v309_v2, %v317_v4  ;;  %v324_v9 = vld [vmem:[#allocation2 + $0x6b0] sm:$0xff] }
 0x1e4   :  { %3814 = vmatprep.subr.bf16.mxu0 %v7938_v10  ;;  %3900 = vmatprep.subr.bf16.mxu1 %v7940_v11  ;;  %v332_v10 = vld [vmem:[#allocation2 + $0x6f0] sm:$0xff]  ;;  %v325_v11 = vld [vmem:[#allocation2 + $0x6b8] sm:$0xff] }
 0x1e5   :  { %v8050_v15 = vcombine.high %v324_v9, %v332_v10  ;;  %v8049_v21 = vcombine.low %v324_v9, %v332_v10  ;;  %v8051_v22 = vcombine.low %v325_v11, %v333_v12  ;;  %v429_v9 = vld [vmem:[#allocation2 + $0x9f8] sm:$0xff] }
 0x1e7   :  { %3815 = vmatpush1.bf16.msra.mxu0 %v7937_v16  ;;  %3901 = vmatpush1.bf16.msra.mxu1 %v7939_v17  ;;  %v8052_v16 = vcombine.high %v325_v11, %v333_v12  ;;  %v340_v17 = vld [vmem:[#allocation2 + $0x730] sm:$0xff] }
 0x1e8   :  { %3816 = vmatprep.subr.bf16.mxu0 %v7954_v18  ;;  %3902 = vmatprep.subr.bf16.mxu1 %v7956_v19  ;;  %v348_v18 = vld [vmem:[#allocation2 + $0x770] sm:$0xff]  ;;  %v341_v19 = vld [vmem:[#allocation2 + $0x738] sm:$0xff] }
 0x1e9   :  { %v8066_v23 = vcombine.high %v340_v17, %v348_v18  ;;  %v8065_v31 = vcombine.low %v340_v17, %v348_v18  ;;  %v8067_v32 = vcombine.low %v341_v19, %v349_v20 }
 0x1eb   :  { %3817 = vmatpush1.bf16.msra.mxu0 %v7953_v25  ;;  %3903 = vmatpush1.bf16.msra.mxu1 %v7955_v26  ;;  %v8068_v25 = vcombine.high %v341_v19, %v349_v20  ;;  %v356_v26 = vld [vmem:[#allocation2 + $0x7b0] sm:$0xff] }
 0x1ec   :  { %3818 = vmatprep.subr.bf16.mxu0 %v7970_v27  ;;  %3904 = vmatprep.subr.bf16.mxu1 %v7972_v28  ;;  %v364_v27 = vld [vmem:[#allocation2 + $0x7f0] sm:$0xff]  ;;  %v357_v28 = vld [vmem:[#allocation2 + $0x7b8] sm:$0xff] }
 0x1ed   :  { %v8082_v33 = vcombine.high %v356_v26, %v364_v27  ;;  %v8081_v40 = vcombine.low %v356_v26, %v364_v27  ;;  %v8083_v41 = vcombine.low %v357_v28, %v365_v30  ;;  %v452_v20 = vld [vmem:[#allocation2 + $0xab0] sm:$0xff]  ;;  %v652_v27 = vsub.s32 6, %v10024_v47 }
 0x1ef   :  { %3819 = vmatpush1.bf16.msra.mxu0 %v7969_v34  ;;  %3905 = vmatpush1.bf16.msra.mxu1 %v7971_v35  ;;  %v8084_v34 = vcombine.high %v357_v28, %v365_v30  ;;  %v372_v35 = vld [vmem:[#allocation2 + $0x830] sm:$0xff]  ;;  %v648_v28 = vsub.s32 5, %v10024_v47 }
 0x1f0   :  { %3820 = vmatprep.subr.bf16.mxu0 %v7986_v37  ;;  %3906 = vmatprep.subr.bf16.mxu1 %v7988_v38  ;;  %v380_v37 = vld [vmem:[#allocation2 + $0x870] sm:$0xff]  ;;  %v373_v38 = vld [vmem:[#allocation2 + $0x838] sm:$0xff] }
 0x1f1   :  { %v8098_v42 = vcombine.high %v372_v35, %v380_v37  ;;  %v8097_v48 = vcombine.low %v372_v35, %v380_v37  ;;  %v8099_v49 = vcombine.low %v373_v38, %v381_v39  ;;  %v476_v35 = vld [vmem:[#allocation2 + $0xb70] sm:$0xff] }
 0x1f3   :  { %3821 = vmatpush1.bf16.msra.mxu0 %v7985_v43  ;;  %3907 = vmatpush1.bf16.msra.mxu1 %v7987_v44  ;;  %v8100_v43 = vcombine.high %v373_v38, %v381_v39  ;;  %v388_v44 = vld [vmem:[#allocation2 + $0x8b0] sm:$0xff]  ;;  %v469_v38 = vld [vmem:[#allocation2 + $0xb38] sm:$0xff] }
 0x1f4   :  { %3822 = vmatprep.subr.bf16.mxu0 %v8002_v56  ;;  %3908 = vmatprep.subr.bf16.mxu1 %v8004_v45  ;;  %v396_v56 = vld [vmem:[#allocation2 + $0x8f0] sm:$0xff]  ;;  %v389_v45 = vld [vmem:[#allocation2 + $0x8b8] sm:$0xff] }
 0x1f5   :  { %v8114_v50 = vcombine.high %v388_v44, %v396_v56  ;;  %v8113_v1 = vcombine.low %v388_v44, %v396_v56  ;;  %v8115_v2 = vcombine.low %v389_v45, %v397_v46  ;;  %v477_v39 = vld [vmem:[#allocation2 + $0xb78] sm:$0xff] }
 0x1f7   :  { %3823 = vmatpush1.bf16.msra.mxu0 %v8001_v51  ;;  %3909 = vmatpush1.bf16.msra.mxu1 %v8003_v52  ;;  %v8116_v51 = vcombine.high %v389_v45, %v397_v46  ;;  %v404_v52 = vld [vmem:[#allocation2 + $0x930] sm:$0xff]  ;;  %v8196_v46 = vcombine.high %v469_v38, %v477_v39 }
 0x1f8   :  { %3824 = vmatprep.subr.bf16.mxu0 %v8018_v55  ;;  %3910 = vmatprep.subr.bf16.mxu1 %v8020_v57  ;;  %v412_v55 = vld [vmem:[#allocation2 + $0x970] sm:$0xff]  ;;  %v405_v57 = vld [vmem:[#allocation2 + $0x938] sm:$0xff] }
 0x1f9   :  { %v8130_v4 = vcombine.high %v404_v52, %v412_v55  ;;  %v8129_v10 = vcombine.low %v404_v52, %v412_v55  ;;  %v485_v55 = vld [vmem:[#allocation2 + $0xbb8] sm:$0xff] }
 0x1fb   :  { %3825 = vmatpush1.bf16.msra.mxu0 %v8017_v5  ;;  %3911 = vmatpush1.bf16.msra.mxu1 %v8019_v6  ;;  %v8132_v5 = vcombine.high %v405_v57, %v413_v0  ;;  %v420_v6 = vld [vmem:[#allocation2 + $0x9b0] sm:$0xff] }
 0x1fc   :  { %3826 = vmatprep.subr.bf16.mxu0 %v8034_v7  ;;  %3912 = vmatprep.subr.bf16.mxu1 %v8036_v8  ;;  %v428_v7 = vld [vmem:[#allocation2 + $0x9f0] sm:$0xff]  ;;  %v421_v8 = vld [vmem:[#allocation2 + $0x9b8] sm:$0xff] }
 0x1fd   :  { %v8146_v11 = vcombine.high %v420_v6, %v428_v7  ;;  %v8148_v12 = vcombine.high %v421_v8, %v429_v9  ;;  %v8145_v17 = vcombine.low %v420_v6, %v428_v7  ;;  %v8147_v18 = vcombine.low %v421_v8, %v429_v9 }
 0x1ff   :  { %3827 = vmatpush1.bf16.msra.mxu0 %v8033_v13  ;;  %3913 = vmatpush1.bf16.msra.mxu1 %v8035_v14  ;;  %v436_v13 = vld [vmem:[#allocation2 + $0xa30] sm:$0xff] }
 0x200   :  { %3828 = vmatprep.subr.bf16.mxu0 %v8050_v15  ;;  %3914 = vmatprep.subr.bf16.mxu1 %v8052_v16  ;;  %v444_v14 = vld [vmem:[#allocation2 + $0xa70] sm:$0xff]  ;;  %v437_v15 = vld [vmem:[#allocation2 + $0xa38] sm:$0xff] }
 0x201   :  { %v445_v16 = vld [vmem:[#allocation2 + $0xa78] sm:$0xff]  ;;  %v8162_v19 = vcombine.high %v436_v13, %v444_v14  ;;  %v8161_v26 = vcombine.low %v436_v13, %v444_v14 }
 0x202   :  { %v8163_v30 = vcombine.low %v437_v15, %v445_v16 }
 0x203   :  { %3829 = vmatpush1.bf16.msra.mxu0 %v8049_v21  ;;  %3915 = vmatpush1.bf16.msra.mxu1 %v8051_v22  ;;  %v460_v21 = vld [vmem:[#allocation2 + $0xaf0] sm:$0xff]  ;;  %v644_v22 = vsub.s32 4, %v10024_v47 }
 0x204   :  { %3830 = vmatprep.subr.bf16.mxu0 %v8066_v23  ;;  %3916 = vmatprep.subr.bf16.mxu1 %v8068_v25  ;;  %v453_v23 = vld [vmem:[#allocation2 + $0xab8] sm:$0xff] }
 0x205   :  { %v461_v25 = vld [vmem:[#allocation2 + $0xaf8] sm:$0xff]  ;;  %v645_v37 = vrot.slane %v10029_v59, %v644_v22 }
 0x206   :  { %v8179_v44 = vcombine.low %v453_v23, %v461_v25 }
 0x207   :  { %3831 = vmatpush1.bf16.msra.mxu0 %v8065_v31  ;;  %3917 = vmatpush1.bf16.msra.mxu1 %v8067_v32  ;;  %v656_v31 = vsub.s32 7, %v10024_v47  ;;  %v8178_v32 = vcombine.high %v452_v20, %v460_v21 }
 0x208   :  { %3832 = vmatprep.subr.bf16.mxu0 %v8082_v33  ;;  %3918 = vmatprep.subr.bf16.mxu1 %v8084_v34  ;;  %v8180_v33 = vcombine.high %v453_v23, %v461_v25  ;;  %v468_v34 = vld [vmem:[#allocation2 + $0xb30] sm:$0xff] }
 0x209   :  { %v8194_v56 = vcombine.high %v468_v34, %v476_v35 }
 0x20b   :  { %3833 = vmatpush1.bf16.msra.mxu0 %v8081_v40  ;;  %3919 = vmatpush1.bf16.msra.mxu1 %v8083_v41  ;;  %v653_v40 = vrot.slane %v10029_v59, %v652_v27  ;;  %v649_v41 = vrot.slane %v10029_v59, %v648_v28 }
 0x20c   :  { %3845 = vmatprep.subr.bf16.mxu0 %v8098_v42  ;;  %3931 = vmatprep.subr.bf16.mxu1 %v8100_v43  ;;  %v8177_v42 = vcombine.low %v452_v20, %v460_v21  ;;  %v657_v43 = vrot.slane %v10029_v59, %v656_v31  ;;  %v8195_v59 = vcombine.low %v469_v38, %v477_v39  ;;  %v501_v20 = vld [vmem:[#allocation2 + $0xc38] sm:$0xff] }
 0x20d   :  { %v509_v21 = vld [vmem:[#allocation2 + $0xc78] sm:$0xff] }
 0x20e   :  { %3835 = vmatmul.mubr.bf16.vlgmr.msra.gmra.mrb[12].mxu0 %v10013_v29  ;;  %3921 = vmatmul.mubr.bf16.vlgmr.msra.gmra.mrb[12].mxu1 %v10013_v29  ;;  %v8131_v29 = vcombine.low %v405_v57, %v413_v0  ;;  %v493_v57 = vld [vmem:[#allocation2 + $0xbf8] sm:$0xff]  ;;  %v8228_v39 = vcombine.high %v501_v20, %v509_v21 }
 0x20f   :  { %3846 = vmatpush1.bf16.msra.mxu0 %v8097_v48  ;;  %3932 = vmatpush1.bf16.msra.mxu1 %v8099_v49  ;;  %v484_v48 = vld [vmem:[#allocation2 + $0xbb0] sm:$0xff]  ;;  %v8212_v14 = vcombine.high %v485_v55, %v493_v57 }
 0x210   :  { %3847 = vmatprep.subr.bf16.mxu0 %v8114_v50  ;;  %3933 = vmatprep.subr.bf16.mxu1 %v8116_v51  ;;  %v492_v49 = vld [vmem:[#allocation2 + $0xbf0] sm:$0xff] }
 0x211   :  { %3877 = vmatprep.mubr.bf16.mxu0 %v10020_v36  ;;  %3963 = vmatprep.mubr.bf16.mxu1 %v10020_v36  ;;  %v8164_v36 = vcombine.high %v437_v15, %v445_v16  ;;  %v8209_v13 = vcombine.low %v484_v48, %v492_v49  ;;  %v500_v15 = vld [vmem:[#allocation2 + $0xc30] sm:$0xff] }
 0x212   :  { %v508_v16 = vld [vmem:[#allocation2 + $0xc70] sm:$0xff] }
 0x213   :  { %3848 = vmatpush1.bf16.msra.mxu0 %v8113_v1  ;;  %3934 = vmatpush1.bf16.msra.mxu1 %v8115_v2 }
 0x214   :  { %3849 = vmatprep.subr.bf16.mxu0 %v8130_v4  ;;  %3935 = vmatprep.subr.bf16.mxu1 %v8132_v5  ;;  %v8193_v5 = vcombine.low %v468_v34, %v476_v35  ;;  %v8226_v35 = vcombine.high %v500_v15, %v508_v16 }
 0x217   :  { %3850 = vmatpush1.bf16.msra.mxu0 %v8129_v10  ;;  %3936 = vmatpush1.bf16.msra.mxu1 %v8131_v29  ;;  %v8210_v10 = vcombine.high %v484_v48, %v492_v49  ;;  %v532_v49 = vld [vmem:[#allocation2 + $0xd30] sm:$0xff] }
 0x218   :  { %3851 = vmatprep.subr.bf16.mxu0 %v8146_v11  ;;  %3937 = vmatprep.subr.bf16.mxu1 %v8148_v12 }
 0x21b   :  { %3852 = vmatpush1.bf16.msra.mxu0 %v8145_v17  ;;  %3938 = vmatpush1.bf16.msra.mxu1 %v8147_v18 }
 0x21c   :  { %3853 = vmatprep.subr.bf16.mxu0 %v8162_v19  ;;  %3939 = vmatprep.subr.bf16.mxu1 %v8164_v36  ;;  %v8211_v36 = vcombine.low %v485_v55, %v493_v57 }
 0x21f   :  { %3854 = vmatpush1.bf16.msra.mxu0 %v8161_v26  ;;  %3940 = vmatpush1.bf16.msra.mxu1 %v8163_v30 }
 0x220   :  { %3855 = vmatprep.subr.bf16.mxu0 %v8178_v32  ;;  %3941 = vmatprep.subr.bf16.mxu1 %v8180_v33 }
 0x221   :  { %v3535_v45 = vpop.f32.mrb[4].mxu0  ;;  %v3621_v51 = vpop.f32.mrb[4].mxu1 }
 0x222   :  { %v8861_v50 = vadd.f32 %v3535_v45, %v645_v37  ;;  %v3537_v52 = vpop.f32.mrb[5].mxu0  ;;  %v8865_v0 = vadd.f32 %v3621_v51, %v653_v40  ;;  %v3623_v2 = vpop.f32.mrb[5].mxu1  ;;  %v8227_v45 = vcombine.low %v501_v20, %v509_v21  ;;  %v533_v51 = vld [vmem:[#allocation2 + $0xd38] sm:$0xff] }
 0x223   :  { %v8862_v1 = vadd.f32 %v3537_v52, %v649_v41  ;;  %v3539_v4 = vpop.f32.mrb[6].mxu0  ;;  %3856 = vmatpush1.bf16.msra.mxu0 %v8177_v42  ;;  %v8866_v6 = vadd.f32 %v3623_v2, %v657_v43  ;;  %v3625_v8 = vpop.f32.mrb[6].mxu1  ;;  %3942 = vmatpush1.bf16.msra.mxu1 %v8179_v44  ;;  %v525_v44 = vld [vmem:[#allocation2 + $0xcf8] sm:$0xff]  ;;  %v548_v2 = vld [vmem:[#allocation2 + $0xdb0] sm:$0xff] }
 0x224   :  { %v8863_v7 = vadd.f32 %v3539_v4, %v645_v37  ;;  %v3541_v9 = vpop.f32.mrb[7].mxu0  ;;  %3857 = vmatprep.subr.bf16.mxu0 %v8194_v56  ;;  %v8867_v29 = vadd.f32 %v3625_v8, %v653_v40  ;;  %v3627_v12 = vpop.f32.mrb[7].mxu1  ;;  %3943 = vmatprep.subr.bf16.mxu1 %v8196_v46  ;;  %v3978_v17 = vmax.f32 %v8861_v50, 0.0  ;;  %v3980_v23 = vmax.f32 %v8865_v0, 0.0  ;;  %v516_v40 = vld [vmem:[#allocation2 + $0xcb0] sm:$0xff]  ;;  %v541_v52 = vld [vmem:[#allocation2 + $0xd78] sm:$0xff] }
 0x225   :  { %v8864_v11 = vadd.f32 %v3541_v9, %v649_v41  ;;  %v8868_v19 = vadd.f32 %v3627_v12, %v657_v43  ;;  %v3979_v25 = vmax.f32 %v8862_v1, 0.0  ;;  %v3981_v32 = vmax.f32 %v8866_v6, 0.0  ;;  %v524_v41 = vld [vmem:[#allocation2 + $0xcf0] sm:$0xff]  ;;  %v517_v43 = vld [vmem:[#allocation2 + $0xcb8] sm:$0xff] }
 0x226   :  { %v3994_v18 = vmax.f32 %v8863_v7, 0.0  ;;  %v3996_v26 = vmax.f32 %v8867_v29, 0.0  ;;  %v8225_v56 = vcombine.low %v500_v15, %v508_v16  ;;  %v8242_v46 = vcombine.high %v516_v40, %v524_v41  ;;  %v540_v50 = vld [vmem:[#allocation2 + $0xd70] sm:$0xff]  ;;  %v573_v12 = vld [vmem:[#allocation2 + $0xe78] sm:$0xff] }
 0x227   :  { %v3995_v30 = vmax.f32 %v8864_v11, 0.0  ;;  %3858 = vmatpush1.bf16.msra.mxu0 %v8193_v5  ;;  %v3997_v34 = vmax.f32 %v8868_v19, 0.0  ;;  %3944 = vmatpush1.bf16.msra.mxu1 %v8195_v59  ;;  %v8244_v48 = vcombine.high %v517_v43, %v525_v44  ;;  %v8241_v55 = vcombine.low %v516_v40, %v524_v41  ;;  %v556_v4 = vld [vmem:[#allocation2 + $0xdf0] sm:$0xff]  ;;  %v549_v5 = vld [vmem:[#allocation2 + $0xdb8] sm:$0xff] }
 0x228   :  { %v10086_v33 = vpack.c.bf16 %v3994_v18, %v3978_v17  ;;  %3859 = vmatprep.subr.bf16.mxu0 %v8210_v10  ;;  %v10088_v37 = vpack.c.bf16 %v3996_v26, %v3980_v23  ;;  %3945 = vmatprep.subr.bf16.mxu1 %v8212_v14  ;;  %v8243_v57 = vcombine.low %v517_v43, %v525_v44  ;;  %v557_v59 = vld [vmem:[#allocation2 + $0xdf8] sm:$0xff]  ;;  %v564_v10 = vld [vmem:[#allocation2 + $0xe30] sm:$0xff] }
 0x229   :  { %v10090_v38 = vpack.c.bf16 %v3995_v30, %v3979_v25  ;;  %v10092_v42 = vpack.c.bf16 %v3997_v34, %v3981_v32  ;;  %v8258_v0 = vcombine.high %v532_v49, %v540_v50  ;;  %v8260_v1 = vcombine.high %v533_v51, %v541_v52  ;;  %v572_v29 = vld [vmem:[#allocation2 + $0xe70] sm:$0xff]  ;;  %v565_v11 = vld [vmem:[#allocation2 + $0xe38] sm:$0xff] }
 0x22a   :  { %v8257_v6 = vcombine.low %v532_v49, %v540_v50  ;;  %v8259_v7 = vcombine.low %v533_v51, %v541_v52  ;;  %v8274_v8 = vcombine.high %v548_v2, %v556_v4  ;;  %v8276_v9 = vcombine.high %v549_v5, %v557_v59  ;;  %v580_v17 = vld [vmem:[#allocation2 + $0xeb0] sm:$0xff]  ;;  %v581_v19 = vld [vmem:[#allocation2 + $0xeb8] sm:$0xff] }
 0x22b   :  { %3860 = vmatpush1.bf16.msra.mxu0 %v8209_v13  ;;  %3946 = vmatpush1.bf16.msra.mxu1 %v8211_v36  ;;  %v8273_v13 = vcombine.low %v548_v2, %v556_v4  ;;  %v8275_v14 = vcombine.low %v549_v5, %v557_v59  ;;  %v8290_v15 = vcombine.high %v564_v10, %v572_v29  ;;  %v588_v18 = vld [vmem:[#allocation2 + $0xef0] sm:$0xff]  ;;  %v589_v36 = vld [vmem:[#allocation2 + $0xef8] sm:$0xff] }
 0x22c   :  { %3861 = vmatprep.subr.bf16.mxu0 %v8226_v35  ;;  %3947 = vmatprep.subr.bf16.mxu1 %v8228_v39  ;;  %v8292_v16 = vcombine.high %v565_v11, %v573_v12  ;;  %v8289_v20 = vcombine.low %v564_v10, %v572_v29  ;;  %v8291_v21 = vcombine.low %v565_v11, %v573_v12  ;;  %v596_v26 = vld [vmem:[#allocation2 + $0xf30] sm:$0xff]  ;;  %v597_v32 = vld [vmem:[#allocation2 + $0xf38] sm:$0xff] }
 0x22d   :  { %v8306_v23 = vcombine.high %v580_v17, %v588_v18  ;;  %v8308_v25 = vcombine.high %v581_v19, %v589_v36  ;;  %v604_v30 = vld [vmem:[#allocation2 + $0xf70] sm:$0xff]  ;;  %v605_v34 = vld [vmem:[#allocation2 + $0xf78] sm:$0xff]  ;;  %v8305_v35 = vcombine.low %v580_v17, %v588_v18  ;;  %v8307_v39 = vcombine.low %v581_v19, %v589_v36 }
 0x22e   :  { %v8322_v40 = vcombine.high %v596_v26, %v604_v30  ;;  %v8324_v41 = vcombine.high %v597_v32, %v605_v34  ;;  %v612_v43 = vld [vmem:[#allocation2 + $0xfb0] sm:$0xff]  ;;  %v9001_v4 = vld [vmem:[#allocation7 + $0x2c] ss:$16 sps:$4 sm:$0xff]   ;;  %v8999_v59 = vld [vmem:[#allocation7 + $0x28] ss:$16 sps:$4 sm:$0xff]  }
 0x22f   :  { %3862 = vmatpush1.bf16.msra.mxu0 %v8225_v56  ;;  %3948 = vmatpush1.bf16.msra.mxu1 %v8227_v45  ;;  %v620_v44 = vld [vmem:[#allocation2 + $0xff0] sm:$0xff]  ;;  %v613_v56 = vld [vmem:[#allocation2 + $0xfb8] sm:$0xff] }
 0x230   :  { %3863 = vmatprep.subr.bf16.mxu0 %v8242_v46  ;;  %3949 = vmatprep.subr.bf16.mxu1 %v8244_v48  ;;  %v621_v45 = vld [vmem:[#allocation2 + $0xff8] sm:$0xff]  ;;  %v8321_v46 = vcombine.low %v596_v26, %v604_v30  ;;  %v8323_v48 = vcombine.low %v597_v32, %v605_v34  ;;  %v8338_v49 = vcombine.high %v612_v43, %v620_v44  ;;  %v8998_v2 = vld [vmem:[#allocation7 + $0x24] ss:$16 sps:$4 sm:$0xff]   ;;  %v8996_v5 = vld [vmem:[#allocation7 + $0x20] ss:$16 sps:$4 sm:$0xff]  }
 0x231   :  { %v8340_v50 = vcombine.high %v613_v56, %v621_v45  ;;  %v8337_v51 = vcombine.low %v612_v43, %v620_v44  ;;  %v8339_v52 = vcombine.low %v613_v56, %v621_v45  ;;  %v9010_v10 = vld [vmem:[#allocation7 + $0x64] ss:$16 sps:$4 sm:$0xff]   ;;  %v9008_v29 = vld [vmem:[#allocation7 + $0x60] ss:$16 sps:$4 sm:$0xff]   ;;  %v9011_v11 = vld [vmem:[#allocation7 + $0x68] ss:$16 sps:$4 sm:$0xff]  }
 0x232   :  { %v9016_v12 = vld [vmem:[#allocation7 + $0x84] ss:$16 sps:$4 sm:$0xff]   ;;  %v9020_v17 = vld [vmem:[#allocation7 + $0xa0] ss:$16 sps:$4 sm:$0xff]   ;;  %v9023_v18 = vld [vmem:[#allocation7 + $0xa8] ss:$16 sps:$4 sm:$0xff]  }
 0x233   :  { %3864 = vmatpush1.bf16.msra.mxu0 %v8241_v55  ;;  %3950 = vmatpush1.bf16.msra.mxu1 %v8243_v57  ;;  %v8992_v55 = vld [vmem:[#allocation7 + $0x4] ss:$16 sps:$4 sm:$0xff]   ;;  %v8995_v57 = vld [vmem:[#allocation7 + $0xc] ss:$16 sps:$4 sm:$0xff]   ;;  %v9032_v26 = vld [vmem:[#allocation7 + $0xe0] ss:$16 sps:$4 sm:$0xff]  }
 0x234   :  { %3865 = vmatprep.subr.bf16.mxu0 %v8258_v0  ;;  %3951 = vmatprep.subr.bf16.mxu1 %v8260_v1  ;;  %v8990_v0 = vld [vmem:[#allocation7] ss:$16 sps:$4 sm:$0xff]   ;;  %v8993_v1 = vld [vmem:[#allocation7 + $0x8] ss:$16 sps:$4 sm:$0xff]   ;;  %v9028_v19 = vld [vmem:[#allocation7 + $0xc4] ss:$16 sps:$4 sm:$0xff]  }
 0x235   :  { %v9031_v36 = vld [vmem:[#allocation7 + $0xcc] ss:$16 sps:$4 sm:$0xff]   ;;  %v9035_v30 = vld [vmem:[#allocation7 + $0xe8] ss:$16 sps:$4 sm:$0xff]   ;;  %v9040_v32 = vld [vmem:[#allocation7 + $0x104] ss:$16 sps:$4 sm:$0xff]  }
 0x236   :  { %v9043_v34 = vld [vmem:[#allocation7 + $0x10c] ss:$16 sps:$4 sm:$0xff]   ;;  %v9044_v43 = vld [vmem:[#allocation7 + $0x120] ss:$16 sps:$4 sm:$0xff]   ;;  %v9047_v44 = vld [vmem:[#allocation7 + $0x128] ss:$16 sps:$4 sm:$0xff]  }
 0x237   :  { %3866 = vmatpush1.bf16.msra.mxu0 %v8257_v6  ;;  %3952 = vmatpush1.bf16.msra.mxu1 %v8259_v7  ;;  %v9004_v6 = vld [vmem:[#allocation7 + $0x44] ss:$16 sps:$4 sm:$0xff]   ;;  %v9007_v7 = vld [vmem:[#allocation7 + $0x4c] ss:$16 sps:$4 sm:$0xff]  }
 0x238   :  { %3867 = vmatprep.subr.bf16.mxu0 %v8274_v8  ;;  %3953 = vmatprep.subr.bf16.mxu1 %v8276_v9  ;;  %v9002_v8 = vld [vmem:[#allocation7 + $0x40] ss:$16 sps:$4 sm:$0xff]   ;;  %v9005_v9 = vld [vmem:[#allocation7 + $0x48] ss:$16 sps:$4 sm:$0xff]   ;;  %v9052_v56 = vld [vmem:[#allocation7 + $0x144] ss:$16 sps:$4 sm:$0xff]  }
 0x239   :  { %v9055_v45 = vld [vmem:[#allocation7 + $0x14c] ss:$16 sps:$4 sm:$0xff]  }
 0x23b   :  { %3868 = vmatpush1.bf16.msra.mxu0 %v8273_v13  ;;  %3954 = vmatpush1.bf16.msra.mxu1 %v8275_v14  ;;  %v9019_v13 = vld [vmem:[#allocation7 + $0x8c] ss:$16 sps:$4 sm:$0xff]   ;;  %v9017_v14 = vld [vmem:[#allocation7 + $0x88] ss:$16 sps:$4 sm:$0xff]  }
 0x23c   :  { %3869 = vmatprep.subr.bf16.mxu0 %v8290_v15  ;;  %3955 = vmatprep.subr.bf16.mxu1 %v8292_v16  ;;  %v9022_v15 = vld [vmem:[#allocation7 + $0xa4] ss:$16 sps:$4 sm:$0xff]   ;;  %v9025_v16 = vld [vmem:[#allocation7 + $0xac] ss:$16 sps:$4 sm:$0xff]  }
 0x23f   :  { %3870 = vmatpush1.bf16.msra.mxu0 %v8289_v20  ;;  %3956 = vmatpush1.bf16.msra.mxu1 %v8291_v21  ;;  %v9026_v20 = vld [vmem:[#allocation7 + $0xc0] ss:$16 sps:$4 sm:$0xff]   ;;  %v9029_v21 = vld [vmem:[#allocation7 + $0xc8] ss:$16 sps:$4 sm:$0xff]  }
 0x240   :  { %3871 = vmatprep.subr.bf16.mxu0 %v8306_v23  ;;  %3957 = vmatprep.subr.bf16.mxu1 %v8308_v25  ;;  %v9034_v23 = vld [vmem:[#allocation7 + $0xe4] ss:$16 sps:$4 sm:$0xff]   ;;  %v9037_v25 = vld [vmem:[#allocation7 + $0xec] ss:$16 sps:$4 sm:$0xff]  }
 0x243   :  { %3872 = vmatpush1.bf16.msra.mxu0 %v8305_v35  ;;  %3958 = vmatpush1.bf16.msra.mxu1 %v8307_v39  ;;  %v9038_v35 = vld [vmem:[#allocation7 + $0x100] ss:$16 sps:$4 sm:$0xff]   ;;  %v9041_v39 = vld [vmem:[#allocation7 + $0x108] ss:$16 sps:$4 sm:$0xff]  }
 0x244   :  { %3873 = vmatprep.subr.bf16.mxu0 %v8322_v40  ;;  %3959 = vmatprep.subr.bf16.mxu1 %v8324_v41  ;;  %v9046_v40 = vld [vmem:[#allocation7 + $0x124] ss:$16 sps:$4 sm:$0xff]   ;;  %v9049_v41 = vld [vmem:[#allocation7 + $0x12c] ss:$16 sps:$4 sm:$0xff]  }
 0x247   :  { %3874 = vmatpush1.bf16.msra.mxu0 %v8321_v46  ;;  %3960 = vmatpush1.bf16.msra.mxu1 %v8323_v48  ;;  %v9050_v46 = vld [vmem:[#allocation7 + $0x140] ss:$16 sps:$4 sm:$0xff]   ;;  %v9053_v48 = vld [vmem:[#allocation7 + $0x148] ss:$16 sps:$4 sm:$0xff]  }
 0x248   :  { %3875 = vmatprep.subr.bf16.mxu0 %v8338_v49  ;;  %3961 = vmatprep.subr.bf16.mxu1 %v8340_v50  ;;  %v9058_v49 = vld [vmem:[#allocation7 + $0x164] ss:$16 sps:$4 sm:$0xff]   ;;  %v9061_v50 = vld [vmem:[#allocation7 + $0x16c] ss:$16 sps:$4 sm:$0xff]  }
 0x24b   :  { %3876 = vmatpush1.bf16.msra.mxu0 %v8337_v51  ;;  %3962 = vmatpush1.bf16.msra.mxu1 %v8339_v52  ;;  %v9056_v51 = vld [vmem:[#allocation7 + $0x160] ss:$16 sps:$4 sm:$0xff]   ;;  %v9059_v52 = vld [vmem:[#allocation7 + $0x168] ss:$16 sps:$4 sm:$0xff]  }
 0x24c   :  { %7102 = vmatprep.subr.bf16.mxu0 %v8992_v55  ;;  %7446 = vmatprep.subr.bf16.mxu1 %v8995_v57  ;;  %v9064_v55 = vld [vmem:[#allocation7 + $0x184] ss:$16 sps:$4 sm:$0xff]   ;;  %v9067_v57 = vld [vmem:[#allocation7 + $0x18c] ss:$16 sps:$4 sm:$0xff]  }
 0x24e   :  { %3878 = vmatmul.mubr.bf16.vlgmr.msra.gmra.mrb[12].mxu0 %v10059_v24  ;;  %3964 = vmatmul.mubr.bf16.vlgmr.msra.gmra.mrb[12].mxu1 %v10059_v24  ;;  %v9013_v24 = vld [vmem:[#allocation7 + $0x6c] ss:$16 sps:$4 sm:$0xff]  }
 0x24f   :  { %7103 = vmatpush1.bf16.msra.mxu0 %v8990_v0  ;;  %7134 = vmatprep.mubr.bf16.mxu0 %v10052_v62  ;;  %v9062_v0 = vld [vmem:[#allocation7 + $0x180] ss:$16 sps:$4 sm:$0xff]  }
 0x250   :  { %7447 = vmatpush1.bf16.msra.mxu1 %v8993_v1  ;;  %7478 = vmatprep.mubr.bf16.mxu1 %v10052_v62  ;;  %v9014_v62 = vld [vmem:[#allocation7 + $0x80] ss:$16 sps:$4 sm:$0xff]   ;;  %v9065_v1 = vld [vmem:[#allocation7 + $0x188] ss:$16 sps:$4 sm:$0xff]  }
 0x251   :  { %7104 = vmatprep.subr.bf16.mxu0 %v8998_v2  ;;  %7448 = vmatprep.subr.bf16.mxu1 %v9001_v4  ;;  %v9070_v2 = vld [vmem:[#allocation7 + $0x1a4] ss:$16 sps:$4 sm:$0xff]   ;;  %v9073_v4 = vld [vmem:[#allocation7 + $0x1ac] ss:$16 sps:$4 sm:$0xff]  }
 0x253   :  { %7105 = vmatpush1.bf16.msra.mxu0 %v8996_v5  ;;  %v9068_v5 = vld [vmem:[#allocation7 + $0x1a0] ss:$16 sps:$4 sm:$0xff]  }
 0x254   :  { %7449 = vmatpush1.bf16.msra.mxu1 %v8999_v59  ;;  %7106 = vmatprep.subr.bf16.mxu0 %v9004_v6  ;;  %v9071_v59 = vld [vmem:[#allocation7 + $0x1a8] ss:$16 sps:$4 sm:$0xff]   ;;  %v9076_v6 = vld [vmem:[#allocation7 + $0x1c4] ss:$16 sps:$4 sm:$0xff]  }
 0x255   :  { %7450 = vmatprep.subr.bf16.mxu1 %v9007_v7  ;;  %v9079_v7 = vld [vmem:[#allocation7 + $0x1cc] ss:$16 sps:$4 sm:$0xff]  }
 0x257   :  { %7107 = vmatpush1.bf16.msra.mxu0 %v9002_v8  ;;  %v9074_v8 = vld [vmem:[#allocation7 + $0x1c0] ss:$16 sps:$4 sm:$0xff]  }
 0x258   :  { %7451 = vmatpush1.bf16.msra.mxu1 %v9005_v9  ;;  %7108 = vmatprep.subr.bf16.mxu0 %v9010_v10  ;;  %v9077_v9 = vld [vmem:[#allocation7 + $0x1c8] ss:$16 sps:$4 sm:$0xff]   ;;  %v9082_v10 = vld [vmem:[#allocation7 + $0x1e4] ss:$16 sps:$4 sm:$0xff]  }
 0x259   :  { %7452 = vmatprep.subr.bf16.mxu1 %v9013_v24  ;;  %v9085_v24 = vld [vmem:[#allocation7 + $0x1ec] ss:$16 sps:$4 sm:$0xff]  }
 0x25b   :  { %7109 = vmatpush1.bf16.msra.mxu0 %v9008_v29  ;;  %v9080_v29 = vld [vmem:[#allocation7 + $0x1e0] ss:$16 sps:$4 sm:$0xff]  }
 0x25c   :  { %7453 = vmatpush1.bf16.msra.mxu1 %v9011_v11  ;;  %7110 = vmatprep.subr.bf16.mxu0 %v9016_v12  ;;  %v9083_v11 = vld [vmem:[#allocation7 + $0x1e8] ss:$16 sps:$4 sm:$0xff]   ;;  %v9088_v12 = vld [vmem:[#allocation7 + $0x204] ss:$16 sps:$4 sm:$0xff]  }
 0x25d   :  { %7454 = vmatprep.subr.bf16.mxu1 %v9019_v13  ;;  %v9091_v13 = vld [vmem:[#allocation7 + $0x20c] ss:$16 sps:$4 sm:$0xff]  }
 0x25f   :  { %7111 = vmatpush1.bf16.msra.mxu0 %v9014_v62  ;;  %v9086_v62 = vld [vmem:[#allocation7 + $0x200] ss:$16 sps:$4 sm:$0xff]  }
 0x260   :  { %7455 = vmatpush1.bf16.msra.mxu1 %v9017_v14  ;;  %7112 = vmatprep.subr.bf16.mxu0 %v9022_v15  ;;  %v9089_v14 = vld [vmem:[#allocation7 + $0x208] ss:$16 sps:$4 sm:$0xff]   ;;  %v9094_v15 = vld [vmem:[#allocation7 + $0x224] ss:$16 sps:$4 sm:$0xff]  }
 0x261   :  { %7456 = vmatprep.subr.bf16.mxu1 %v9025_v16  ;;  %v9097_v16 = vld [vmem:[#allocation7 + $0x22c] ss:$16 sps:$4 sm:$0xff]  }
 0x263   :  { %7113 = vmatpush1.bf16.msra.mxu0 %v9020_v17  ;;  %v9092_v17 = vld [vmem:[#allocation7 + $0x220] ss:$16 sps:$4 sm:$0xff]  }
 0x264   :  { %7457 = vmatpush1.bf16.msra.mxu1 %v9023_v18  ;;  %7114 = vmatprep.subr.bf16.mxu0 %v9028_v19  ;;  %v9095_v18 = vld [vmem:[#allocation7 + $0x228] ss:$16 sps:$4 sm:$0xff]   ;;  %v9100_v19 = vld [vmem:[#allocation7 + $0x244] ss:$16 sps:$4 sm:$0xff]  }
 0x265   :  { %7458 = vmatprep.subr.bf16.mxu1 %v9031_v36  ;;  %v9103_v36 = vld [vmem:[#allocation7 + $0x24c] ss:$16 sps:$4 sm:$0xff]  }
 0x267   :  { %7115 = vmatpush1.bf16.msra.mxu0 %v9026_v20  ;;  %v9098_v20 = vld [vmem:[#allocation7 + $0x240] ss:$16 sps:$4 sm:$0xff]  }
 0x268   :  { %7459 = vmatpush1.bf16.msra.mxu1 %v9029_v21  ;;  %7116 = vmatprep.subr.bf16.mxu0 %v9034_v23  ;;  %v9101_v21 = vld [vmem:[#allocation7 + $0x248] ss:$16 sps:$4 sm:$0xff]   ;;  %v9106_v23 = vld [vmem:[#allocation7 + $0x264] ss:$16 sps:$4 sm:$0xff]  }
 0x269   :  { %7460 = vmatprep.subr.bf16.mxu1 %v9037_v25  ;;  %v9104_v25 = vld [vmem:[#allocation7 + $0x260] ss:$16 sps:$4 sm:$0xff]  }
 0x26b   :  { %7117 = vmatpush1.bf16.msra.mxu0 %v9032_v26  ;;  %v9107_v26 = vld [vmem:[#allocation7 + $0x268] ss:$16 sps:$4 sm:$0xff]  }
 0x26c   :  { %7461 = vmatpush1.bf16.msra.mxu1 %v9035_v30  ;;  %7118 = vmatprep.subr.bf16.mxu0 %v9040_v32  ;;  %v9112_v30 = vld [vmem:[#allocation7 + $0x284] ss:$16 sps:$4 sm:$0xff]   ;;  %v9115_v32 = vld [vmem:[#allocation7 + $0x28c] ss:$16 sps:$4 sm:$0xff]  }
 0x26d   :  { %7462 = vmatprep.subr.bf16.mxu1 %v9043_v34  ;;  %v10102_v34 = vld [vmem:[#allocation5 + $0x8] sm:$0xff] }
 0x26f   :  { %7119 = vmatpush1.bf16.msra.mxu0 %v9038_v35  ;;  %v9113_v35 = vld [vmem:[#allocation7 + $0x288] ss:$16 sps:$4 sm:$0xff]  }
 0x270   :  { %7463 = vmatpush1.bf16.msra.mxu1 %v9041_v39  ;;  %7120 = vmatprep.subr.bf16.mxu0 %v9046_v40  ;;  %v9118_v39 = vld [vmem:[#allocation7 + $0x2a4] ss:$16 sps:$4 sm:$0xff]   ;;  %v9121_v40 = vld [vmem:[#allocation7 + $0x2ac] ss:$16 sps:$4 sm:$0xff]  }
 0x271   :  { %7464 = vmatprep.subr.bf16.mxu1 %v9049_v41  ;;  %v661_v41 = vrot.slane %v10102_v34, %v10027_v54 }
 0x273   :  { %7121 = vmatpush1.bf16.msra.mxu0 %v9044_v43  ;;  %v669_v43 = vrot.slane %v10102_v34, %v10032_v60 }
 0x274   :  { %7465 = vmatpush1.bf16.msra.mxu1 %v9047_v44  ;;  %7122 = vmatprep.subr.bf16.mxu0 %v9052_v56  ;;  %v665_v44 = vrot.slane %v10102_v34, %v10035_v61  ;;  %v9116_v56 = vld [vmem:[#allocation7 + $0x2a0] ss:$16 sps:$4 sm:$0xff]  }
 0x275   :  { %7466 = vmatprep.subr.bf16.mxu1 %v9055_v45  ;;  %v673_v45 = vrot.slane %v10102_v34, %v10038_v63 }
 0x277   :  { %7123 = vmatpush1.bf16.msra.mxu0 %v9050_v46  ;;  %v9119_v46 = vld [vmem:[#allocation7 + $0x2a8] ss:$16 sps:$4 sm:$0xff]  }
 0x278   :  { %7467 = vmatpush1.bf16.msra.mxu1 %v9053_v48  ;;  %7124 = vmatprep.subr.bf16.mxu0 %v9058_v49  ;;  %v9124_v48 = vld [vmem:[#allocation7 + $0x2c4] ss:$16 sps:$4 sm:$0xff]  }
 0x279   :  { %7468 = vmatprep.subr.bf16.mxu1 %v9061_v50  ;;  %v9127_v50 = vld [vmem:[#allocation7 + $0x2cc] ss:$16 sps:$4 sm:$0xff]  }
 0x27b   :  { %7125 = vmatpush1.bf16.msra.mxu0 %v9056_v51 }
 0x27c   :  { %7469 = vmatpush1.bf16.msra.mxu1 %v9059_v52  ;;  %7126 = vmatprep.subr.bf16.mxu0 %v9064_v55 }
 0x27d   :  { %7470 = vmatprep.subr.bf16.mxu1 %v9067_v57 }
 0x27f   :  { %7127 = vmatpush1.bf16.msra.mxu0 %v9062_v0 }
 0x280   :  { %7471 = vmatpush1.bf16.msra.mxu1 %v9065_v1  ;;  %7128 = vmatprep.subr.bf16.mxu0 %v9070_v2 }
 0x281   :  { %7472 = vmatprep.subr.bf16.mxu1 %v9073_v4  ;;  %v9122_v4 = vld [vmem:[#allocation7 + $0x2c0] ss:$16 sps:$4 sm:$0xff]  }
 0x283   :  { %7129 = vmatpush1.bf16.msra.mxu0 %v9068_v5 }
 0x284   :  { %7473 = vmatpush1.bf16.msra.mxu1 %v9071_v59  ;;  %7130 = vmatprep.subr.bf16.mxu0 %v9076_v6 }
 0x285   :  { %7474 = vmatprep.subr.bf16.mxu1 %v9079_v7 }
 0x287   :  { %7131 = vmatpush1.bf16.msra.mxu0 %v9074_v8  ;;  %v9125_v8 = vld [vmem:[#allocation7 + $0x2c8] ss:$16 sps:$4 sm:$0xff]  }
 0x288   :  { %7475 = vmatpush1.bf16.msra.mxu1 %v9077_v9  ;;  %7132 = vmatprep.subr.bf16.mxu0 %v9082_v10  ;;  %v9130_v9 = vld [vmem:[#allocation7 + $0x2e4] ss:$16 sps:$4 sm:$0xff]  }
 0x289   :  { %7476 = vmatprep.subr.bf16.mxu1 %v9085_v24 }
 0x28b   :  { %7133 = vmatpush1.bf16.msra.mxu0 %v9080_v29 }
 0x28c   :  { %7477 = vmatpush1.bf16.msra.mxu1 %v9083_v11  ;;  %7145 = vmatprep.subr.bf16.mxu0 %v9088_v12  ;;  %v9133_v11 = vld [vmem:[#allocation7 + $0x2ec] ss:$16 sps:$4 sm:$0xff]  }
 0x28d   :  { %7489 = vmatprep.subr.bf16.mxu1 %v9091_v13 }
 0x28e   :  { %7135 = vmatmul.mubr.bf16.vlgmr.msra.gmra.mrb[16].mxu0 %v10048_v53 }
 0x28f   :  { %7479 = vmatmul.mubr.bf16.vlgmr.msra.gmra.mrb[16].mxu1 %v10048_v53  ;;  %7146 = vmatpush1.bf16.msra.mxu0 %v9086_v62  ;;  %v9109_v53 = vld [vmem:[#allocation7 + $0x26c] ss:$16 sps:$4 sm:$0xff]  }
 0x290   :  { %7177 = vmatprep.mubr.bf16.mxu0 %v10054_v3  ;;  %7490 = vmatpush1.bf16.msra.mxu1 %v9089_v14 }
 0x291   :  { %7521 = vmatprep.mubr.bf16.mxu1 %v10054_v3  ;;  %7147 = vmatprep.subr.bf16.mxu0 %v9094_v15  ;;  %v9110_v3 = vld [vmem:[#allocation7 + $0x280] ss:$16 sps:$4 sm:$0xff]  }
 0x292   :  { %7491 = vmatprep.subr.bf16.mxu1 %v9097_v16 }
 0x293   :  { %7148 = vmatpush1.bf16.msra.mxu0 %v9092_v17 }
 0x294   :  { %7492 = vmatpush1.bf16.msra.mxu1 %v9095_v18  ;;  %7149 = vmatprep.subr.bf16.mxu0 %v9100_v19  ;;  %v9128_v18 = vld [vmem:[#allocation7 + $0x2e0] ss:$16 sps:$4 sm:$0xff]  }
 0x295   :  { %7493 = vmatprep.subr.bf16.mxu1 %v9103_v36 }
 0x297   :  { %7150 = vmatpush1.bf16.msra.mxu0 %v9098_v20 }
 0x298   :  { %7494 = vmatpush1.bf16.msra.mxu1 %v9101_v21  ;;  %7151 = vmatprep.subr.bf16.mxu0 %v9106_v23  ;;  %v9131_v21 = vld [vmem:[#allocation7 + $0x2e8] ss:$16 sps:$4 sm:$0xff]   ;;  %v9136_v23 = vld [vmem:[#allocation7 + $0x304] ss:$16 sps:$4 sm:$0xff]  }
 0x299   :  { %7495 = vmatprep.subr.bf16.mxu1 %v9109_v53 }
 0x29b   :  { %7152 = vmatpush1.bf16.msra.mxu0 %v9104_v25 }
 0x29c   :  { %7496 = vmatpush1.bf16.msra.mxu1 %v9107_v26  ;;  %7153 = vmatprep.subr.bf16.mxu0 %v9112_v30  ;;  %v9139_v26 = vld [vmem:[#allocation7 + $0x30c] ss:$16 sps:$4 sm:$0xff]  }
 0x29d   :  { %7497 = vmatprep.subr.bf16.mxu1 %v9115_v32  ;;  %v9134_v32 = vld [vmem:[#allocation7 + $0x300] ss:$16 sps:$4 sm:$0xff]  }
 0x29f   :  { %7154 = vmatpush1.bf16.msra.mxu0 %v9110_v3  ;;  %v9137_v3 = vld [vmem:[#allocation7 + $0x308] ss:$16 sps:$4 sm:$0xff]  }
 0x2a0   :  { %7498 = vmatpush1.bf16.msra.mxu1 %v9113_v35  ;;  %7155 = vmatprep.subr.bf16.mxu0 %v9118_v39  ;;  %v9142_v35 = vld [vmem:[#allocation7 + $0x324] ss:$16 sps:$4 sm:$0xff]   ;;  %v9145_v39 = vld [vmem:[#allocation7 + $0x32c] ss:$16 sps:$4 sm:$0xff]  }
 0x2a1   :  { %v3707_v49 = vpop.f32.mrb[8].mxu0  ;;  %7499 = vmatprep.subr.bf16.mxu1 %v9121_v40  ;;  %v3793_v52 = vpop.f32.mrb[8].mxu1  ;;  %v9140_v40 = vld [vmem:[#allocation7 + $0x320] ss:$16 sps:$4 sm:$0xff]  }
 0x2a2   :  { %v8869_v51 = vadd.f32 %v3707_v49, %v661_v41  ;;  %v3709_v55 = vpop.f32.mrb[9].mxu0  ;;  %v8873_v57 = vadd.f32 %v3793_v52, %v669_v43  ;;  %v3795_v1 = vpop.f32.mrb[9].mxu1  ;;  %v9152_v49 = vld [vmem:[#allocation7 + $0x360] ss:$16 sps:$4 sm:$0xff]   ;;  %v9163_v52 = vld [vmem:[#allocation7 + $0x38c] ss:$16 sps:$4 sm:$0xff]  }
 0x2a3   :  { %v8870_v0 = vadd.f32 %v3709_v55, %v665_v44  ;;  %v3711_v2 = vpop.f32.mrb[10].mxu0  ;;  %7156 = vmatpush1.bf16.msra.mxu0 %v9116_v56  ;;  %v8874_v5 = vadd.f32 %v3795_v1, %v673_v45  ;;  %v3797_v6 = vpop.f32.mrb[10].mxu1  ;;  %v9146_v56 = vld [vmem:[#allocation7 + $0x340] ss:$16 sps:$4 sm:$0xff]   ;;  %v9169_v1 = vld [vmem:[#allocation7 + $0x3ac] ss:$16 sps:$4 sm:$0xff]  }
 0x2a4   :  { %v8871_v59 = vadd.f32 %v3711_v2, %v661_v41  ;;  %7500 = vmatpush1.bf16.msra.mxu1 %v9119_v46  ;;  %v3713_v7 = vpop.f32.mrb[11].mxu0  ;;  %7157 = vmatprep.subr.bf16.mxu0 %v9124_v48  ;;  %v8875_v10 = vadd.f32 %v3797_v6, %v669_v43  ;;  %v3799_v29 = vpop.f32.mrb[11].mxu1  ;;  %v3982_v12 = vmax.f32 %v8869_v51, 0.0  ;;  %v3984_v14 = vmax.f32 %v8873_v57, 0.0  ;;  %v9143_v41 = vld [vmem:[#allocation7 + $0x328] ss:$16 sps:$4 sm:$0xff]  }
 0x2a5   :  { %v8872_v24 = vadd.f32 %v3713_v7, %v665_v44  ;;  %7501 = vmatprep.subr.bf16.mxu1 %v9127_v50  ;;  %v8876_v62 = vadd.f32 %v3799_v29, %v673_v45  ;;  %v3983_v15 = vmax.f32 %v8870_v0, 0.0  ;;  %v3985_v19 = vmax.f32 %v8874_v5, 0.0  ;;  %v9148_v43 = vld [vmem:[#allocation7 + $0x344] ss:$16 sps:$4 sm:$0xff]   ;;  %v9151_v44 = vld [vmem:[#allocation7 + $0x34c] ss:$16 sps:$4 sm:$0xff]  }
 0x2a6   :  { %v3998_v13 = vmax.f32 %v8871_v59, 0.0  ;;  %v4000_v16 = vmax.f32 %v8875_v10, 0.0  ;;  %v9149_v45 = vld [vmem:[#allocation7 + $0x348] ss:$16 sps:$4 sm:$0xff]   ;;  %v9154_v46 = vld [vmem:[#allocation7 + $0x364] ss:$16 sps:$4 sm:$0xff]  }
 0x2a7   :  { %v3999_v17 = vmax.f32 %v8872_v24, 0.0  ;;  %7158 = vmatpush1.bf16.msra.mxu0 %v9122_v4  ;;  %v4001_v20 = vmax.f32 %v8876_v62, 0.0  ;;  %v9157_v48 = vld [vmem:[#allocation7 + $0x36c] ss:$16 sps:$4 sm:$0xff]   ;;  %v9155_v50 = vld [vmem:[#allocation7 + $0x368] ss:$16 sps:$4 sm:$0xff]  }
 0x2a8   :  { %v10112_v36 = vpack.c.bf16 %v3998_v13, %v3982_v12  ;;  %7502 = vmatpush1.bf16.msra.mxu1 %v9125_v8  ;;  %7159 = vmatprep.subr.bf16.mxu0 %v9130_v9  ;;  %v10114_v53 = vpack.c.bf16 %v4000_v16, %v3984_v14  ;;  %v9160_v51 = vld [vmem:[#allocation7 + $0x384] ss:$16 sps:$4 sm:$0xff]   ;;  %v9158_v55 = vld [vmem:[#allocation7 + $0x380] ss:$16 sps:$4 sm:$0xff]   ;;  %v9161_v57 = vld [vmem:[#allocation7 + $0x388] ss:$16 sps:$4 sm:$0xff]  }
 0x2a9   :  { %v10116_v25 = vpack.c.bf16 %v3999_v17, %v3983_v15  ;;  %7503 = vmatprep.subr.bf16.mxu1 %v9133_v11  ;;  %v10118_v30 = vpack.c.bf16 %v4001_v20, %v3985_v19  ;;  %v9166_v0 = vld [vmem:[#allocation7 + $0x3a4] ss:$16 sps:$4 sm:$0xff]   ;;  %v9164_v2 = vld [vmem:[#allocation7 + $0x3a0] ss:$16 sps:$4 sm:$0xff]   ;;  %v9167_v4 = vld [vmem:[#allocation7 + $0x3a8] ss:$16 sps:$4 sm:$0xff]  }
 0x2aa   :  { %v9172_v5 = vld [vmem:[#allocation7 + $0x3c4] ss:$16 sps:$4 sm:$0xff]   ;;  %v9175_v59 = vld [vmem:[#allocation7 + $0x3cc] ss:$16 sps:$4 sm:$0xff]   ;;  %v9170_v6 = vld [vmem:[#allocation7 + $0x3c0] ss:$16 sps:$4 sm:$0xff]  }
 0x2ab   :  { %7160 = vmatpush1.bf16.msra.mxu0 %v9128_v18  ;;  %v9173_v7 = vld [vmem:[#allocation7 + $0x3c8] ss:$16 sps:$4 sm:$0xff]   ;;  %v9178_v8 = vld [vmem:[#allocation7 + $0x3e4] ss:$16 sps:$4 sm:$0xff]   ;;  %v9181_v9 = vld [vmem:[#allocation7 + $0x3ec] ss:$16 sps:$4 sm:$0xff]  }
 0x2ac   :  { %7504 = vmatpush1.bf16.msra.mxu1 %v9131_v21  ;;  %7161 = vmatprep.subr.bf16.mxu0 %v9136_v23  ;;  %v9176_v10 = vld [vmem:[#allocation7 + $0x3e0] ss:$16 sps:$4 sm:$0xff]   ;;  %v9179_v24 = vld [vmem:[#allocation7 + $0x3e8] ss:$16 sps:$4 sm:$0xff]   ;;  %v9184_v29 = vld [vmem:[#allocation7 + $0x404] ss:$16 sps:$4 sm:$0xff]  }
 0x2ad   :  { %7505 = vmatprep.subr.bf16.mxu1 %v9139_v26  ;;  %v9187_v11 = vld [vmem:[#allocation7 + $0x40c] ss:$16 sps:$4 sm:$0xff]   ;;  %v9182_v12 = vld [vmem:[#allocation7 + $0x400] ss:$16 sps:$4 sm:$0xff]   ;;  %v9185_v13 = vld [vmem:[#allocation7 + $0x408] ss:$16 sps:$4 sm:$0xff]  }
 0x2ae   :  { %v9190_v62 = vld [vmem:[#allocation7 + $0x424] ss:$16 sps:$4 sm:$0xff]   ;;  %v9193_v14 = vld [vmem:[#allocation7 + $0x42c] ss:$16 sps:$4 sm:$0xff]   ;;  %v9188_v15 = vld [vmem:[#allocation7 + $0x420] ss:$16 sps:$4 sm:$0xff]  }
 0x2af   :  { %7162 = vmatpush1.bf16.msra.mxu0 %v9134_v32  ;;  %v9191_v16 = vld [vmem:[#allocation7 + $0x428] ss:$16 sps:$4 sm:$0xff]   ;;  %v9196_v17 = vld [vmem:[#allocation7 + $0x444] ss:$16 sps:$4 sm:$0xff]   ;;  %v9199_v18 = vld [vmem:[#allocation7 + $0x44c] ss:$16 sps:$4 sm:$0xff]  }
 0x2b0   :  { %7506 = vmatpush1.bf16.msra.mxu1 %v9137_v3  ;;  %7163 = vmatprep.subr.bf16.mxu0 %v9142_v35  ;;  %v9194_v19 = vld [vmem:[#allocation7 + $0x440] ss:$16 sps:$4 sm:$0xff]   ;;  %v9197_v20 = vld [vmem:[#allocation7 + $0x448] ss:$16 sps:$4 sm:$0xff]   ;;  %v9202_v21 = vld [vmem:[#allocation7 + $0x464] ss:$16 sps:$4 sm:$0xff]  }
 0x2b1   :  { %7507 = vmatprep.subr.bf16.mxu1 %v9145_v39  ;;  %v9200_v23 = vld [vmem:[#allocation7 + $0x460] ss:$16 sps:$4 sm:$0xff]   ;;  %v9203_v26 = vld [vmem:[#allocation7 + $0x468] ss:$16 sps:$4 sm:$0xff]   ;;  %v9208_v32 = vld [vmem:[#allocation7 + $0x484] ss:$16 sps:$4 sm:$0xff]  }
 0x2b2   :  { %v9211_v3 = vld [vmem:[#allocation7 + $0x48c] ss:$16 sps:$4 sm:$0xff]   ;;  %v9209_v35 = vld [vmem:[#allocation7 + $0x488] ss:$16 sps:$4 sm:$0xff]   ;;  %v9214_v39 = vld [vmem:[#allocation7 + $0x4a4] ss:$16 sps:$4 sm:$0xff]  }
 0x2b3   :  { %7164 = vmatpush1.bf16.msra.mxu0 %v9140_v40  ;;  %v9217_v40 = vld [vmem:[#allocation7 + $0x4ac] ss:$16 sps:$4 sm:$0xff]  }
 0x2b4   :  { %7508 = vmatpush1.bf16.msra.mxu1 %v9143_v41  ;;  %7165 = vmatprep.subr.bf16.mxu0 %v9148_v43  ;;  %v9212_v41 = vld [vmem:[#allocation7 + $0x4a0] ss:$16 sps:$4 sm:$0xff]   ;;  %v9215_v43 = vld [vmem:[#allocation7 + $0x4a8] ss:$16 sps:$4 sm:$0xff]  }
 0x2b5   :  { %7509 = vmatprep.subr.bf16.mxu1 %v9151_v44  ;;  %v9220_v44 = vld [vmem:[#allocation7 + $0x4c4] ss:$16 sps:$4 sm:$0xff]  }
 0x2b7   :  { %7166 = vmatpush1.bf16.msra.mxu0 %v9146_v56  ;;  %v9223_v56 = vld [vmem:[#allocation7 + $0x4cc] ss:$16 sps:$4 sm:$0xff]  }
 0x2b8   :  { %7510 = vmatpush1.bf16.msra.mxu1 %v9149_v45  ;;  %7167 = vmatprep.subr.bf16.mxu0 %v9154_v46  ;;  %v9218_v45 = vld [vmem:[#allocation7 + $0x4c0] ss:$16 sps:$4 sm:$0xff]   ;;  %v9221_v46 = vld [vmem:[#allocation7 + $0x4c8] ss:$16 sps:$4 sm:$0xff]  }
 0x2b9   :  { %7511 = vmatprep.subr.bf16.mxu1 %v9157_v48  ;;  %v9226_v48 = vld [vmem:[#allocation7 + $0x4e4] ss:$16 sps:$4 sm:$0xff]  }
 0x2bb   :  { %7168 = vmatpush1.bf16.msra.mxu0 %v9152_v49  ;;  %v9229_v49 = vld [vmem:[#allocation7 + $0x4ec] ss:$16 sps:$4 sm:$0xff]  }
 0x2bc   :  { %7512 = vmatpush1.bf16.msra.mxu1 %v9155_v50  ;;  %7169 = vmatprep.subr.bf16.mxu0 %v9160_v51  ;;  %v9224_v50 = vld [vmem:[#allocation7 + $0x4e0] ss:$16 sps:$4 sm:$0xff]   ;;  %v9227_v51 = vld [vmem:[#allocation7 + $0x4e8] ss:$16 sps:$4 sm:$0xff]  }
 0x2bd   :  { %7513 = vmatprep.subr.bf16.mxu1 %v9163_v52  ;;  %v9232_v52 = vld [vmem:[#allocation7 + $0x504] ss:$16 sps:$4 sm:$0xff]  }
 0x2bf   :  { %7170 = vmatpush1.bf16.msra.mxu0 %v9158_v55  ;;  %v9235_v55 = vld [vmem:[#allocation7 + $0x50c] ss:$16 sps:$4 sm:$0xff]  }
 0x2c0   :  { %7514 = vmatpush1.bf16.msra.mxu1 %v9161_v57  ;;  %7171 = vmatprep.subr.bf16.mxu0 %v9166_v0  ;;  %v9230_v57 = vld [vmem:[#allocation7 + $0x500] ss:$16 sps:$4 sm:$0xff]   ;;  %v9233_v0 = vld [vmem:[#allocation7 + $0x508] ss:$16 sps:$4 sm:$0xff]  }
 0x2c1   :  { %7515 = vmatprep.subr.bf16.mxu1 %v9169_v1  ;;  %v9238_v1 = vld [vmem:[#allocation7 + $0x524] ss:$16 sps:$4 sm:$0xff]  }
 0x2c3   :  { %7172 = vmatpush1.bf16.msra.mxu0 %v9164_v2  ;;  %v9241_v2 = vld [vmem:[#allocation7 + $0x52c] ss:$16 sps:$4 sm:$0xff]  }
 0x2c4   :  { %7516 = vmatpush1.bf16.msra.mxu1 %v9167_v4  ;;  %7173 = vmatprep.subr.bf16.mxu0 %v9172_v5  ;;  %v9236_v4 = vld [vmem:[#allocation7 + $0x520] ss:$16 sps:$4 sm:$0xff]   ;;  %v9239_v5 = vld [vmem:[#allocation7 + $0x528] ss:$16 sps:$4 sm:$0xff]  }
 0x2c5   :  { %7517 = vmatprep.subr.bf16.mxu1 %v9175_v59  ;;  %v9244_v59 = vld [vmem:[#allocation7 + $0x544] ss:$16 sps:$4 sm:$0xff]  }
 0x2c7   :  { %7174 = vmatpush1.bf16.msra.mxu0 %v9170_v6  ;;  %v9247_v6 = vld [vmem:[#allocation7 + $0x54c] ss:$16 sps:$4 sm:$0xff]  }
 0x2c8   :  { %7518 = vmatpush1.bf16.msra.mxu1 %v9173_v7  ;;  %7175 = vmatprep.subr.bf16.mxu0 %v9178_v8  ;;  %v9242_v7 = vld [vmem:[#allocation7 + $0x540] ss:$16 sps:$4 sm:$0xff]   ;;  %v9245_v8 = vld [vmem:[#allocation7 + $0x548] ss:$16 sps:$4 sm:$0xff]  }
 0x2c9   :  { %7519 = vmatprep.subr.bf16.mxu1 %v9181_v9  ;;  %v9250_v9 = vld [vmem:[#allocation7 + $0x564] ss:$16 sps:$4 sm:$0xff]  }
 0x2cb   :  { %7176 = vmatpush1.bf16.msra.mxu0 %v9176_v10  ;;  %v9253_v10 = vld [vmem:[#allocation7 + $0x56c] ss:$16 sps:$4 sm:$0xff]  }
 0x2cc   :  { %7520 = vmatpush1.bf16.msra.mxu1 %v9179_v24  ;;  %7188 = vmatprep.subr.bf16.mxu0 %v9184_v29  ;;  %v9248_v24 = vld [vmem:[#allocation7 + $0x560] ss:$16 sps:$4 sm:$0xff]   ;;  %v9251_v29 = vld [vmem:[#allocation7 + $0x568] ss:$16 sps:$4 sm:$0xff]  }
 0x2cd   :  { %7532 = vmatprep.subr.bf16.mxu1 %v9187_v11  ;;  %v9256_v11 = vld [vmem:[#allocation7 + $0x584] ss:$16 sps:$4 sm:$0xff]  }
 0x2ce   :  { %7178 = vmatmul.mubr.bf16.vlgmr.msra.gmra.mrb[16].mxu0 %v10050_v58 }
 0x2cf   :  { %7522 = vmatmul.mubr.bf16.vlgmr.msra.gmra.mrb[16].mxu1 %v10050_v58  ;;  %7189 = vmatpush1.bf16.msra.mxu0 %v9182_v12  ;;  %v9205_v58 = vld [vmem:[#allocation7 + $0x46c] ss:$16 sps:$4 sm:$0xff]  }
 0x2d0   :  { %7220 = vmatprep.mubr.bf16.mxu0 %v10090_v38  ;;  %7533 = vmatpush1.bf16.msra.mxu1 %v9185_v13  ;;  %v9259_v12 = vld [vmem:[#allocation7 + $0x58c] ss:$16 sps:$4 sm:$0xff]   ;;  %v9254_v13 = vld [vmem:[#allocation7 + $0x580] ss:$16 sps:$4 sm:$0xff]  }
 0x2d1   :  { %7564 = vmatprep.mubr.bf16.mxu1 %v10090_v38  ;;  %7190 = vmatprep.subr.bf16.mxu0 %v9190_v62  ;;  %v9206_v38 = vld [vmem:[#allocation7 + $0x480] ss:$16 sps:$4 sm:$0xff]   ;;  %v9257_v62 = vld [vmem:[#allocation7 + $0x588] ss:$16 sps:$4 sm:$0xff]  }
 0x2d2   :  { %7534 = vmatprep.subr.bf16.mxu1 %v9193_v14  ;;  %v9262_v14 = vld [vmem:[#allocation7 + $0x5a4] ss:$16 sps:$4 sm:$0xff]  }
 0x2d3   :  { %7191 = vmatpush1.bf16.msra.mxu0 %v9188_v15  ;;  %v9265_v15 = vld [vmem:[#allocation7 + $0x5ac] ss:$16 sps:$4 sm:$0xff]  }
 0x2d4   :  { %7535 = vmatpush1.bf16.msra.mxu1 %v9191_v16  ;;  %7192 = vmatprep.subr.bf16.mxu0 %v9196_v17  ;;  %v9260_v16 = vld [vmem:[#allocation7 + $0x5a0] ss:$16 sps:$4 sm:$0xff]   ;;  %v9263_v17 = vld [vmem:[#allocation7 + $0x5a8] ss:$16 sps:$4 sm:$0xff]  }
 0x2d5   :  { %7536 = vmatprep.subr.bf16.mxu1 %v9199_v18  ;;  %v9268_v18 = vld [vmem:[#allocation7 + $0x5c4] ss:$16 sps:$4 sm:$0xff]  }
 0x2d7   :  { %7193 = vmatpush1.bf16.msra.mxu0 %v9194_v19  ;;  %v9271_v19 = vld [vmem:[#allocation7 + $0x5cc] ss:$16 sps:$4 sm:$0xff]  }
 0x2d8   :  { %7537 = vmatpush1.bf16.msra.mxu1 %v9197_v20  ;;  %7194 = vmatprep.subr.bf16.mxu0 %v9202_v21  ;;  %v9266_v20 = vld [vmem:[#allocation7 + $0x5c0] ss:$16 sps:$4 sm:$0xff]   ;;  %v9269_v21 = vld [vmem:[#allocation7 + $0x5c8] ss:$16 sps:$4 sm:$0xff]  }
 0x2d9   :  { %7538 = vmatprep.subr.bf16.mxu1 %v9205_v58  ;;  %v9274_v58 = vld [vmem:[#allocation7 + $0x5e4] ss:$16 sps:$4 sm:$0xff]  }
 0x2db   :  { %7195 = vmatpush1.bf16.msra.mxu0 %v9200_v23  ;;  %v9277_v23 = vld [vmem:[#allocation7 + $0x5ec] ss:$16 sps:$4 sm:$0xff]  }
 0x2dc   :  { %7539 = vmatpush1.bf16.msra.mxu1 %v9203_v26  ;;  %7196 = vmatprep.subr.bf16.mxu0 %v9208_v32  ;;  %v9272_v26 = vld [vmem:[#allocation7 + $0x5e0] ss:$16 sps:$4 sm:$0xff]   ;;  %v9275_v32 = vld [vmem:[#allocation7 + $0x5e8] ss:$16 sps:$4 sm:$0xff]  }
 0x2dd   :  { %7540 = vmatprep.subr.bf16.mxu1 %v9211_v3  ;;  %v9280_v3 = vld [vmem:[#allocation7 + $0x604] ss:$16 sps:$4 sm:$0xff]  }
 0x2df   :  { %7197 = vmatpush1.bf16.msra.mxu0 %v9206_v38  ;;  %v9283_v38 = vld [vmem:[#allocation7 + $0x60c] ss:$16 sps:$4 sm:$0xff]  }
 0x2e0   :  { %7541 = vmatpush1.bf16.msra.mxu1 %v9209_v35  ;;  %7198 = vmatprep.subr.bf16.mxu0 %v9214_v39  ;;  %v9278_v35 = vld [vmem:[#allocation7 + $0x600] ss:$16 sps:$4 sm:$0xff]   ;;  %v9281_v39 = vld [vmem:[#allocation7 + $0x608] ss:$16 sps:$4 sm:$0xff]  }
 0x2e1   :  { %7542 = vmatprep.subr.bf16.mxu1 %v9217_v40  ;;  %v9286_v40 = vld [vmem:[#allocation7 + $0x624] ss:$16 sps:$4 sm:$0xff]  }
 0x2e3   :  { %7199 = vmatpush1.bf16.msra.mxu0 %v9212_v41  ;;  %v9289_v41 = vld [vmem:[#allocation7 + $0x62c] ss:$16 sps:$4 sm:$0xff]  }
 0x2e4   :  { %7543 = vmatpush1.bf16.msra.mxu1 %v9215_v43  ;;  %7200 = vmatprep.subr.bf16.mxu0 %v9220_v44  ;;  %v9284_v43 = vld [vmem:[#allocation7 + $0x620] ss:$16 sps:$4 sm:$0xff]   ;;  %v9287_v44 = vld [vmem:[#allocation7 + $0x628] ss:$16 sps:$4 sm:$0xff]  }
 0x2e5   :  { %7544 = vmatprep.subr.bf16.mxu1 %v9223_v56  ;;  %v9292_v56 = vld [vmem:[#allocation7 + $0x644] ss:$16 sps:$4 sm:$0xff]  }
 0x2e7   :  { %7201 = vmatpush1.bf16.msra.mxu0 %v9218_v45  ;;  %v9295_v45 = vld [vmem:[#allocation7 + $0x64c] ss:$16 sps:$4 sm:$0xff]  }
 0x2e8   :  { %7545 = vmatpush1.bf16.msra.mxu1 %v9221_v46  ;;  %7202 = vmatprep.subr.bf16.mxu0 %v9226_v48  ;;  %v9290_v46 = vld [vmem:[#allocation7 + $0x640] ss:$16 sps:$4 sm:$0xff]   ;;  %v9293_v48 = vld [vmem:[#allocation7 + $0x648] ss:$16 sps:$4 sm:$0xff]  }
 0x2e9   :  { %7546 = vmatprep.subr.bf16.mxu1 %v9229_v49  ;;  %v9298_v49 = vld [vmem:[#allocation7 + $0x664] ss:$16 sps:$4 sm:$0xff]  }
 0x2eb   :  { %7203 = vmatpush1.bf16.msra.mxu0 %v9224_v50  ;;  %v9296_v50 = vld [vmem:[#allocation7 + $0x660] ss:$16 sps:$4 sm:$0xff]  }
 0x2ec   :  { %7547 = vmatpush1.bf16.msra.mxu1 %v9227_v51  ;;  %7204 = vmatprep.subr.bf16.mxu0 %v9232_v52  ;;  %v9299_v51 = vld [vmem:[#allocation7 + $0x668] ss:$16 sps:$4 sm:$0xff]   ;;  %v9304_v52 = vld [vmem:[#allocation7 + $0x684] ss:$16 sps:$4 sm:$0xff]  }
 0x2ed   :  { %7548 = vmatprep.subr.bf16.mxu1 %v9235_v55  ;;  %v9307_v55 = vld [vmem:[#allocation7 + $0x68c] ss:$16 sps:$4 sm:$0xff]  }
 0x2ef   :  { %7205 = vmatpush1.bf16.msra.mxu0 %v9230_v57  ;;  %v9305_v57 = vld [vmem:[#allocation7 + $0x688] ss:$16 sps:$4 sm:$0xff]  }
 0x2f0   :  { %7549 = vmatpush1.bf16.msra.mxu1 %v9233_v0  ;;  %7206 = vmatprep.subr.bf16.mxu0 %v9238_v1  ;;  %v9310_v0 = vld [vmem:[#allocation7 + $0x6a4] ss:$16 sps:$4 sm:$0xff]   ;;  %v9313_v1 = vld [vmem:[#allocation7 + $0x6ac] ss:$16 sps:$4 sm:$0xff]  }
 0x2f1   :  { %7550 = vmatprep.subr.bf16.mxu1 %v9241_v2  ;;  %v677_v2 = vrot.slane %v10102_v34, %v644_v22  ;;  %v9319_v22 = vld [vmem:[#allocation7 + $0x6cc] ss:$16 sps:$4 sm:$0xff]  }
 0x2f3   :  { %7207 = vmatpush1.bf16.msra.mxu0 %v9236_v4  ;;  %v685_v4 = vrot.slane %v10102_v34, %v652_v27 }
 0x2f4   :  { %7551 = vmatpush1.bf16.msra.mxu1 %v9239_v5  ;;  %7208 = vmatprep.subr.bf16.mxu0 %v9244_v59  ;;  %v681_v5 = vrot.slane %v10102_v34, %v648_v28  ;;  %v9308_v59 = vld [vmem:[#allocation7 + $0x6a0] ss:$16 sps:$4 sm:$0xff]  }
 0x2f5   :  { %7552 = vmatprep.subr.bf16.mxu1 %v9247_v6  ;;  %v689_v6 = vrot.slane %v10102_v34, %v656_v31  ;;  %v9314_v28 = vld [vmem:[#allocation7 + $0x6c0] ss:$16 sps:$4 sm:$0xff]   ;;  %v9317_v34 = vld [vmem:[#allocation7 + $0x6c8] ss:$16 sps:$4 sm:$0xff]  }
 0x2f7   :  { %7209 = vmatpush1.bf16.msra.mxu0 %v9242_v7  ;;  %v9311_v7 = vld [vmem:[#allocation7 + $0x6a8] ss:$16 sps:$4 sm:$0xff]  }
 0x2f8   :  { %7553 = vmatpush1.bf16.msra.mxu1 %v9245_v8  ;;  %7210 = vmatprep.subr.bf16.mxu0 %v9250_v9  ;;  %v9316_v8 = vld [vmem:[#allocation7 + $0x6c4] ss:$16 sps:$4 sm:$0xff]  }
 0x2f9   :  { %7554 = vmatprep.subr.bf16.mxu1 %v9253_v10 }
 0x2fb   :  { %7211 = vmatpush1.bf16.msra.mxu0 %v9248_v24 }
 0x2fc   :  { %7555 = vmatpush1.bf16.msra.mxu1 %v9251_v29  ;;  %7212 = vmatprep.subr.bf16.mxu0 %v9256_v11 }
 0x2fd   :  { %7556 = vmatprep.subr.bf16.mxu1 %v9259_v12 }
 0x2ff   :  { %7213 = vmatpush1.bf16.msra.mxu0 %v9254_v13 }
 0x300   :  { %7557 = vmatpush1.bf16.msra.mxu1 %v9257_v62  ;;  %7214 = vmatprep.subr.bf16.mxu0 %v9262_v14 }
 0x301   :  { %7558 = vmatprep.subr.bf16.mxu1 %v9265_v15  ;;  %v9322_v15 = vld [vmem:[#allocation7 + $0x6e4] ss:$16 sps:$4 sm:$0xff]  }
 0x303   :  { %7215 = vmatpush1.bf16.msra.mxu0 %v9260_v16 }
 0x304   :  { %7559 = vmatpush1.bf16.msra.mxu1 %v9263_v17  ;;  %7216 = vmatprep.subr.bf16.mxu0 %v9268_v18 }
 0x305   :  { %7560 = vmatprep.subr.bf16.mxu1 %v9271_v19  ;;  %v9325_v19 = vld [vmem:[#allocation7 + $0x6ec] ss:$16 sps:$4 sm:$0xff]  }
 0x307   :  { %7217 = vmatpush1.bf16.msra.mxu0 %v9266_v20 }
 0x308   :  { %7561 = vmatpush1.bf16.msra.mxu1 %v9269_v21  ;;  %7218 = vmatprep.subr.bf16.mxu0 %v9274_v58 }
 0x309   :  { %7562 = vmatprep.subr.bf16.mxu1 %v9277_v23 }
 0x30b   :  { %7219 = vmatpush1.bf16.msra.mxu0 %v9272_v26 }
 0x30c   :  { %7563 = vmatpush1.bf16.msra.mxu1 %v9275_v32  ;;  %7231 = vmatprep.subr.bf16.mxu0 %v9280_v3 }
 0x30d   :  { %7575 = vmatprep.subr.bf16.mxu1 %v9283_v38  ;;  %v9320_v38 = vld [vmem:[#allocation7 + $0x6e0] ss:$16 sps:$4 sm:$0xff]  }
 0x30e   :  { %7221 = vmatmul.mubr.bf16.vlgmr.msra.gmra.mrb[16].mxu0 %v10086_v33 }
 0x30f   :  { %7565 = vmatmul.mubr.bf16.vlgmr.msra.gmra.mrb[16].mxu1 %v10086_v33  ;;  %7232 = vmatpush1.bf16.msra.mxu0 %v9278_v35  ;;  %v9301_v33 = vld [vmem:[#allocation7 + $0x66c] ss:$16 sps:$4 sm:$0xff]  }
 0x310   :  { %7263 = vmatprep.mubr.bf16.mxu0 %v10092_v42  ;;  %7576 = vmatpush1.bf16.msra.mxu1 %v9281_v39 }
 0x311   :  { %7607 = vmatprep.mubr.bf16.mxu1 %v10092_v42  ;;  %7233 = vmatprep.subr.bf16.mxu0 %v9286_v40  ;;  %v9302_v42 = vld [vmem:[#allocation7 + $0x680] ss:$16 sps:$4 sm:$0xff]  }
 0x312   :  { %7577 = vmatprep.subr.bf16.mxu1 %v9289_v41  ;;  %v9323_v41 = vld [vmem:[#allocation7 + $0x6e8] ss:$16 sps:$4 sm:$0xff]  }
 0x313   :  { %7234 = vmatpush1.bf16.msra.mxu0 %v9284_v43  ;;  %v9328_v43 = vld [vmem:[#allocation7 + $0x704] ss:$16 sps:$4 sm:$0xff]  }
 0x314   :  { %7578 = vmatpush1.bf16.msra.mxu1 %v9287_v44  ;;  %7235 = vmatprep.subr.bf16.mxu0 %v9292_v56 }
 0x315   :  { %7579 = vmatprep.subr.bf16.mxu1 %v9295_v45  ;;  %v9331_v45 = vld [vmem:[#allocation7 + $0x70c] ss:$16 sps:$4 sm:$0xff]  }
 0x317   :  { %7236 = vmatpush1.bf16.msra.mxu0 %v9290_v46 }
 0x318   :  { %7580 = vmatpush1.bf16.msra.mxu1 %v9293_v48  ;;  %7237 = vmatprep.subr.bf16.mxu0 %v9298_v49  ;;  %v9326_v48 = vld [vmem:[#allocation7 + $0x700] ss:$16 sps:$4 sm:$0xff]   ;;  %v9329_v49 = vld [vmem:[#allocation7 + $0x708] ss:$16 sps:$4 sm:$0xff]  }
 0x319   :  { %7581 = vmatprep.subr.bf16.mxu1 %v9301_v33  ;;  %v9334_v33 = vld [vmem:[#allocation7 + $0x724] ss:$16 sps:$4 sm:$0xff]  }
 0x31b   :  { %7238 = vmatpush1.bf16.msra.mxu0 %v9296_v50  ;;  %v9337_v50 = vld [vmem:[#allocation7 + $0x72c] ss:$16 sps:$4 sm:$0xff]  }
 0x31c   :  { %7582 = vmatpush1.bf16.msra.mxu1 %v9299_v51  ;;  %7239 = vmatprep.subr.bf16.mxu0 %v9304_v52  ;;  %v9332_v51 = vld [vmem:[#allocation7 + $0x720] ss:$16 sps:$4 sm:$0xff]   ;;  %v9335_v52 = vld [vmem:[#allocation7 + $0x728] ss:$16 sps:$4 sm:$0xff]  }
 0x31d   :  { %7583 = vmatprep.subr.bf16.mxu1 %v9307_v55  ;;  %v9340_v55 = vld [vmem:[#allocation7 + $0x744] ss:$16 sps:$4 sm:$0xff]  }
 0x31f   :  { %7240 = vmatpush1.bf16.msra.mxu0 %v9302_v42  ;;  %v9343_v42 = vld [vmem:[#allocation7 + $0x74c] ss:$16 sps:$4 sm:$0xff]  }
 0x320   :  { %7584 = vmatpush1.bf16.msra.mxu1 %v9305_v57  ;;  %7241 = vmatprep.subr.bf16.mxu0 %v9310_v0  ;;  %v9338_v57 = vld [vmem:[#allocation7 + $0x740] ss:$16 sps:$4 sm:$0xff]   ;;  %v9341_v0 = vld [vmem:[#allocation7 + $0x748] ss:$16 sps:$4 sm:$0xff]  }
 0x321   :  { %v3879_v9 = vpop.f32.mrb[12].mxu0  ;;  %7585 = vmatprep.subr.bf16.mxu1 %v9313_v1  ;;  %v3965_v24 = vpop.f32.mrb[12].mxu1  ;;  %v9346_v1 = vld [vmem:[#allocation7 + $0x764] ss:$16 sps:$4 sm:$0xff]  }
 0x322   :  { %v8877_v10 = vadd.f32 %v3879_v9, %v677_v2  ;;  %v3881_v29 = vpop.f32.mrb[13].mxu0  ;;  %v8881_v27 = vadd.f32 %v3965_v24, %v685_v4  ;;  %v3967_v12 = vpop.f32.mrb[13].mxu1  ;;  %v9358_v9 = vld [vmem:[#allocation7 + $0x7a4] ss:$16 sps:$4 sm:$0xff]   ;;  %v9359_v24 = vld [vmem:[#allocation7 + $0x7a8] ss:$16 sps:$4 sm:$0xff]  }
 0x323   :  { %v8878_v11 = vadd.f32 %v3881_v29, %v681_v5  ;;  %v3883_v13 = vpop.f32.mrb[14].mxu0  ;;  %7242 = vmatpush1.bf16.msra.mxu0 %v9308_v59  ;;  %v8882_v62 = vadd.f32 %v3967_v12, %v689_v6  ;;  %v3969_v47 = vpop.f32.mrb[14].mxu1  ;;  %v9352_v59 = vld [vmem:[#allocation7 + $0x784] ss:$16 sps:$4 sm:$0xff]   ;;  %v9365_v12 = vld [vmem:[#allocation7 + $0x7c8] ss:$16 sps:$4 sm:$0xff]  }
 0x324   :  { %v8879_v14 = vadd.f32 %v3883_v13, %v677_v2  ;;  %7586 = vmatpush1.bf16.msra.mxu1 %v9311_v7  ;;  %v3885_v31 = vpop.f32.mrb[15].mxu0  ;;  %7243 = vmatprep.subr.bf16.mxu0 %v9316_v8  ;;  %v8883_v16 = vadd.f32 %v3969_v47, %v685_v4  ;;  %v3971_v18 = vpop.f32.mrb[15].mxu1  ;;  %v3986_v20 = vmax.f32 %v8877_v10, 0.0  ;;  %v3988_v23 = vmax.f32 %v8881_v27, 0.0  ;;  %v9349_v2 = vld [vmem:[#allocation7 + $0x76c] ss:$16 sps:$4 sm:$0xff]  }
 0x325   :  { %v8880_v17 = vadd.f32 %v3885_v31, %v681_v5  ;;  %7587 = vmatprep.subr.bf16.mxu1 %v9319_v22  ;;  %v8884_v58 = vadd.f32 %v3971_v18, %v689_v6  ;;  %v3987_v26 = vmax.f32 %v8878_v11, 0.0  ;;  %v3989_v35 = vmax.f32 %v8882_v62, 0.0  ;;  %v9344_v4 = vld [vmem:[#allocation7 + $0x760] ss:$16 sps:$4 sm:$0xff]   ;;  %v9347_v5 = vld [vmem:[#allocation7 + $0x768] ss:$16 sps:$4 sm:$0xff]  }
 0x326   :  { %v4002_v21 = vmax.f32 %v8879_v14, 0.0  ;;  %v4004_v32 = vmax.f32 %v8883_v16, 0.0  ;;  %v9355_v6 = vld [vmem:[#allocation7 + $0x78c] ss:$16 sps:$4 sm:$0xff]   ;;  %v9350_v7 = vld [vmem:[#allocation7 + $0x780] ss:$16 sps:$4 sm:$0xff]  }
 0x327   :  { %v4003_v3 = vmax.f32 %v8880_v17, 0.0  ;;  %7244 = vmatpush1.bf16.msra.mxu0 %v9314_v28  ;;  %v4005_v40 = vmax.f32 %v8884_v58, 0.0  ;;  %v9353_v8 = vld [vmem:[#allocation7 + $0x788] ss:$16 sps:$4 sm:$0xff]   ;;  %v9361_v22 = vld [vmem:[#allocation7 + $0x7ac] ss:$16 sps:$4 sm:$0xff]  }
 0x328   :  { %v10140_v39 = vpack.c.bf16 %v4002_v21, %v3986_v20  ;;  %7588 = vmatpush1.bf16.msra.mxu1 %v9317_v34  ;;  %7245 = vmatprep.subr.bf16.mxu0 %v9322_v15  ;;  %v10142_v44 = vpack.c.bf16 %v4004_v32, %v3988_v23  ;;  %v9356_v10 = vld [vmem:[#allocation7 + $0x7a0] ss:$16 sps:$4 sm:$0xff]   ;;  %v9364_v29 = vld [vmem:[#allocation7 + $0x7c4] ss:$16 sps:$4 sm:$0xff]   ;;  %v9367_v27 = vld [vmem:[#allocation7 + $0x7cc] ss:$16 sps:$4 sm:$0xff]  }
 0x329   :  { %v10144_v56 = vpack.c.bf16 %v4003_v3, %v3987_v26  ;;  %7589 = vmatprep.subr.bf16.mxu1 %v9325_v19  ;;  %v10146_v46 = vpack.c.bf16 %v4005_v40, %v3989_v35  ;;  %v9362_v11 = vld [vmem:[#allocation7 + $0x7c0] ss:$16 sps:$4 sm:$0xff]   ;;  %v9370_v13 = vld [vmem:[#allocation7 + $0x7e4] ss:$16 sps:$4 sm:$0xff]   ;;  %v9373_v28 = vld [vmem:[#allocation7 + $0x7ec] ss:$16 sps:$4 sm:$0xff]  }
 0x32a   :  { %v9368_v62 = vld [vmem:[#allocation7 + $0x7e0] ss:$16 sps:$4 sm:$0xff]   ;;  %v9371_v14 = vld [vmem:[#allocation7 + $0x7e8] ss:$16 sps:$4 sm:$0xff]   ;;  %v9376_v47 = vld [vmem:[#allocation7 + $0x804] ss:$16 sps:$4 sm:$0xff]  }
 0x32b   :  { %7246 = vmatpush1.bf16.msra.mxu0 %v9320_v38  ;;  %v9379_v31 = vld [vmem:[#allocation7 + $0x80c] ss:$16 sps:$4 sm:$0xff]   ;;  %v9374_v34 = vld [vmem:[#allocation7 + $0x800] ss:$16 sps:$4 sm:$0xff]   ;;  %v9377_v15 = vld [vmem:[#allocation7 + $0x808] ss:$16 sps:$4 sm:$0xff]  }
 0x32c   :  { %7590 = vmatpush1.bf16.msra.mxu1 %v9323_v41  ;;  %7247 = vmatprep.subr.bf16.mxu0 %v9328_v43  ;;  %v9382_v16 = vld [vmem:[#allocation7 + $0x824] ss:$16 sps:$4 sm:$0xff]   ;;  %v9385_v17 = vld [vmem:[#allocation7 + $0x82c] ss:$16 sps:$4 sm:$0xff]   ;;  %v9380_v18 = vld [vmem:[#allocation7 + $0x820] ss:$16 sps:$4 sm:$0xff]  }
 0x32d   :  { %7591 = vmatprep.subr.bf16.mxu1 %v9331_v45  ;;  %v9383_v19 = vld [vmem:[#allocation7 + $0x828] ss:$16 sps:$4 sm:$0xff]   ;;  %v9388_v20 = vld [vmem:[#allocation7 + $0x844] ss:$16 sps:$4 sm:$0xff]   ;;  %v9391_v21 = vld [vmem:[#allocation7 + $0x84c] ss:$16 sps:$4 sm:$0xff]  }
 0x32e   :  { %v9386_v58 = vld [vmem:[#allocation7 + $0x840] ss:$16 sps:$4 sm:$0xff]   ;;  %v9389_v23 = vld [vmem:[#allocation7 + $0x848] ss:$16 sps:$4 sm:$0xff]   ;;  %v9394_v26 = vld [vmem:[#allocation7 + $0x864] ss:$16 sps:$4 sm:$0xff]  }
 0x32f   :  { %7248 = vmatpush1.bf16.msra.mxu0 %v9326_v48  ;;  %v9392_v32 = vld [vmem:[#allocation7 + $0x860] ss:$16 sps:$4 sm:$0xff]   ;;  %v9395_v3 = vld [vmem:[#allocation7 + $0x868] ss:$16 sps:$4 sm:$0xff]   ;;  %v9400_v38 = vld [vmem:[#allocation7 + $0x884] ss:$16 sps:$4 sm:$0xff]  }
 0x330   :  { %7592 = vmatpush1.bf16.msra.mxu1 %v9329_v49  ;;  %7249 = vmatprep.subr.bf16.mxu0 %v9334_v33  ;;  %v9403_v35 = vld [vmem:[#allocation7 + $0x88c] ss:$16 sps:$4 sm:$0xff]   ;;  %v9401_v40 = vld [vmem:[#allocation7 + $0x888] ss:$16 sps:$4 sm:$0xff]   ;;  %v9406_v41 = vld [vmem:[#allocation7 + $0x8a4] ss:$16 sps:$4 sm:$0xff]  }
 0x331   :  { %7593 = vmatprep.subr.bf16.mxu1 %v9337_v50  ;;  %v9409_v43 = vld [vmem:[#allocation7 + $0x8ac] ss:$16 sps:$4 sm:$0xff]   ;;  %v9404_v45 = vld [vmem:[#allocation7 + $0x8a0] ss:$16 sps:$4 sm:$0xff]   ;;  %v9407_v48 = vld [vmem:[#allocation7 + $0x8a8] ss:$16 sps:$4 sm:$0xff]  }
 0x332   :  { %v9412_v49 = vld [vmem:[#allocation7 + $0x8c4] ss:$16 sps:$4 sm:$0xff]   ;;  %v9415_v33 = vld [vmem:[#allocation7 + $0x8cc] ss:$16 sps:$4 sm:$0xff]   ;;  %v9410_v50 = vld [vmem:[#allocation7 + $0x8c0] ss:$16 sps:$4 sm:$0xff]  }
 0x333   :  { %7250 = vmatpush1.bf16.msra.mxu0 %v9332_v51  ;;  %v9413_v51 = vld [vmem:[#allocation7 + $0x8c8] ss:$16 sps:$4 sm:$0xff]  }
 0x334   :  { %7594 = vmatpush1.bf16.msra.mxu1 %v9335_v52  ;;  %7251 = vmatprep.subr.bf16.mxu0 %v9340_v55  ;;  %v9418_v52 = vld [vmem:[#allocation7 + $0x8e4] ss:$16 sps:$4 sm:$0xff]   ;;  %v9421_v55 = vld [vmem:[#allocation7 + $0x8ec] ss:$16 sps:$4 sm:$0xff]  }
 0x335   :  { %7595 = vmatprep.subr.bf16.mxu1 %v9343_v42  ;;  %v9416_v42 = vld [vmem:[#allocation7 + $0x8e0] ss:$16 sps:$4 sm:$0xff]  }
 0x337   :  { %7252 = vmatpush1.bf16.msra.mxu0 %v9338_v57  ;;  %v9419_v57 = vld [vmem:[#allocation7 + $0x8e8] ss:$16 sps:$4 sm:$0xff]  }
 0x338   :  { %7596 = vmatpush1.bf16.msra.mxu1 %v9341_v0  ;;  %7253 = vmatprep.subr.bf16.mxu0 %v9346_v1  ;;  %v9424_v0 = vld [vmem:[#allocation7 + $0x904] ss:$16 sps:$4 sm:$0xff]   ;;  %v9427_v1 = vld [vmem:[#allocation7 + $0x90c] ss:$16 sps:$4 sm:$0xff]  }
 0x339   :  { %7597 = vmatprep.subr.bf16.mxu1 %v9349_v2  ;;  %v9422_v2 = vld [vmem:[#allocation7 + $0x900] ss:$16 sps:$4 sm:$0xff]  }
 0x33b   :  { %7254 = vmatpush1.bf16.msra.mxu0 %v9344_v4  ;;  %v9425_v4 = vld [vmem:[#allocation7 + $0x908] ss:$16 sps:$4 sm:$0xff]  }
 0x33c   :  { %7598 = vmatpush1.bf16.msra.mxu1 %v9347_v5  ;;  %7255 = vmatprep.subr.bf16.mxu0 %v9352_v59  ;;  %v9430_v5 = vld [vmem:[#allocation7 + $0x924] ss:$16 sps:$4 sm:$0xff]   ;;  %v9433_v59 = vld [vmem:[#allocation7 + $0x92c] ss:$16 sps:$4 sm:$0xff]  }
 0x33d   :  { %7599 = vmatprep.subr.bf16.mxu1 %v9355_v6  ;;  %v9428_v6 = vld [vmem:[#allocation7 + $0x920] ss:$16 sps:$4 sm:$0xff]  }
 0x33f   :  { %7256 = vmatpush1.bf16.msra.mxu0 %v9350_v7  ;;  %v9431_v7 = vld [vmem:[#allocation7 + $0x928] ss:$16 sps:$4 sm:$0xff]  }
 0x340   :  { %7600 = vmatpush1.bf16.msra.mxu1 %v9353_v8  ;;  %7257 = vmatprep.subr.bf16.mxu0 %v9358_v9  ;;  %v9436_v8 = vld [vmem:[#allocation7 + $0x944] ss:$16 sps:$4 sm:$0xff]   ;;  %v9439_v9 = vld [vmem:[#allocation7 + $0x94c] ss:$16 sps:$4 sm:$0xff]  }
 0x341   :  { %7601 = vmatprep.subr.bf16.mxu1 %v9361_v22  ;;  %v9434_v22 = vld [vmem:[#allocation7 + $0x940] ss:$16 sps:$4 sm:$0xff]  }
 0x343   :  { %7258 = vmatpush1.bf16.msra.mxu0 %v9356_v10  ;;  %v9437_v10 = vld [vmem:[#allocation7 + $0x948] ss:$16 sps:$4 sm:$0xff]  }
 0x344   :  { %7602 = vmatpush1.bf16.msra.mxu1 %v9359_v24  ;;  %7259 = vmatprep.subr.bf16.mxu0 %v9364_v29  ;;  %v9442_v24 = vld [vmem:[#allocation7 + $0x964] ss:$16 sps:$4 sm:$0xff]   ;;  %v9445_v29 = vld [vmem:[#allocation7 + $0x96c] ss:$16 sps:$4 sm:$0xff]  }
 0x345   :  { %7603 = vmatprep.subr.bf16.mxu1 %v9367_v27  ;;  %v9440_v27 = vld [vmem:[#allocation7 + $0x960] ss:$16 sps:$4 sm:$0xff]  }
 0x347   :  { %7260 = vmatpush1.bf16.msra.mxu0 %v9362_v11  ;;  %v9443_v11 = vld [vmem:[#allocation7 + $0x968] ss:$16 sps:$4 sm:$0xff]  }
 0x348   :  { %7604 = vmatpush1.bf16.msra.mxu1 %v9365_v12  ;;  %7261 = vmatprep.subr.bf16.mxu0 %v9370_v13  ;;  %v9448_v12 = vld [vmem:[#allocation7 + $0x984] ss:$16 sps:$4 sm:$0xff]   ;;  %v9451_v13 = vld [vmem:[#allocation7 + $0x98c] ss:$16 sps:$4 sm:$0xff]  }
 0x349   :  { %7605 = vmatprep.subr.bf16.mxu1 %v9373_v28  ;;  %v9446_v28 = vld [vmem:[#allocation7 + $0x980] ss:$16 sps:$4 sm:$0xff]  }
 0x34b   :  { %7262 = vmatpush1.bf16.msra.mxu0 %v9368_v62  ;;  %v9449_v62 = vld [vmem:[#allocation7 + $0x988] ss:$16 sps:$4 sm:$0xff]  }
 0x34c   :  { %7606 = vmatpush1.bf16.msra.mxu1 %v9371_v14  ;;  %7274 = vmatprep.subr.bf16.mxu0 %v9376_v47  ;;  %v9454_v14 = vld [vmem:[#allocation7 + $0x9a4] ss:$16 sps:$4 sm:$0xff]   ;;  %v9457_v47 = vld [vmem:[#allocation7 + $0x9ac] ss:$16 sps:$4 sm:$0xff]  }
 0x34d   :  { %7618 = vmatprep.subr.bf16.mxu1 %v9379_v31  ;;  %v9452_v31 = vld [vmem:[#allocation7 + $0x9a0] ss:$16 sps:$4 sm:$0xff]  }
 0x34e   :  { %7264 = vmatmul.mubr.bf16.vlgmr.msra.gmra.mrb[16].mxu0 %v10088_v37 }
 0x34f   :  { %7608 = vmatmul.mubr.bf16.vlgmr.msra.gmra.mrb[16].mxu1 %v10088_v37  ;;  %7275 = vmatpush1.bf16.msra.mxu0 %v9374_v34  ;;  %v9397_v37 = vld [vmem:[#allocation7 + $0x86c] ss:$16 sps:$4 sm:$0xff]   ;;  %v9455_v34 = vld [vmem:[#allocation7 + $0x9a8] ss:$16 sps:$4 sm:$0xff]  }
 0x350   :  { %7306 = vmatprep.mubr.bf16.mxu0 %v10116_v25  ;;  %7619 = vmatpush1.bf16.msra.mxu1 %v9377_v15  ;;  %v9460_v15 = vld [vmem:[#allocation7 + $0x9c4] ss:$16 sps:$4 sm:$0xff]  }
 0x351   :  { %7650 = vmatprep.mubr.bf16.mxu1 %v10116_v25  ;;  %7276 = vmatprep.subr.bf16.mxu0 %v9382_v16  ;;  %v9398_v25 = vld [vmem:[#allocation7 + $0x880] ss:$16 sps:$4 sm:$0xff]   ;;  %v9463_v16 = vld [vmem:[#allocation7 + $0x9cc] ss:$16 sps:$4 sm:$0xff]  }
 0x352   :  { %7620 = vmatprep.subr.bf16.mxu1 %v9385_v17  ;;  %v9458_v17 = vld [vmem:[#allocation7 + $0x9c0] ss:$16 sps:$4 sm:$0xff]  }
 0x353   :  { %7277 = vmatpush1.bf16.msra.mxu0 %v9380_v18  ;;  %v9461_v18 = vld [vmem:[#allocation7 + $0x9c8] ss:$16 sps:$4 sm:$0xff]  }
 0x354   :  { %7621 = vmatpush1.bf16.msra.mxu1 %v9383_v19  ;;  %7278 = vmatprep.subr.bf16.mxu0 %v9388_v20  ;;  %v9466_v19 = vld [vmem:[#allocation7 + $0x9e4] ss:$16 sps:$4 sm:$0xff]   ;;  %v9469_v20 = vld [vmem:[#allocation7 + $0x9ec] ss:$16 sps:$4 sm:$0xff]  }
 0x355   :  { %7622 = vmatprep.subr.bf16.mxu1 %v9391_v21  ;;  %v9464_v21 = vld [vmem:[#allocation7 + $0x9e0] ss:$16 sps:$4 sm:$0xff]  }
 0x357   :  { %7279 = vmatpush1.bf16.msra.mxu0 %v9386_v58  ;;  %v9467_v58 = vld [vmem:[#allocation7 + $0x9e8] ss:$16 sps:$4 sm:$0xff]  }
 0x358   :  { %7623 = vmatpush1.bf16.msra.mxu1 %v9389_v23  ;;  %7280 = vmatprep.subr.bf16.mxu0 %v9394_v26  ;;  %v9472_v23 = vld [vmem:[#allocation7 + $0xa04] ss:$16 sps:$4 sm:$0xff]   ;;  %v9475_v26 = vld [vmem:[#allocation7 + $0xa0c] ss:$16 sps:$4 sm:$0xff]  }
 0x359   :  { %7624 = vmatprep.subr.bf16.mxu1 %v9397_v37  ;;  %v9470_v37 = vld [vmem:[#allocation7 + $0xa00] ss:$16 sps:$4 sm:$0xff]  }
 0x35b   :  { %7281 = vmatpush1.bf16.msra.mxu0 %v9392_v32  ;;  %v9473_v32 = vld [vmem:[#allocation7 + $0xa08] ss:$16 sps:$4 sm:$0xff]  }
 0x35c   :  { %7625 = vmatpush1.bf16.msra.mxu1 %v9395_v3  ;;  %7282 = vmatprep.subr.bf16.mxu0 %v9400_v38  ;;  %v9478_v3 = vld [vmem:[#allocation7 + $0xa24] ss:$16 sps:$4 sm:$0xff]   ;;  %v9481_v38 = vld [vmem:[#allocation7 + $0xa2c] ss:$16 sps:$4 sm:$0xff]  }
 0x35d   :  { %7626 = vmatprep.subr.bf16.mxu1 %v9403_v35  ;;  %v9476_v35 = vld [vmem:[#allocation7 + $0xa20] ss:$16 sps:$4 sm:$0xff]  }
 0x35f   :  { %7283 = vmatpush1.bf16.msra.mxu0 %v9398_v25  ;;  %v9479_v25 = vld [vmem:[#allocation7 + $0xa28] ss:$16 sps:$4 sm:$0xff]  }
 0x360   :  { %7627 = vmatpush1.bf16.msra.mxu1 %v9401_v40  ;;  %7284 = vmatprep.subr.bf16.mxu0 %v9406_v41  ;;  %v9484_v40 = vld [vmem:[#allocation7 + $0xa44] ss:$16 sps:$4 sm:$0xff]   ;;  %v9487_v41 = vld [vmem:[#allocation7 + $0xa4c] ss:$16 sps:$4 sm:$0xff]  }
 0x361   :  { %7628 = vmatprep.subr.bf16.mxu1 %v9409_v43  ;;  %v9482_v43 = vld [vmem:[#allocation7 + $0xa40] ss:$16 sps:$4 sm:$0xff]  }
 0x363   :  { %7285 = vmatpush1.bf16.msra.mxu0 %v9404_v45  ;;  %v9485_v45 = vld [vmem:[#allocation7 + $0xa48] ss:$16 sps:$4 sm:$0xff]  }
 0x364   :  { %7629 = vmatpush1.bf16.msra.mxu1 %v9407_v48  ;;  %7286 = vmatprep.subr.bf16.mxu0 %v9412_v49  ;;  %v9490_v48 = vld [vmem:[#allocation7 + $0xa64] ss:$16 sps:$4 sm:$0xff]   ;;  %v9488_v49 = vld [vmem:[#allocation7 + $0xa60] ss:$16 sps:$4 sm:$0xff]  }
 0x365   :  { %7630 = vmatprep.subr.bf16.mxu1 %v9415_v33  ;;  %v9491_v33 = vld [vmem:[#allocation7 + $0xa68] ss:$16 sps:$4 sm:$0xff]  }
 0x367   :  { %7287 = vmatpush1.bf16.msra.mxu0 %v9410_v50  ;;  %v9496_v50 = vld [vmem:[#allocation7 + $0xa84] ss:$16 sps:$4 sm:$0xff]  }
 0x368   :  { %7631 = vmatpush1.bf16.msra.mxu1 %v9413_v51  ;;  %7288 = vmatprep.subr.bf16.mxu0 %v9418_v52  ;;  %v9499_v51 = vld [vmem:[#allocation7 + $0xa8c] ss:$16 sps:$4 sm:$0xff]   ;;  %v9497_v52 = vld [vmem:[#allocation7 + $0xa88] ss:$16 sps:$4 sm:$0xff]  }
 0x369   :  { %7632 = vmatprep.subr.bf16.mxu1 %v9421_v55  ;;  %v9502_v55 = vld [vmem:[#allocation7 + $0xaa4] ss:$16 sps:$4 sm:$0xff]  }
 0x36b   :  { %7289 = vmatpush1.bf16.msra.mxu0 %v9416_v42  ;;  %v9505_v42 = vld [vmem:[#allocation7 + $0xaac] ss:$16 sps:$4 sm:$0xff]  }
 0x36c   :  { %7633 = vmatpush1.bf16.msra.mxu1 %v9419_v57  ;;  %7290 = vmatprep.subr.bf16.mxu0 %v9424_v0  ;;  %v9500_v57 = vld [vmem:[#allocation7 + $0xaa0] ss:$16 sps:$4 sm:$0xff]   ;;  %v9503_v0 = vld [vmem:[#allocation7 + $0xaa8] ss:$16 sps:$4 sm:$0xff]  }
 0x36d   :  { %7634 = vmatprep.subr.bf16.mxu1 %v9427_v1  ;;  %v9508_v1 = vld [vmem:[#allocation7 + $0xac4] ss:$16 sps:$4 sm:$0xff]  }
 0x36f   :  { %7291 = vmatpush1.bf16.msra.mxu0 %v9422_v2  ;;  %v9511_v2 = vld [vmem:[#allocation7 + $0xacc] ss:$16 sps:$4 sm:$0xff]  }
 0x370   :  { %7635 = vmatpush1.bf16.msra.mxu1 %v9425_v4  ;;  %7292 = vmatprep.subr.bf16.mxu0 %v9430_v5  ;;  %v9506_v4 = vld [vmem:[#allocation7 + $0xac0] ss:$16 sps:$4 sm:$0xff]   ;;  %v9509_v5 = vld [vmem:[#allocation7 + $0xac8] ss:$16 sps:$4 sm:$0xff]  }
 0x371   :  { %7636 = vmatprep.subr.bf16.mxu1 %v9433_v59  ;;  %v9514_v59 = vld [vmem:[#allocation7 + $0xae4] ss:$16 sps:$4 sm:$0xff]  }
 0x373   :  { %7293 = vmatpush1.bf16.msra.mxu0 %v9428_v6  ;;  %v9517_v6 = vld [vmem:[#allocation7 + $0xaec] ss:$16 sps:$4 sm:$0xff]  }
 0x374   :  { %7637 = vmatpush1.bf16.msra.mxu1 %v9431_v7  ;;  %7294 = vmatprep.subr.bf16.mxu0 %v9436_v8  ;;  %v9512_v7 = vld [vmem:[#allocation7 + $0xae0] ss:$16 sps:$4 sm:$0xff]   ;;  %v9515_v8 = vld [vmem:[#allocation7 + $0xae8] ss:$16 sps:$4 sm:$0xff]  }
 0x375   :  { %7638 = vmatprep.subr.bf16.mxu1 %v9439_v9  ;;  %v9520_v9 = vld [vmem:[#allocation7 + $0xb04] ss:$16 sps:$4 sm:$0xff]  }
 0x377   :  { %7295 = vmatpush1.bf16.msra.mxu0 %v9434_v22  ;;  %v9523_v22 = vld [vmem:[#allocation7 + $0xb0c] ss:$16 sps:$4 sm:$0xff]  }
 0x378   :  { %7639 = vmatpush1.bf16.msra.mxu1 %v9437_v10  ;;  %7296 = vmatprep.subr.bf16.mxu0 %v9442_v24  ;;  %v9518_v10 = vld [vmem:[#allocation7 + $0xb00] ss:$16 sps:$4 sm:$0xff]   ;;  %v9521_v24 = vld [vmem:[#allocation7 + $0xb08] ss:$16 sps:$4 sm:$0xff]  }
 0x379   :  { %7640 = vmatprep.subr.bf16.mxu1 %v9445_v29  ;;  %v9526_v29 = vld [vmem:[#allocation7 + $0xb24] ss:$16 sps:$4 sm:$0xff]  }
 0x37b   :  { %7297 = vmatpush1.bf16.msra.mxu0 %v9440_v27  ;;  %v9529_v27 = vld [vmem:[#allocation7 + $0xb2c] ss:$16 sps:$4 sm:$0xff]  }
 0x37c   :  { %7641 = vmatpush1.bf16.msra.mxu1 %v9443_v11  ;;  %7298 = vmatprep.subr.bf16.mxu0 %v9448_v12  ;;  %v9524_v11 = vld [vmem:[#allocation7 + $0xb20] ss:$16 sps:$4 sm:$0xff]   ;;  %v9527_v12 = vld [vmem:[#allocation7 + $0xb28] ss:$16 sps:$4 sm:$0xff]  }
 0x37d   :  { %7642 = vmatprep.subr.bf16.mxu1 %v9451_v13  ;;  %v9532_v13 = vld [vmem:[#allocation7 + $0xb44] ss:$16 sps:$4 sm:$0xff]  }
 0x37f   :  { %7299 = vmatpush1.bf16.msra.mxu0 %v9446_v28  ;;  %v9535_v28 = vld [vmem:[#allocation7 + $0xb4c] ss:$16 sps:$4 sm:$0xff]  }
 0x380   :  { %7643 = vmatpush1.bf16.msra.mxu1 %v9449_v62  ;;  %7300 = vmatprep.subr.bf16.mxu0 %v9454_v14  ;;  %v9530_v62 = vld [vmem:[#allocation7 + $0xb40] ss:$16 sps:$4 sm:$0xff]   ;;  %v9533_v14 = vld [vmem:[#allocation7 + $0xb48] ss:$16 sps:$4 sm:$0xff]  }
 0x381   :  { %7644 = vmatprep.subr.bf16.mxu1 %v9457_v47  ;;  %v9538_v47 = vld [vmem:[#allocation7 + $0xb64] ss:$16 sps:$4 sm:$0xff]  }
 0x383   :  { %7301 = vmatpush1.bf16.msra.mxu0 %v9452_v31  ;;  %v9541_v31 = vld [vmem:[#allocation7 + $0xb6c] ss:$16 sps:$4 sm:$0xff]  }
 0x384   :  { %7645 = vmatpush1.bf16.msra.mxu1 %v9455_v34  ;;  %7302 = vmatprep.subr.bf16.mxu0 %v9460_v15  ;;  %v9536_v34 = vld [vmem:[#allocation7 + $0xb60] ss:$16 sps:$4 sm:$0xff]   ;;  %v9539_v15 = vld [vmem:[#allocation7 + $0xb68] ss:$16 sps:$4 sm:$0xff]  }
 0x385   :  { %7646 = vmatprep.subr.bf16.mxu1 %v9463_v16  ;;  %v9544_v16 = vld [vmem:[#allocation7 + $0xb84] ss:$16 sps:$4 sm:$0xff]  }
 0x387   :  { %7303 = vmatpush1.bf16.msra.mxu0 %v9458_v17  ;;  %v9547_v17 = vld [vmem:[#allocation7 + $0xb8c] ss:$16 sps:$4 sm:$0xff]  }
 0x388   :  { %7647 = vmatpush1.bf16.msra.mxu1 %v9461_v18  ;;  %7304 = vmatprep.subr.bf16.mxu0 %v9466_v19  ;;  %v9542_v18 = vld [vmem:[#allocation7 + $0xb80] ss:$16 sps:$4 sm:$0xff]   ;;  %v9545_v19 = vld [vmem:[#allocation7 + $0xb88] ss:$16 sps:$4 sm:$0xff]  }
 0x389   :  { %7648 = vmatprep.subr.bf16.mxu1 %v9469_v20  ;;  %v9550_v20 = vld [vmem:[#allocation7 + $0xba4] ss:$16 sps:$4 sm:$0xff]  }
 0x38b   :  { %7305 = vmatpush1.bf16.msra.mxu0 %v9464_v21  ;;  %v9553_v21 = vld [vmem:[#allocation7 + $0xbac] ss:$16 sps:$4 sm:$0xff]  }
 0x38c   :  { %7649 = vmatpush1.bf16.msra.mxu1 %v9467_v58  ;;  %7317 = vmatprep.subr.bf16.mxu0 %v9472_v23  ;;  %v9548_v58 = vld [vmem:[#allocation7 + $0xba0] ss:$16 sps:$4 sm:$0xff]   ;;  %v9551_v23 = vld [vmem:[#allocation7 + $0xba8] ss:$16 sps:$4 sm:$0xff]  }
 0x38d   :  { %7661 = vmatprep.subr.bf16.mxu1 %v9475_v26  ;;  %v9556_v26 = vld [vmem:[#allocation7 + $0xbc4] ss:$16 sps:$4 sm:$0xff]  }
 0x38e   :  { %7307 = vmatmul.mubr.bf16.vlgmr.msra.gmra.mrb[16].mxu0 %v10112_v36 }
 0x38f   :  { %7651 = vmatmul.mubr.bf16.vlgmr.msra.gmra.mrb[16].mxu1 %v10112_v36  ;;  %7318 = vmatpush1.bf16.msra.mxu0 %v9470_v37  ;;  %v9493_v36 = vld [vmem:[#allocation7 + $0xa6c] ss:$16 sps:$4 sm:$0xff]  }
 0x390   :  { %7349 = vmatprep.mubr.bf16.mxu0 %v10118_v30  ;;  %7662 = vmatpush1.bf16.msra.mxu1 %v9473_v32  ;;  %v9559_v37 = vld [vmem:[#allocation7 + $0xbcc] ss:$16 sps:$4 sm:$0xff]   ;;  %v9554_v32 = vld [vmem:[#allocation7 + $0xbc0] ss:$16 sps:$4 sm:$0xff]  }
 0x391   :  { %7693 = vmatprep.mubr.bf16.mxu1 %v10118_v30  ;;  %7319 = vmatprep.subr.bf16.mxu0 %v9478_v3  ;;  %v9494_v30 = vld [vmem:[#allocation7 + $0xa80] ss:$16 sps:$4 sm:$0xff]   ;;  %v9557_v3 = vld [vmem:[#allocation7 + $0xbc8] ss:$16 sps:$4 sm:$0xff]  }
 0x392   :  { %7663 = vmatprep.subr.bf16.mxu1 %v9481_v38  ;;  %v9562_v38 = vld [vmem:[#allocation7 + $0xbe4] ss:$16 sps:$4 sm:$0xff]  }
 0x393   :  { %7320 = vmatpush1.bf16.msra.mxu0 %v9476_v35  ;;  %v9565_v35 = vld [vmem:[#allocation7 + $0xbec] ss:$16 sps:$4 sm:$0xff]  }
 0x394   :  { %7664 = vmatpush1.bf16.msra.mxu1 %v9479_v25  ;;  %7321 = vmatprep.subr.bf16.mxu0 %v9484_v40  ;;  %v9560_v25 = vld [vmem:[#allocation7 + $0xbe0] ss:$16 sps:$4 sm:$0xff]   ;;  %v9563_v40 = vld [vmem:[#allocation7 + $0xbe8] ss:$16 sps:$4 sm:$0xff]  }
 0x395   :  { %7665 = vmatprep.subr.bf16.mxu1 %v9487_v41  ;;  %v9568_v41 = vld [vmem:[#allocation7 + $0xc04] ss:$16 sps:$4 sm:$0xff]  }
 0x397   :  { %7322 = vmatpush1.bf16.msra.mxu0 %v9482_v43  ;;  %v9571_v43 = vld [vmem:[#allocation7 + $0xc0c] ss:$16 sps:$4 sm:$0xff]  }
 0x398   :  { %7666 = vmatpush1.bf16.msra.mxu1 %v9485_v45  ;;  %7323 = vmatprep.subr.bf16.mxu0 %v9490_v48  ;;  %v9566_v45 = vld [vmem:[#allocation7 + $0xc00] ss:$16 sps:$4 sm:$0xff]   ;;  %v9569_v48 = vld [vmem:[#allocation7 + $0xc08] ss:$16 sps:$4 sm:$0xff]  }
 0x399   :  { %7667 = vmatprep.subr.bf16.mxu1 %v9493_v36  ;;  %v9574_v36 = vld [vmem:[#allocation7 + $0xc24] ss:$16 sps:$4 sm:$0xff]  }
 0x39b   :  { %7324 = vmatpush1.bf16.msra.mxu0 %v9488_v49  ;;  %v9577_v49 = vld [vmem:[#allocation7 + $0xc2c] ss:$16 sps:$4 sm:$0xff]  }
 0x39c   :  { %7668 = vmatpush1.bf16.msra.mxu1 %v9491_v33  ;;  %7325 = vmatprep.subr.bf16.mxu0 %v9496_v50  ;;  %v9572_v33 = vld [vmem:[#allocation7 + $0xc20] ss:$16 sps:$4 sm:$0xff]   ;;  %v9575_v50 = vld [vmem:[#allocation7 + $0xc28] ss:$16 sps:$4 sm:$0xff]  }
 0x39d   :  { %7669 = vmatprep.subr.bf16.mxu1 %v9499_v51  ;;  %v9580_v51 = vld [vmem:[#allocation7 + $0xc44] ss:$16 sps:$4 sm:$0xff]  }
 0x39f   :  { %7326 = vmatpush1.bf16.msra.mxu0 %v9494_v30  ;;  %v9583_v30 = vld [vmem:[#allocation7 + $0xc4c] ss:$16 sps:$4 sm:$0xff]  }
 0x3a0   :  { %7670 = vmatpush1.bf16.msra.mxu1 %v9497_v52  ;;  %7327 = vmatprep.subr.bf16.mxu0 %v9502_v55  ;;  %v9578_v52 = vld [vmem:[#allocation7 + $0xc40] ss:$16 sps:$4 sm:$0xff]   ;;  %v9581_v55 = vld [vmem:[#allocation7 + $0xc48] ss:$16 sps:$4 sm:$0xff]  }
 0x3a1   :  { %7671 = vmatprep.subr.bf16.mxu1 %v9505_v42  ;;  %v9586_v42 = vld [vmem:[#allocation7 + $0xc64] ss:$16 sps:$4 sm:$0xff]  }
 0x3a3   :  { %7328 = vmatpush1.bf16.msra.mxu0 %v9500_v57  ;;  %v9584_v57 = vld [vmem:[#allocation7 + $0xc60] ss:$16 sps:$4 sm:$0xff]  }
 0x3a4   :  { %7672 = vmatpush1.bf16.msra.mxu1 %v9503_v0  ;;  %7329 = vmatprep.subr.bf16.mxu0 %v9508_v1  ;;  %v9587_v0 = vld [vmem:[#allocation7 + $0xc68] ss:$16 sps:$4 sm:$0xff]   ;;  %v9592_v1 = vld [vmem:[#allocation7 + $0xc84] ss:$16 sps:$4 sm:$0xff]  }
 0x3a5   :  { %7673 = vmatprep.subr.bf16.mxu1 %v9511_v2  ;;  %v9595_v2 = vld [vmem:[#allocation7 + $0xc8c] ss:$16 sps:$4 sm:$0xff]  }
 0x3a7   :  { %7330 = vmatpush1.bf16.msra.mxu0 %v9506_v4  ;;  %v9593_v4 = vld [vmem:[#allocation7 + $0xc88] ss:$16 sps:$4 sm:$0xff]  }
 0x3a8   :  { %7674 = vmatpush1.bf16.msra.mxu1 %v9509_v5  ;;  %7331 = vmatprep.subr.bf16.mxu0 %v9514_v59  ;;  %v9598_v5 = vld [vmem:[#allocation7 + $0xca4] ss:$16 sps:$4 sm:$0xff]   ;;  %v9601_v59 = vld [vmem:[#allocation7 + $0xcac] ss:$16 sps:$4 sm:$0xff]  }
 0x3a9   :  { %7675 = vmatprep.subr.bf16.mxu1 %v9517_v6  ;;  %v9596_v6 = vld [vmem:[#allocation7 + $0xca0] ss:$16 sps:$4 sm:$0xff]  }
 0x3ab   :  { %7332 = vmatpush1.bf16.msra.mxu0 %v9512_v7  ;;  %v9599_v7 = vld [vmem:[#allocation7 + $0xca8] ss:$16 sps:$4 sm:$0xff]  }
 0x3ac   :  { %7676 = vmatpush1.bf16.msra.mxu1 %v9515_v8  ;;  %7333 = vmatprep.subr.bf16.mxu0 %v9520_v9  ;;  %v9604_v8 = vld [vmem:[#allocation7 + $0xcc4] ss:$16 sps:$4 sm:$0xff]   ;;  %v9607_v9 = vld [vmem:[#allocation7 + $0xccc] ss:$16 sps:$4 sm:$0xff]  }
 0x3ad   :  { %7677 = vmatprep.subr.bf16.mxu1 %v9523_v22  ;;  %v9602_v22 = vld [vmem:[#allocation7 + $0xcc0] ss:$16 sps:$4 sm:$0xff]  }
 0x3af   :  { %7334 = vmatpush1.bf16.msra.mxu0 %v9518_v10  ;;  %v9605_v10 = vld [vmem:[#allocation7 + $0xcc8] ss:$16 sps:$4 sm:$0xff]  }
 0x3b0   :  { %7678 = vmatpush1.bf16.msra.mxu1 %v9521_v24  ;;  %7335 = vmatprep.subr.bf16.mxu0 %v9526_v29  ;;  %v9610_v24 = vld [vmem:[#allocation7 + $0xce4] ss:$16 sps:$4 sm:$0xff]   ;;  %v9613_v29 = vld [vmem:[#allocation7 + $0xcec] ss:$16 sps:$4 sm:$0xff]  }
 0x3b1   :  { %7679 = vmatprep.subr.bf16.mxu1 %v9529_v27  ;;  %v9608_v27 = vld [vmem:[#allocation7 + $0xce0] ss:$16 sps:$4 sm:$0xff]  }
 0x3b3   :  { %7336 = vmatpush1.bf16.msra.mxu0 %v9524_v11  ;;  %v9611_v11 = vld [vmem:[#allocation7 + $0xce8] ss:$16 sps:$4 sm:$0xff]  }
 0x3b4   :  { %7680 = vmatpush1.bf16.msra.mxu1 %v9527_v12  ;;  %7337 = vmatprep.subr.bf16.mxu0 %v9532_v13  ;;  %v9616_v12 = vld [vmem:[#allocation7 + $0xd04] ss:$16 sps:$4 sm:$0xff]   ;;  %v9619_v13 = vld [vmem:[#allocation7 + $0xd0c] ss:$16 sps:$4 sm:$0xff]  }
 0x3b5   :  { %7681 = vmatprep.subr.bf16.mxu1 %v9535_v28  ;;  %v9614_v28 = vld [vmem:[#allocation7 + $0xd00] ss:$16 sps:$4 sm:$0xff]  }
 0x3b7   :  { %7338 = vmatpush1.bf16.msra.mxu0 %v9530_v62  ;;  %v9617_v62 = vld [vmem:[#allocation7 + $0xd08] ss:$16 sps:$4 sm:$0xff]  }
 0x3b8   :  { %7682 = vmatpush1.bf16.msra.mxu1 %v9533_v14  ;;  %7339 = vmatprep.subr.bf16.mxu0 %v9538_v47  ;;  %v9622_v14 = vld [vmem:[#allocation7 + $0xd24] ss:$16 sps:$4 sm:$0xff]   ;;  %v9625_v47 = vld [vmem:[#allocation7 + $0xd2c] ss:$16 sps:$4 sm:$0xff]  }
 0x3b9   :  { %7683 = vmatprep.subr.bf16.mxu1 %v9541_v31  ;;  %v9620_v31 = vld [vmem:[#allocation7 + $0xd20] ss:$16 sps:$4 sm:$0xff]  }
 0x3bb   :  { %7340 = vmatpush1.bf16.msra.mxu0 %v9536_v34  ;;  %v9623_v34 = vld [vmem:[#allocation7 + $0xd28] ss:$16 sps:$4 sm:$0xff]  }
 0x3bc   :  { %7684 = vmatpush1.bf16.msra.mxu1 %v9539_v15  ;;  %7341 = vmatprep.subr.bf16.mxu0 %v9544_v16  ;;  %v9628_v15 = vld [vmem:[#allocation7 + $0xd44] ss:$16 sps:$4 sm:$0xff]   ;;  %v9631_v16 = vld [vmem:[#allocation7 + $0xd4c] ss:$16 sps:$4 sm:$0xff]  }
 0x3bd   :  { %7685 = vmatprep.subr.bf16.mxu1 %v9547_v17  ;;  %v9626_v17 = vld [vmem:[#allocation7 + $0xd40] ss:$16 sps:$4 sm:$0xff]  }
 0x3bf   :  { %7342 = vmatpush1.bf16.msra.mxu0 %v9542_v18  ;;  %v9629_v18 = vld [vmem:[#allocation7 + $0xd48] ss:$16 sps:$4 sm:$0xff]  }
 0x3c0   :  { %7686 = vmatpush1.bf16.msra.mxu1 %v9545_v19  ;;  %7343 = vmatprep.subr.bf16.mxu0 %v9550_v20  ;;  %v9634_v19 = vld [vmem:[#allocation7 + $0xd64] ss:$16 sps:$4 sm:$0xff]   ;;  %v9637_v20 = vld [vmem:[#allocation7 + $0xd6c] ss:$16 sps:$4 sm:$0xff]  }
 0x3c1   :  { %7687 = vmatprep.subr.bf16.mxu1 %v9553_v21  ;;  %v9632_v21 = vld [vmem:[#allocation7 + $0xd60] ss:$16 sps:$4 sm:$0xff]  }
 0x3c3   :  { %7344 = vmatpush1.bf16.msra.mxu0 %v9548_v58  ;;  %v9635_v58 = vld [vmem:[#allocation7 + $0xd68] ss:$16 sps:$4 sm:$0xff]  }
 0x3c4   :  { %7688 = vmatpush1.bf16.msra.mxu1 %v9551_v23  ;;  %7345 = vmatprep.subr.bf16.mxu0 %v9556_v26  ;;  %v9640_v23 = vld [vmem:[#allocation7 + $0xd84] ss:$16 sps:$4 sm:$0xff]   ;;  %v9643_v26 = vld [vmem:[#allocation7 + $0xd8c] ss:$16 sps:$4 sm:$0xff]  }
 0x3c5   :  { %7689 = vmatprep.subr.bf16.mxu1 %v9559_v37  ;;  %v9638_v37 = vld [vmem:[#allocation7 + $0xd80] ss:$16 sps:$4 sm:$0xff]  }
 0x3c7   :  { %7346 = vmatpush1.bf16.msra.mxu0 %v9554_v32  ;;  %v9641_v32 = vld [vmem:[#allocation7 + $0xd88] ss:$16 sps:$4 sm:$0xff]  }
 0x3c8   :  { %7690 = vmatpush1.bf16.msra.mxu1 %v9557_v3  ;;  %7347 = vmatprep.subr.bf16.mxu0 %v9562_v38  ;;  %v9646_v3 = vld [vmem:[#allocation7 + $0xda4] ss:$16 sps:$4 sm:$0xff]   ;;  %v9649_v38 = vld [vmem:[#allocation7 + $0xdac] ss:$16 sps:$4 sm:$0xff]  }
 0x3c9   :  { %7691 = vmatprep.subr.bf16.mxu1 %v9565_v35  ;;  %v9644_v35 = vld [vmem:[#allocation7 + $0xda0] ss:$16 sps:$4 sm:$0xff]  }
 0x3cb   :  { %7348 = vmatpush1.bf16.msra.mxu0 %v9560_v25  ;;  %v9647_v25 = vld [vmem:[#allocation7 + $0xda8] ss:$16 sps:$4 sm:$0xff]  }
 0x3cc   :  { %7692 = vmatpush1.bf16.msra.mxu1 %v9563_v40  ;;  %7360 = vmatprep.subr.bf16.mxu0 %v9568_v41  ;;  %v9652_v40 = vld [vmem:[#allocation7 + $0xdc4] ss:$16 sps:$4 sm:$0xff]   ;;  %v9655_v41 = vld [vmem:[#allocation7 + $0xdcc] ss:$16 sps:$4 sm:$0xff]  }
 0x3cd   :  { %7704 = vmatprep.subr.bf16.mxu1 %v9571_v43  ;;  %v9650_v43 = vld [vmem:[#allocation7 + $0xdc0] ss:$16 sps:$4 sm:$0xff]  }
 0x3ce   :  { %7350 = vmatmul.mubr.bf16.vlgmr.msra.gmra.mrb[16].mxu0 %v10114_v53 }
 0x3cf   :  { %7694 = vmatmul.mubr.bf16.vlgmr.msra.gmra.mrb[16].mxu1 %v10114_v53  ;;  %7361 = vmatpush1.bf16.msra.mxu0 %v9566_v45  ;;  %v9589_v53 = vld [vmem:[#allocation7 + $0xc6c] ss:$16 sps:$4 sm:$0xff]   ;;  %v9653_v45 = vld [vmem:[#allocation7 + $0xdc8] ss:$16 sps:$4 sm:$0xff]  }
 0x3d0   :  { %7392 = vmatprep.mubr.bf16.mxu0 %v10144_v56  ;;  %7705 = vmatpush1.bf16.msra.mxu1 %v9569_v48  ;;  %v9658_v48 = vld [vmem:[#allocation7 + $0xde4] ss:$16 sps:$4 sm:$0xff]  }
 0x3d1   :  { %7736 = vmatprep.mubr.bf16.mxu1 %v10144_v56  ;;  %7362 = vmatprep.subr.bf16.mxu0 %v9574_v36  ;;  %v9590_v56 = vld [vmem:[#allocation7 + $0xc80] ss:$16 sps:$4 sm:$0xff]   ;;  %v9661_v36 = vld [vmem:[#allocation7 + $0xdec] ss:$16 sps:$4 sm:$0xff]  }
 0x3d2   :  { %7706 = vmatprep.subr.bf16.mxu1 %v9577_v49  ;;  %v9656_v49 = vld [vmem:[#allocation7 + $0xde0] ss:$16 sps:$4 sm:$0xff]  }
 0x3d3   :  { %7363 = vmatpush1.bf16.msra.mxu0 %v9572_v33  ;;  %v9659_v33 = vld [vmem:[#allocation7 + $0xde8] ss:$16 sps:$4 sm:$0xff]  }
 0x3d4   :  { %7707 = vmatpush1.bf16.msra.mxu1 %v9575_v50  ;;  %7364 = vmatprep.subr.bf16.mxu0 %v9580_v51  ;;  %v9664_v50 = vld [vmem:[#allocation7 + $0xe04] ss:$16 sps:$4 sm:$0xff]   ;;  %v9667_v51 = vld [vmem:[#allocation7 + $0xe0c] ss:$16 sps:$4 sm:$0xff]  }
 0x3d5   :  { %7708 = vmatprep.subr.bf16.mxu1 %v9583_v30  ;;  %v9662_v30 = vld [vmem:[#allocation7 + $0xe00] ss:$16 sps:$4 sm:$0xff]  }
 0x3d7   :  { %7365 = vmatpush1.bf16.msra.mxu0 %v9578_v52  ;;  %v9665_v52 = vld [vmem:[#allocation7 + $0xe08] ss:$16 sps:$4 sm:$0xff]  }
 0x3d8   :  { %7709 = vmatpush1.bf16.msra.mxu1 %v9581_v55  ;;  %7366 = vmatprep.subr.bf16.mxu0 %v9586_v42  ;;  %v9670_v55 = vld [vmem:[#allocation7 + $0xe24] ss:$16 sps:$4 sm:$0xff]   ;;  %v9673_v42 = vld [vmem:[#allocation7 + $0xe2c] ss:$16 sps:$4 sm:$0xff]  }
 0x3d9   :  { %7710 = vmatprep.subr.bf16.mxu1 %v9589_v53  ;;  %v9668_v53 = vld [vmem:[#allocation7 + $0xe20] ss:$16 sps:$4 sm:$0xff]  }
 0x3db   :  { %7367 = vmatpush1.bf16.msra.mxu0 %v9584_v57  ;;  %v9671_v57 = vld [vmem:[#allocation7 + $0xe28] ss:$16 sps:$4 sm:$0xff]  }
 0x3dc   :  { %7711 = vmatpush1.bf16.msra.mxu1 %v9587_v0  ;;  %7368 = vmatprep.subr.bf16.mxu0 %v9592_v1  ;;  %v9676_v0 = vld [vmem:[#allocation7 + $0xe44] ss:$16 sps:$4 sm:$0xff]   ;;  %v9679_v1 = vld [vmem:[#allocation7 + $0xe4c] ss:$16 sps:$4 sm:$0xff]  }
 0x3dd   :  { %7712 = vmatprep.subr.bf16.mxu1 %v9595_v2  ;;  %v9674_v2 = vld [vmem:[#allocation7 + $0xe40] ss:$16 sps:$4 sm:$0xff]  }
 0x3df   :  { %7369 = vmatpush1.bf16.msra.mxu0 %v9590_v56  ;;  %v9677_v56 = vld [vmem:[#allocation7 + $0xe48] ss:$16 sps:$4 sm:$0xff]  }
 0x3e0   :  { %7713 = vmatpush1.bf16.msra.mxu1 %v9593_v4  ;;  %7370 = vmatprep.subr.bf16.mxu0 %v9598_v5  ;;  %v9682_v4 = vld [vmem:[#allocation7 + $0xe64] ss:$16 sps:$4 sm:$0xff]   ;;  %v9680_v5 = vld [vmem:[#allocation7 + $0xe60] ss:$16 sps:$4 sm:$0xff]  }
 0x3e1   :  { %7714 = vmatprep.subr.bf16.mxu1 %v9601_v59  ;;  %v9683_v59 = vld [vmem:[#allocation7 + $0xe68] ss:$16 sps:$4 sm:$0xff]  }
 0x3e3   :  { %7371 = vmatpush1.bf16.msra.mxu0 %v9596_v6  ;;  %v9688_v6 = vld [vmem:[#allocation7 + $0xe84] ss:$16 sps:$4 sm:$0xff]  }
 0x3e4   :  { %7715 = vmatpush1.bf16.msra.mxu1 %v9599_v7  ;;  %7372 = vmatprep.subr.bf16.mxu0 %v9604_v8  ;;  %v9691_v7 = vld [vmem:[#allocation7 + $0xe8c] ss:$16 sps:$4 sm:$0xff]   ;;  %v9689_v8 = vld [vmem:[#allocation7 + $0xe88] ss:$16 sps:$4 sm:$0xff]  }
 0x3e5   :  { %7716 = vmatprep.subr.bf16.mxu1 %v9607_v9  ;;  %v9694_v9 = vld [vmem:[#allocation7 + $0xea4] ss:$16 sps:$4 sm:$0xff]  }
 0x3e7   :  { %7373 = vmatpush1.bf16.msra.mxu0 %v9602_v22  ;;  %v9697_v22 = vld [vmem:[#allocation7 + $0xeac] ss:$16 sps:$4 sm:$0xff]  }
 0x3e8   :  { %7717 = vmatpush1.bf16.msra.mxu1 %v9605_v10  ;;  %7374 = vmatprep.subr.bf16.mxu0 %v9610_v24  ;;  %v9692_v10 = vld [vmem:[#allocation7 + $0xea0] ss:$16 sps:$4 sm:$0xff]   ;;  %v9695_v24 = vld [vmem:[#allocation7 + $0xea8] ss:$16 sps:$4 sm:$0xff]  }
 0x3e9   :  { %7718 = vmatprep.subr.bf16.mxu1 %v9613_v29  ;;  %v9700_v29 = vld [vmem:[#allocation7 + $0xec4] ss:$16 sps:$4 sm:$0xff]  }
 0x3eb   :  { %7375 = vmatpush1.bf16.msra.mxu0 %v9608_v27  ;;  %v9703_v27 = vld [vmem:[#allocation7 + $0xecc] ss:$16 sps:$4 sm:$0xff]  }
 0x3ec   :  { %7719 = vmatpush1.bf16.msra.mxu1 %v9611_v11  ;;  %7376 = vmatprep.subr.bf16.mxu0 %v9616_v12  ;;  %v9698_v11 = vld [vmem:[#allocation7 + $0xec0] ss:$16 sps:$4 sm:$0xff]   ;;  %v9701_v12 = vld [vmem:[#allocation7 + $0xec8] ss:$16 sps:$4 sm:$0xff]  }
 0x3ed   :  { %7720 = vmatprep.subr.bf16.mxu1 %v9619_v13  ;;  %v9706_v13 = vld [vmem:[#allocation7 + $0xee4] ss:$16 sps:$4 sm:$0xff]  }
 0x3ef   :  { %7377 = vmatpush1.bf16.msra.mxu0 %v9614_v28  ;;  %v9709_v28 = vld [vmem:[#allocation7 + $0xeec] ss:$16 sps:$4 sm:$0xff]  }
 0x3f0   :  { %7721 = vmatpush1.bf16.msra.mxu1 %v9617_v62  ;;  %7378 = vmatprep.subr.bf16.mxu0 %v9622_v14  ;;  %v9704_v62 = vld [vmem:[#allocation7 + $0xee0] ss:$16 sps:$4 sm:$0xff]   ;;  %v9707_v14 = vld [vmem:[#allocation7 + $0xee8] ss:$16 sps:$4 sm:$0xff]  }
 0x3f1   :  { %7722 = vmatprep.subr.bf16.mxu1 %v9625_v47  ;;  %v9712_v47 = vld [vmem:[#allocation7 + $0xf04] ss:$16 sps:$4 sm:$0xff]  }
 0x3f3   :  { %7379 = vmatpush1.bf16.msra.mxu0 %v9620_v31  ;;  %v9715_v31 = vld [vmem:[#allocation7 + $0xf0c] ss:$16 sps:$4 sm:$0xff]  }
 0x3f4   :  { %7723 = vmatpush1.bf16.msra.mxu1 %v9623_v34  ;;  %7380 = vmatprep.subr.bf16.mxu0 %v9628_v15  ;;  %v9710_v34 = vld [vmem:[#allocation7 + $0xf00] ss:$16 sps:$4 sm:$0xff]   ;;  %v9713_v15 = vld [vmem:[#allocation7 + $0xf08] ss:$16 sps:$4 sm:$0xff]  }
 0x3f5   :  { %7724 = vmatprep.subr.bf16.mxu1 %v9631_v16  ;;  %v9718_v16 = vld [vmem:[#allocation7 + $0xf24] ss:$16 sps:$4 sm:$0xff]  }
 0x3f7   :  { %7381 = vmatpush1.bf16.msra.mxu0 %v9626_v17  ;;  %v9721_v17 = vld [vmem:[#allocation7 + $0xf2c] ss:$16 sps:$4 sm:$0xff]  }
 0x3f8   :  { %7725 = vmatpush1.bf16.msra.mxu1 %v9629_v18  ;;  %7382 = vmatprep.subr.bf16.mxu0 %v9634_v19  ;;  %v9716_v18 = vld [vmem:[#allocation7 + $0xf20] ss:$16 sps:$4 sm:$0xff]   ;;  %v9719_v19 = vld [vmem:[#allocation7 + $0xf28] ss:$16 sps:$4 sm:$0xff]  }
 0x3f9   :  { %7726 = vmatprep.subr.bf16.mxu1 %v9637_v20  ;;  %v9724_v20 = vld [vmem:[#allocation7 + $0xf44] ss:$16 sps:$4 sm:$0xff]  }
 0x3fb   :  { %7383 = vmatpush1.bf16.msra.mxu0 %v9632_v21  ;;  %v9727_v21 = vld [vmem:[#allocation7 + $0xf4c] ss:$16 sps:$4 sm:$0xff]  }
 0x3fc   :  { %7727 = vmatpush1.bf16.msra.mxu1 %v9635_v58  ;;  %7384 = vmatprep.subr.bf16.mxu0 %v9640_v23  ;;  %v9722_v58 = vld [vmem:[#allocation7 + $0xf40] ss:$16 sps:$4 sm:$0xff]   ;;  %v9725_v23 = vld [vmem:[#allocation7 + $0xf48] ss:$16 sps:$4 sm:$0xff]  }
 0x3fd   :  { %7728 = vmatprep.subr.bf16.mxu1 %v9643_v26  ;;  %v9730_v26 = vld [vmem:[#allocation7 + $0xf64] ss:$16 sps:$4 sm:$0xff]  }
 0x3ff   :  { %7385 = vmatpush1.bf16.msra.mxu0 %v9638_v37  ;;  %v9733_v37 = vld [vmem:[#allocation7 + $0xf6c] ss:$16 sps:$4 sm:$0xff]  }
 0x400   :  { %7729 = vmatpush1.bf16.msra.mxu1 %v9641_v32  ;;  %7386 = vmatprep.subr.bf16.mxu0 %v9646_v3  ;;  %v9728_v32 = vld [vmem:[#allocation7 + $0xf60] ss:$16 sps:$4 sm:$0xff]   ;;  %v9731_v3 = vld [vmem:[#allocation7 + $0xf68] ss:$16 sps:$4 sm:$0xff]  }
 0x401   :  { %7730 = vmatprep.subr.bf16.mxu1 %v9649_v38  ;;  %v9736_v38 = vld [vmem:[#allocation7 + $0xf84] ss:$16 sps:$4 sm:$0xff]  }
 0x403   :  { %7387 = vmatpush1.bf16.msra.mxu0 %v9644_v35  ;;  %v9739_v35 = vld [vmem:[#allocation7 + $0xf8c] ss:$16 sps:$4 sm:$0xff]  }
 0x404   :  { %7731 = vmatpush1.bf16.msra.mxu1 %v9647_v25  ;;  %7388 = vmatprep.subr.bf16.mxu0 %v9652_v40  ;;  %v9734_v25 = vld [vmem:[#allocation7 + $0xf80] ss:$16 sps:$4 sm:$0xff]   ;;  %v9737_v40 = vld [vmem:[#allocation7 + $0xf88] ss:$16 sps:$4 sm:$0xff]  }
 0x405   :  { %7732 = vmatprep.subr.bf16.mxu1 %v9655_v41  ;;  %v9742_v41 = vld [vmem:[#allocation7 + $0xfa4] ss:$16 sps:$4 sm:$0xff]  }
 0x407   :  { %7389 = vmatpush1.bf16.msra.mxu0 %v9650_v43  ;;  %v9745_v43 = vld [vmem:[#allocation7 + $0xfac] ss:$16 sps:$4 sm:$0xff]  }
 0x408   :  { %7733 = vmatpush1.bf16.msra.mxu1 %v9653_v45  ;;  %7390 = vmatprep.subr.bf16.mxu0 %v9658_v48  ;;  %v9740_v45 = vld [vmem:[#allocation7 + $0xfa0] ss:$16 sps:$4 sm:$0xff]   ;;  %v9743_v48 = vld [vmem:[#allocation7 + $0xfa8] ss:$16 sps:$4 sm:$0xff]  }
 0x409   :  { %7734 = vmatprep.subr.bf16.mxu1 %v9661_v36  ;;  %v9748_v36 = vld [vmem:[#allocation7 + $0xfc4] ss:$16 sps:$4 sm:$0xff]  }
 0x40b   :  { %7391 = vmatpush1.bf16.msra.mxu0 %v9656_v49  ;;  %v9751_v49 = vld [vmem:[#allocation7 + $0xfcc] ss:$16 sps:$4 sm:$0xff]  }
 0x40c   :  { %7735 = vmatpush1.bf16.msra.mxu1 %v9659_v33  ;;  %7403 = vmatprep.subr.bf16.mxu0 %v9664_v50  ;;  %v9746_v33 = vld [vmem:[#allocation7 + $0xfc0] ss:$16 sps:$4 sm:$0xff]   ;;  %v9749_v50 = vld [vmem:[#allocation7 + $0xfc8] ss:$16 sps:$4 sm:$0xff]  }
 0x40d   :  { %7747 = vmatprep.subr.bf16.mxu1 %v9667_v51  ;;  %v9754_v51 = vld [vmem:[#allocation7 + $0xfe4] ss:$16 sps:$4 sm:$0xff]  }
 0x40e   :  { %7393 = vmatmul.mubr.bf16.vlgmr.msra.gmra.mrb[16].mxu0 %v10140_v39 }
 0x40f   :  { %7737 = vmatmul.mubr.bf16.vlgmr.msra.gmra.mrb[16].mxu1 %v10140_v39  ;;  %7404 = vmatpush1.bf16.msra.mxu0 %v9662_v30  ;;  %v9685_v39 = vld [vmem:[#allocation7 + $0xe6c] ss:$16 sps:$4 sm:$0xff]  }
 0x410   :  { %7435 = vmatprep.mubr.bf16.mxu0 %v10146_v46  ;;  %7748 = vmatpush1.bf16.msra.mxu1 %v9665_v52  ;;  %v9757_v30 = vld [vmem:[#allocation7 + $0xfec] ss:$16 sps:$4 sm:$0xff]   ;;  %v9752_v52 = vld [vmem:[#allocation7 + $0xfe0] ss:$16 sps:$4 sm:$0xff]  }
 0x411   :  { %7779 = vmatprep.mubr.bf16.mxu1 %v10146_v46  ;;  %7405 = vmatprep.subr.bf16.mxu0 %v9670_v55  ;;  %v9686_v46 = vld [vmem:[#allocation7 + $0xe80] ss:$16 sps:$4 sm:$0xff]   ;;  %v9755_v55 = vld [vmem:[#allocation7 + $0xfe8] ss:$16 sps:$4 sm:$0xff]  }
 0x412   :  { %7749 = vmatprep.subr.bf16.mxu1 %v9673_v42  ;;  %v76_v42 = vld [vmem:[#allocation8] sm:$0xf] }
 0x413   :  { %7406 = vmatpush1.bf16.msra.mxu0 %v9668_v53  ;;  %v81_v53 = vrot.slane %v76_v42, %v10027_v54 }
 0x414   :  { %7750 = vmatpush1.bf16.msra.mxu1 %v9671_v57  ;;  %7407 = vmatprep.subr.bf16.mxu0 %v9676_v0  ;;  %v89_v57 = vrot.slane %v76_v42, %v10032_v60  ;;  %v85_v0 = vrot.slane %v76_v42, %v10035_v61 }
 0x415   :  { %7751 = vmatprep.subr.bf16.mxu1 %v9679_v1  ;;  %v93_v1 = vrot.slane %v76_v42, %v10038_v63 }
 0x417   :  { %7408 = vmatpush1.bf16.msra.mxu0 %v9674_v2 }
 0x418   :  { %7752 = vmatpush1.bf16.msra.mxu1 %v9677_v56  ;;  %7409 = vmatprep.subr.bf16.mxu0 %v9682_v4 }
 0x419   :  { %7753 = vmatprep.subr.bf16.mxu1 %v9685_v39 }
 0x41b   :  { %7410 = vmatpush1.bf16.msra.mxu0 %v9680_v5 }
 0x41c   :  { %7754 = vmatpush1.bf16.msra.mxu1 %v9683_v59  ;;  %7411 = vmatprep.subr.bf16.mxu0 %v9688_v6 }
 0x41d   :  { %7755 = vmatprep.subr.bf16.mxu1 %v9691_v7 }
 0x41f   :  { %7412 = vmatpush1.bf16.msra.mxu0 %v9686_v46 }
 0x420   :  { %7756 = vmatpush1.bf16.msra.mxu1 %v9689_v8  ;;  %7413 = vmatprep.subr.bf16.mxu0 %v9694_v9 }
 0x421   :  { %7757 = vmatprep.subr.bf16.mxu1 %v9697_v22 }
 0x423   :  { %7414 = vmatpush1.bf16.msra.mxu0 %v9692_v10 }
 0x424   :  { %7758 = vmatpush1.bf16.msra.mxu1 %v9695_v24  ;;  %7415 = vmatprep.subr.bf16.mxu0 %v9700_v29 }
 0x425   :  { %7759 = vmatprep.subr.bf16.mxu1 %v9703_v27 }
 0x427   :  { %7416 = vmatpush1.bf16.msra.mxu0 %v9698_v11 }
 0x428   :  { %7760 = vmatpush1.bf16.msra.mxu1 %v9701_v12  ;;  %7417 = vmatprep.subr.bf16.mxu0 %v9706_v13 }
 0x429   :  { %7761 = vmatprep.subr.bf16.mxu1 %v9709_v28 }
 0x42b   :  { %7418 = vmatpush1.bf16.msra.mxu0 %v9704_v62 }
 0x42c   :  { %7762 = vmatpush1.bf16.msra.mxu1 %v9707_v14  ;;  %7419 = vmatprep.subr.bf16.mxu0 %v9712_v47 }
 0x42d   :  { %7763 = vmatprep.subr.bf16.mxu1 %v9715_v31 }
 0x42f   :  { %7420 = vmatpush1.bf16.msra.mxu0 %v9710_v34 }
 0x430   :  { %7764 = vmatpush1.bf16.msra.mxu1 %v9713_v15  ;;  %7421 = vmatprep.subr.bf16.mxu0 %v9718_v16 }
 0x431   :  { %7765 = vmatprep.subr.bf16.mxu1 %v9721_v17 }
 0x433   :  { %7422 = vmatpush1.bf16.msra.mxu0 %v9716_v18 }
 0x434   :  { %7766 = vmatpush1.bf16.msra.mxu1 %v9719_v19  ;;  %7423 = vmatprep.subr.bf16.mxu0 %v9724_v20 }
 0x435   :  { %7767 = vmatprep.subr.bf16.mxu1 %v9727_v21 }
 0x437   :  { %7424 = vmatpush1.bf16.msra.mxu0 %v9722_v58 }
 0x438   :  { %7768 = vmatpush1.bf16.msra.mxu1 %v9725_v23  ;;  %7425 = vmatprep.subr.bf16.mxu0 %v9730_v26 }
 0x439   :  { %7769 = vmatprep.subr.bf16.mxu1 %v9733_v37 }
 0x43b   :  { %7426 = vmatpush1.bf16.msra.mxu0 %v9728_v32 }
 0x43c   :  { %7770 = vmatpush1.bf16.msra.mxu1 %v9731_v3  ;;  %7427 = vmatprep.subr.bf16.mxu0 %v9736_v38 }
 0x43d   :  { %7771 = vmatprep.subr.bf16.mxu1 %v9739_v35 }
 0x43f   :  { %7428 = vmatpush1.bf16.msra.mxu0 %v9734_v25 }
 0x440   :  { %7772 = vmatpush1.bf16.msra.mxu1 %v9737_v40  ;;  %7429 = vmatprep.subr.bf16.mxu0 %v9742_v41 }
 0x441   :  { %7773 = vmatprep.subr.bf16.mxu1 %v9745_v43 }
 0x443   :  { %7430 = vmatpush1.bf16.msra.mxu0 %v9740_v45 }
 0x444   :  { %7774 = vmatpush1.bf16.msra.mxu1 %v9743_v48  ;;  %7431 = vmatprep.subr.bf16.mxu0 %v9748_v36 }
 0x445   :  { %7775 = vmatprep.subr.bf16.mxu1 %v9751_v49 }
 0x447   :  { %7432 = vmatpush1.bf16.msra.mxu0 %v9746_v33 }
 0x448   :  { %7776 = vmatpush1.bf16.msra.mxu1 %v9749_v50  ;;  %7433 = vmatprep.subr.bf16.mxu0 %v9754_v51 }
 0x449   :  { %7777 = vmatprep.subr.bf16.mxu1 %v9757_v30 }
 0x44b   :  { %7434 = vmatpush1.bf16.msra.mxu0 %v9752_v52 }
 0x44c   :  { %7778 = vmatpush1.bf16.msra.mxu1 %v9755_v55 }
 0x44e   :  { %7436 = vmatmul.mubr.bf16.vlgmr.msra.gmra.mrb[16].mxu0 %v10142_v44 }
 0x44f   :  { %7780 = vmatmul.mubr.bf16.vlgmr.msra.gmra.mrb[16].mxu1 %v10142_v44 }
 0x521   :  { %v7437_v2 = vpop.f32.mrb[16].mxu0 }
 0x522   :  { %v7790_v56 = vadd.f32 %v7437_v2, %v81_v53  ;;  %v7781_v4 = vpop.f32.mrb[16].mxu1  ;;  %v7439_v39 = vpop.f32.mrb[17].mxu0 }
 0x523   :  { %v7792_v5 = vadd.f32 %v7781_v4, %v89_v57  ;;  %v7791_v59 = vadd.f32 %v7439_v39, %v85_v0  ;;  %v7783_v6 = vpop.f32.mrb[17].mxu1  ;;  %v7441_v7 = vpop.f32.mrb[18].mxu0 }
 0x524   :  { %7798 = vst [vmem:[#allocation10] sm:$0xff] %v7790_v56  ;;  %v7793_v44 = vadd.f32 %v7783_v6, %v93_v1  ;;  %v7794_v46 = vadd.f32 %v7441_v7, %v81_v53  ;;  %v7785_v54 = vpop.f32.mrb[18].mxu1  ;;  %v7443_v8 = vpop.f32.mrb[19].mxu0 }
 0x525   :  { %7800 = vst [vmem:[#allocation10 + $0x10] sm:$0xff] %v7792_v5  ;;  %7799 = vst [vmem:[#allocation10 + $0x8] sm:$0xff] %v7791_v59  ;;  %v7796_v60 = vadd.f32 %v7785_v54, %v89_v57  ;;  %v7795_v61 = vadd.f32 %v7443_v8, %v85_v0  ;;  %v7787_v63 = vpop.f32.mrb[19].mxu1 }
 0x526   :  { %7801 = vst [vmem:[#allocation10 + $0x18] sm:$0xff] %v7793_v44  ;;  %7802 = vst [vmem:[#allocation10 + $0x20] sm:$0xff] %v7794_v46  ;;  %v7797_v9 = vadd.f32 %v7787_v63, %v93_v1 }
 0x527   :  { %7804 = vst [vmem:[#allocation10 + $0x30] sm:$0xff] %v7796_v60  ;;  %7803 = vst [vmem:[#allocation10 + $0x28] sm:$0xff] %v7795_v61 }
 0x528   :  { %7805 = vst [vmem:[#allocation10 + $0x38] sm:$0xff] %v7797_v9 }
 0x529   :  { %9865 = shalt.err (!%p9862_p8)
}
 0x52a   :  { %s9866_s15 = scalar_lea.hbm %s10187_s5, 1024 }
 0x52b   :  { %p9867_p9 = scmp.ne.s32.totalorder %s10187_s5, %s9866_s15  ;;  %p9870_p10 = scmp.lt.u32.totalorder %s9866_s15, %s10187_s5 }
 0x52d   :  { %p9872_p11 = pnand %p9870_p10, %p9867_p9 }
 0x52f   :  { %9875 = shalt.err (!%p9872_p11)
}
 0x530   :  { %s9893_s19 = smov 512   ;;  %s9894_s20 = smov 32  }
 0x531   :  { %7817 = dma.vmem_to_hbm [thread:$0]  %s7812_s13, 1024, %s10187_s5, [#allocation4], %s9893_s19, %s9893_s19, %s9894_s20  }
 0x532   :  { %9882 = dma.done.wait [#allocation4], 1024  }
 0x533   :  { %9883 = vsyncadd [#allocation4], 4294966272 }
 0x534   :  { %7821 = vsyncpa [#allocation3], 1 }
 0x535   :  { %7822 = vsyncpa [#allocation6], 1 }
 0x536   :  { %7823 = vsyncpa [#allocation9], 1 }
 0x537   :  { %7824 = vsyncpa [#allocation4], 1 }

</bundles_post_ra>
